<compile_context>
chip_gen: v6e
topology: v6e:2x2x1
jax: 0.10.0
libtpu: 0.0.40
codegen_flags: <defaults>
</compile_context>

<pallas_src>
import functools

import jax
import jax.numpy as jnp
from jax import lax
from jax.experimental import pallas as pl
from jax.experimental.pallas import tpu as pltpu


def _round_up(a, b):
    return (a + b - 1) // b * b


def _conv_acc(x_ref, w_ref, *, KH, KW, Wp, R_out):
    """Accumulate KH*KW shifted bf16 matmuls into an fp32 (R_out, Cout) block.

    x_ref: (Rpad_in, Cin) bf16 flat padded-NHWC rows of one sample.
    w_ref: (KH*KW, Cin, Cout) bf16 per-tap weights.
    Row i of the result corresponds to output position (oh, ow) with
    i = oh*Wp + ow; columns with ow >= Wo are junk and are masked / dropped.
    """
    cout = w_ref.shape[-1]
    acc = jnp.zeros((R_out, cout), jnp.float32)
    for kh in range(KH):
        for kw in range(KW):
            base = kh * Wp + kw                       # static offset
            lhs = x_ref[pl.ds(base, R_out), :]        # (R_out, Cin) bf16
            acc = acc + jnp.dot(lhs, w_ref[kh * KW + kw],
                                preferred_element_type=jnp.float32)
    return acc


def conv_stats_kernel(x_ref, w_ref, mask_ref, sum_ref, sumsq_ref,
                      *, KH, KW, Wp, R_out):
    """Pass 1: recompute conv for one sample, emit per-sample sum / sumsq."""
    acc = _conv_acc(x_ref, w_ref, KH=KH, KW=KW, Wp=Wp, R_out=R_out)
    accm = acc * mask_ref[...]                        # zero out junk columns
    sum_ref[...] = jnp.sum(accm, axis=0, keepdims=True)
    sumsq_ref[...] = jnp.sum(accm * accm, axis=0, keepdims=True)


def conv_bn_relu_kernel(x_ref, w_ref, scale_ref, shift_ref, o_ref,
                        *, KH, KW, Wp, R_out):
    """Pass 2: recompute conv, fuse y*scale + shift and ReLU, compact write."""
    acc = _conv_acc(x_ref, w_ref, KH=KH, KW=KW, Wp=Wp, R_out=R_out)
    y = acc * scale_ref[...] + shift_ref[...]
    o_ref[...] = jnp.maximum(y, 0.0)


def cnn_block_forward(x_nchw, w_oihw, bias, gamma, beta, *, padding, eps=1e-5):
    """Forward pass of CNN_block (Conv2d -> BatchNorm2d(train) -> ReLU), NCHW in/out.

    `bias` is accepted for API parity but unused: a per-channel additive bias is
    cancelled exactly by train-mode BatchNorm centering.
    """
    del bias
    N, Cin, H, W = x_nchw.shape
    Cout, Cin_w, KH, KW = w_oihw.shape
    assert Cin_w == Cin

    Hp, Wp = H + 2 * padding, W + 2 * padding
    Ho, Wo = Hp - KH + 1, Wp - KW + 1
    R_out = Ho * Wp                                   # image-strided conv rows
    Rin_need = (KH - 1) * Wp + (KW - 1) + R_out       # = Hp*Wp + KW - 1
    Rpad_in = _round_up(Rin_need, 8)

    # Per-grid-step VMEM sanity (bf16 slab + fp32 acc, conservative 128-lane pad).
    slab_bytes = _round_up(Rpad_in, 16) * 128 * 2
    acc_bytes = _round_up(R_out, 8) * 128 * 4
    assert 2 * (slab_bytes + acc_bytes) < 24 * 1024 * 1024, (
        "per-sample slab too large for whole-sample tiling; see TODO(synk)")

    # ---- prologue: NCHW -> padded NHWC -> flat rows, bf16 ----
    x = jnp.transpose(x_nchw, (0, 2, 3, 1))
    xp = jnp.pad(x, ((0, 0), (padding, padding), (padding, padding), (0, 0)))
    xflat = xp.reshape(N, Hp * Wp, Cin)
    xflat = jnp.pad(xflat, ((0, 0), (0, Rpad_in - Hp * Wp), (0, 0)))
    xflat = xflat.astype(jnp.bfloat16)

    # Per-tap weights (KH*KW, Cin, Cout), bf16.
    w_t = jnp.transpose(w_oihw, (2, 3, 1, 0)).reshape(KH * KW, Cin, Cout)
    w_t = w_t.astype(jnp.bfloat16)

    # Column-validity mask for the image-strided rows (ow < Wo), built on host
    # to avoid in-kernel integer modulo; tiny (R_out x 1) fp32.
    mask = jnp.tile(jnp.arange(Wp) < Wo, Ho).astype(jnp.float32).reshape(R_out, 1)

    # 32 MiB is safe on all generations (v7x scoped default); per-step usage here
    # is far smaller.  On v6e/v5e this could be raised with bigger row tiles.
    cparams = pltpu.CompilerParams(
        dimension_semantics=("parallel",),
        vmem_limit_bytes=32 * 1024 * 1024)

    # ---- pass 1: conv + per-sample partial BN statistics (fully parallel) ----
    psum, psumsq = pl.pallas_call(
        functools.partial(conv_stats_kernel, KH=KH, KW=KW, Wp=Wp, R_out=R_out),
        out_shape=(jax.ShapeDtypeStruct((N, 1, Cout), jnp.float32),
                   jax.ShapeDtypeStruct((N, 1, Cout), jnp.float32)),
        grid_spec=pltpu.PrefetchScalarGridSpec(
            num_scalar_prefetch=0,
            grid=(N,),
            in_specs=[pl.BlockSpec((None, Rpad_in, Cin), lambda n: (n, 0, 0)),
                      pl.BlockSpec((KH * KW, Cin, Cout), lambda n: (0, 0, 0)),
                      pl.BlockSpec((R_out, 1), lambda n: (0, 0))],
            out_specs=(pl.BlockSpec((None, 1, Cout), lambda n: (n, 0, 0)),
                       pl.BlockSpec((None, 1, Cout), lambda n: (n, 0, 0)))),
        compiler_params=cparams,
    )(xflat, w_t, mask)

    # ---- tiny finalize in plain JAX (hierarchical fp32 combine of partials) ----
    cnt = jnp.float32(N * Ho * Wo)
    tot = jnp.sum(psum[:, 0, :], axis=0)
    totsq = jnp.sum(psumsq[:, 0, :], axis=0)
    mean = tot / cnt
    var = jnp.maximum(totsq / cnt - mean * mean, 0.0)
    scale = (gamma.astype(jnp.float32) * lax.rsqrt(var + jnp.float32(eps)))
    shift = beta.astype(jnp.float32) - mean * scale
    scale = scale.reshape(1, Cout)
    shift = shift.reshape(1, Cout)

    # ---- pass 2: recompute conv, fused normalize + ReLU, compact write ----
    y = pl.pallas_call(
        functools.partial(conv_bn_relu_kernel, KH=KH, KW=KW, Wp=Wp, R_out=R_out),
        out_shape=jax.ShapeDtypeStruct((N, R_out, Cout), jnp.float32),
        grid_spec=pltpu.PrefetchScalarGridSpec(
            num_scalar_prefetch=0,
            grid=(N,),
            in_specs=[pl.BlockSpec((None, Rpad_in, Cin), lambda n: (n, 0, 0)),
                      pl.BlockSpec((KH * KW, Cin, Cout), lambda n: (0, 0, 0)),
                      pl.BlockSpec((1, Cout), lambda n: (0, 0)),
                      pl.BlockSpec((1, Cout), lambda n: (0, 0))],
            out_specs=pl.BlockSpec((None, R_out, Cout), lambda n: (n, 0, 0))),
        compiler_params=cparams,
    )(xflat, w_t, scale, shift)

    # Epilogue touches only the logical-size output (drop junk cols, to NCHW).
    y = y.reshape(N, Ho, Wp, Cout)[:, :, :Wo, :]
    return jnp.transpose(y, (0, 3, 1, 2))


def reference_forward(x_nchw, w_oihw, bias, gamma, beta, *, padding, eps=1e-5,
                      cast_bf16=True):
    """Pure-JAX reference (CNN_block.forward, BN in train mode).

    With cast_bf16=True the conv inputs are rounded to bf16 (matching the
    kernel's MXU precision) but all arithmetic stays fp32, so kernel vs
    reference differences are pure accumulation-order noise.
    """
    xc, wc = (x_nchw, w_oihw)
    if cast_bf16:
        xc = x_nchw.astype(jnp.bfloat16).astype(jnp.float32)
        wc = w_oihw.astype(jnp.bfloat16).astype(jnp.float32)
    y = lax.conv_general_dilated(
        xc, wc, window_strides=(1, 1),
        padding=[(padding, padding), (padding, padding)],
        dimension_numbers=("NCHW", "OIHW", "NCHW"))
    y = y + bias.reshape(1, -1, 1, 1)
    mean = jnp.mean(y, axis=(0, 2, 3), keepdims=True)
    var = jnp.mean((y - mean) ** 2, axis=(0, 2, 3), keepdims=True)
    y = (y - mean) * lax.rsqrt(var + eps)
    y = y * gamma.reshape(1, -1, 1, 1) + beta.reshape(1, -1, 1, 1)
    return jnp.maximum(y, 0.0)


if __name__ == "__main__":
    # Module config: in_plane=4, out_plane=8, kernel_size=3, padding=1, act=ReLU
    N, Cin, H, W = 2, 4, 16, 16
    Cout, KH, KW, pad = 8, 3, 3, 1

    key = jax.random.PRNGKey(0)
    kx, kw, kb, kg, kbt = jax.random.split(key, 5)
    x = jax.random.normal(kx, (N, Cin, H, W), dtype=jnp.float32)
    conv_w = jax.random.normal(kw, (Cout, Cin, KH, KW), dtype=jnp.float32) * 0.1
    conv_b = jax.random.normal(kb, (Cout,), dtype=jnp.float32) * 0.1
    # BatchNorm2d affine params (defaults are ones/zeros; perturb to exercise path).
    bn_gamma = 1.0 + 0.1 * jax.random.normal(kg, (Cout,), dtype=jnp.float32)
    bn_beta = 0.1 * jax.random.normal(kbt, (Cout,), dtype=jnp.float32)

    fwd = jax.jit(functools.partial(cnn_block_forward, padding=pad))
    out = jax.block_until_ready(fwd(x, conv_w, conv_b, bn_gamma, bn_beta))

    ref = reference_forward(x, conv_w, conv_b, bn_gamma, bn_beta, padding=pad)
    assert out.shape == (N, Cout, H, W), out.shape
    assert bool(jnp.all(jnp.isfinite(out))), "non-finite output"
    assert jnp.allclose(out, ref, atol=2e-3, rtol=2e-3), "mismatch vs reference"

    print("KERNEL_OK")
</pallas_src>

<mosaic_0001>
module attributes {stable_mosaic.version = 11 : i64} {
  func.func @conv_stats_kernel(%arg0: i32, %arg1: memref<1x328x4xbf16, #tpu.memory_space<vmem>>, %arg2: memref<9x4x8xbf16, #tpu.memory_space<vmem>>, %arg3: memref<288x1xf32, #tpu.memory_space<vmem>>, %arg4: memref<1x1x8xf32, #tpu.memory_space<vmem>>, %arg5: memref<1x1x8xf32, #tpu.memory_space<vmem>>) attributes {dimension_semantics = [#tpu.dimension_semantics<parallel>], iteration_bounds = array<i64: 2>, scalar_prefetch = 0 : i64, scratch_operands = 0 : i64, tpu.core_type = #tpu.core_type<tc>, window_params = [{transform_indices = @transform_0, window_bounds = array<i64: 1, 328, 4>}, {pipeline_mode = #tpu.pipeline_mode<synchronous>, transform_indices = @transform_1, window_bounds = array<i64: 9, 4, 8>}, {pipeline_mode = #tpu.pipeline_mode<synchronous>, transform_indices = @transform_2, window_bounds = array<i64: 288, 1>}, {transform_indices = @transform_3, window_bounds = array<i64: 1, 1, 8>}, {transform_indices = @transform_4, window_bounds = array<i64: 1, 1, 8>}]} {
    %cst = arith.constant 0.000000e+00 : f32
    %0 = vector.broadcast %cst : f32 to vector<288x8xf32>
    %c0 = arith.constant 0 : index
    %c0_0 = arith.constant 0 : index
    %c0_1 = arith.constant 0 : index
    %1 = vector.load %arg1[%c0, %c0_0, %c0_1] : memref<1x328x4xbf16, #tpu.memory_space<vmem>>, vector<1x288x4xbf16>
    %2 = vector.shape_cast %1 : vector<1x288x4xbf16> to vector<288x4xbf16>
    %c0_2 = arith.constant 0 : index
    %c0_3 = arith.constant 0 : index
    %c0_4 = arith.constant 0 : index
    %3 = vector.load %arg2[%c0_2, %c0_3, %c0_4] : memref<9x4x8xbf16, #tpu.memory_space<vmem>>, vector<1x4x8xbf16>
    %4 = vector.shape_cast %3 : vector<1x4x8xbf16> to vector<4x8xbf16>
    %cst_5 = arith.constant dense<0.000000e+00> : vector<288x8xf32>
    %5 = tpu.matmul %2, %4, %cst_5 {dimension_numbers = #tpu.dot_dimension_numbers<[1], [0], [0], [1], [0, 0, 1, 1], [], []>} : vector<288x4xbf16>, vector<4x8xbf16>, vector<288x8xf32> -> vector<288x8xf32>
    %6 = arith.addf %0, %5 : vector<288x8xf32>
    %c0_6 = arith.constant 0 : index
    %c1 = arith.constant 1 : index
    %c0_7 = arith.constant 0 : index
    %7 = vector.load %arg1[%c0_6, %c1, %c0_7] : memref<1x328x4xbf16, #tpu.memory_space<vmem>>, vector<1x288x4xbf16>
    %8 = vector.shape_cast %7 : vector<1x288x4xbf16> to vector<288x4xbf16>
    %c1_8 = arith.constant 1 : index
    %c0_9 = arith.constant 0 : index
    %c0_10 = arith.constant 0 : index
    %9 = vector.load %arg2[%c1_8, %c0_9, %c0_10] : memref<9x4x8xbf16, #tpu.memory_space<vmem>>, vector<1x4x8xbf16>
    %10 = vector.shape_cast %9 : vector<1x4x8xbf16> to vector<4x8xbf16>
    %cst_11 = arith.constant dense<0.000000e+00> : vector<288x8xf32>
    %11 = tpu.matmul %8, %10, %cst_11 {dimension_numbers = #tpu.dot_dimension_numbers<[1], [0], [0], [1], [0, 0, 1, 1], [], []>} : vector<288x4xbf16>, vector<4x8xbf16>, vector<288x8xf32> -> vector<288x8xf32>
    %12 = arith.addf %6, %11 : vector<288x8xf32>
    %c0_12 = arith.constant 0 : index
    %c2 = arith.constant 2 : index
    %c0_13 = arith.constant 0 : index
    %13 = vector.load %arg1[%c0_12, %c2, %c0_13] : memref<1x328x4xbf16, #tpu.memory_space<vmem>>, vector<1x288x4xbf16>
    %14 = vector.shape_cast %13 : vector<1x288x4xbf16> to vector<288x4xbf16>
    %c2_14 = arith.constant 2 : index
    %c0_15 = arith.constant 0 : index
    %c0_16 = arith.constant 0 : index
    %15 = vector.load %arg2[%c2_14, %c0_15, %c0_16] : memref<9x4x8xbf16, #tpu.memory_space<vmem>>, vector<1x4x8xbf16>
    %16 = vector.shape_cast %15 : vector<1x4x8xbf16> to vector<4x8xbf16>
    %cst_17 = arith.constant dense<0.000000e+00> : vector<288x8xf32>
    %17 = tpu.matmul %14, %16, %cst_17 {dimension_numbers = #tpu.dot_dimension_numbers<[1], [0], [0], [1], [0, 0, 1, 1], [], []>} : vector<288x4xbf16>, vector<4x8xbf16>, vector<288x8xf32> -> vector<288x8xf32>
    %18 = arith.addf %12, %17 : vector<288x8xf32>
    %c0_18 = arith.constant 0 : index
    %c18 = arith.constant 18 : index
    %c0_19 = arith.constant 0 : index
    %19 = vector.load %arg1[%c0_18, %c18, %c0_19] : memref<1x328x4xbf16, #tpu.memory_space<vmem>>, vector<1x288x4xbf16>
    %20 = vector.shape_cast %19 : vector<1x288x4xbf16> to vector<288x4xbf16>
    %c3 = arith.constant 3 : index
    %c0_20 = arith.constant 0 : index
    %c0_21 = arith.constant 0 : index
    %21 = vector.load %arg2[%c3, %c0_20, %c0_21] : memref<9x4x8xbf16, #tpu.memory_space<vmem>>, vector<1x4x8xbf16>
    %22 = vector.shape_cast %21 : vector<1x4x8xbf16> to vector<4x8xbf16>
    %cst_22 = arith.constant dense<0.000000e+00> : vector<288x8xf32>
    %23 = tpu.matmul %20, %22, %cst_22 {dimension_numbers = #tpu.dot_dimension_numbers<[1], [0], [0], [1], [0, 0, 1, 1], [], []>} : vector<288x4xbf16>, vector<4x8xbf16>, vector<288x8xf32> -> vector<288x8xf32>
    %24 = arith.addf %18, %23 : vector<288x8xf32>
    %c0_23 = arith.constant 0 : index
    %c19 = arith.constant 19 : index
    %c0_24 = arith.constant 0 : index
    %25 = vector.load %arg1[%c0_23, %c19, %c0_24] : memref<1x328x4xbf16, #tpu.memory_space<vmem>>, vector<1x288x4xbf16>
    %26 = vector.shape_cast %25 : vector<1x288x4xbf16> to vector<288x4xbf16>
    %c4 = arith.constant 4 : index
    %c0_25 = arith.constant 0 : index
    %c0_26 = arith.constant 0 : index
    %27 = vector.load %arg2[%c4, %c0_25, %c0_26] : memref<9x4x8xbf16, #tpu.memory_space<vmem>>, vector<1x4x8xbf16>
    %28 = vector.shape_cast %27 : vector<1x4x8xbf16> to vector<4x8xbf16>
    %cst_27 = arith.constant dense<0.000000e+00> : vector<288x8xf32>
    %29 = tpu.matmul %26, %28, %cst_27 {dimension_numbers = #tpu.dot_dimension_numbers<[1], [0], [0], [1], [0, 0, 1, 1], [], []>} : vector<288x4xbf16>, vector<4x8xbf16>, vector<288x8xf32> -> vector<288x8xf32>
    %30 = arith.addf %24, %29 : vector<288x8xf32>
    %c0_28 = arith.constant 0 : index
    %c20 = arith.constant 20 : index
    %c0_29 = arith.constant 0 : index
    %31 = vector.load %arg1[%c0_28, %c20, %c0_29] : memref<1x328x4xbf16, #tpu.memory_space<vmem>>, vector<1x288x4xbf16>
    %32 = vector.shape_cast %31 : vector<1x288x4xbf16> to vector<288x4xbf16>
    %c5 = arith.constant 5 : index
    %c0_30 = arith.constant 0 : index
    %c0_31 = arith.constant 0 : index
    %33 = vector.load %arg2[%c5, %c0_30, %c0_31] : memref<9x4x8xbf16, #tpu.memory_space<vmem>>, vector<1x4x8xbf16>
    %34 = vector.shape_cast %33 : vector<1x4x8xbf16> to vector<4x8xbf16>
    %cst_32 = arith.constant dense<0.000000e+00> : vector<288x8xf32>
    %35 = tpu.matmul %32, %34, %cst_32 {dimension_numbers = #tpu.dot_dimension_numbers<[1], [0], [0], [1], [0, 0, 1, 1], [], []>} : vector<288x4xbf16>, vector<4x8xbf16>, vector<288x8xf32> -> vector<288x8xf32>
    %36 = arith.addf %30, %35 : vector<288x8xf32>
    %c0_33 = arith.constant 0 : index
    %c36 = arith.constant 36 : index
    %c0_34 = arith.constant 0 : index
    %37 = vector.load %arg1[%c0_33, %c36, %c0_34] : memref<1x328x4xbf16, #tpu.memory_space<vmem>>, vector<1x288x4xbf16>
    %38 = vector.shape_cast %37 : vector<1x288x4xbf16> to vector<288x4xbf16>
    %c6 = arith.constant 6 : index
    %c0_35 = arith.constant 0 : index
    %c0_36 = arith.constant 0 : index
    %39 = vector.load %arg2[%c6, %c0_35, %c0_36] : memref<9x4x8xbf16, #tpu.memory_space<vmem>>, vector<1x4x8xbf16>
    %40 = vector.shape_cast %39 : vector<1x4x8xbf16> to vector<4x8xbf16>
    %cst_37 = arith.constant dense<0.000000e+00> : vector<288x8xf32>
    %41 = tpu.matmul %38, %40, %cst_37 {dimension_numbers = #tpu.dot_dimension_numbers<[1], [0], [0], [1], [0, 0, 1, 1], [], []>} : vector<288x4xbf16>, vector<4x8xbf16>, vector<288x8xf32> -> vector<288x8xf32>
    %42 = arith.addf %36, %41 : vector<288x8xf32>
    %c0_38 = arith.constant 0 : index
    %c37 = arith.constant 37 : index
    %c0_39 = arith.constant 0 : index
    %43 = vector.load %arg1[%c0_38, %c37, %c0_39] : memref<1x328x4xbf16, #tpu.memory_space<vmem>>, vector<1x288x4xbf16>
    %44 = vector.shape_cast %43 : vector<1x288x4xbf16> to vector<288x4xbf16>
    %c7 = arith.constant 7 : index
    %c0_40 = arith.constant 0 : index
    %c0_41 = arith.constant 0 : index
    %45 = vector.load %arg2[%c7, %c0_40, %c0_41] : memref<9x4x8xbf16, #tpu.memory_space<vmem>>, vector<1x4x8xbf16>
    %46 = vector.shape_cast %45 : vector<1x4x8xbf16> to vector<4x8xbf16>
    %cst_42 = arith.constant dense<0.000000e+00> : vector<288x8xf32>
    %47 = tpu.matmul %44, %46, %cst_42 {dimension_numbers = #tpu.dot_dimension_numbers<[1], [0], [0], [1], [0, 0, 1, 1], [], []>} : vector<288x4xbf16>, vector<4x8xbf16>, vector<288x8xf32> -> vector<288x8xf32>
    %48 = arith.addf %42, %47 : vector<288x8xf32>
    %c0_43 = arith.constant 0 : index
    %c38 = arith.constant 38 : index
    %c0_44 = arith.constant 0 : index
    %49 = vector.load %arg1[%c0_43, %c38, %c0_44] : memref<1x328x4xbf16, #tpu.memory_space<vmem>>, vector<1x288x4xbf16>
    %50 = vector.shape_cast %49 : vector<1x288x4xbf16> to vector<288x4xbf16>
    %c8 = arith.constant 8 : index
    %c0_45 = arith.constant 0 : index
    %c0_46 = arith.constant 0 : index
    %51 = vector.load %arg2[%c8, %c0_45, %c0_46] : memref<9x4x8xbf16, #tpu.memory_space<vmem>>, vector<1x4x8xbf16>
    %52 = vector.shape_cast %51 : vector<1x4x8xbf16> to vector<4x8xbf16>
    %cst_47 = arith.constant dense<0.000000e+00> : vector<288x8xf32>
    %53 = tpu.matmul %50, %52, %cst_47 {dimension_numbers = #tpu.dot_dimension_numbers<[1], [0], [0], [1], [0, 0, 1, 1], [], []>} : vector<288x4xbf16>, vector<4x8xbf16>, vector<288x8xf32> -> vector<288x8xf32>
    %54 = arith.addf %48, %53 : vector<288x8xf32>
    %c0_48 = arith.constant 0 : index
    %c0_49 = arith.constant 0 : index
    %55 = vector.load %arg3[%c0_48, %c0_49] : memref<288x1xf32, #tpu.memory_space<vmem>>, vector<288x1xf32>
    %56 = vector.broadcast %55 : vector<288x1xf32> to vector<288x8xf32>
    %57 = arith.mulf %54, %56 : vector<288x8xf32>
    %cst_50 = arith.constant dense<0.000000e+00> : vector<8xf32>
    %58 = vector.multi_reduction <add>, %57, %cst_50 [0] : vector<288x8xf32> to vector<8xf32>
    %59 = vector.shape_cast %58 : vector<8xf32> to vector<1x8xf32>
    %c0_51 = arith.constant 0 : index
    %c0_52 = arith.constant 0 : index
    %c0_53 = arith.constant 0 : index
    %60 = vector.load %arg4[%c0_51, %c0_52, %c0_53] : memref<1x1x8xf32, #tpu.memory_space<vmem>>, vector<1x1x8xf32>
    %61 = vector.shape_cast %60 : vector<1x1x8xf32> to vector<1x8xf32>
    %62 = vector.shape_cast %59 : vector<1x8xf32> to vector<1x1x8xf32>
    tpu.vector_store %arg4[%c0_51, %c0_52, %c0_53], %62 {strides = array<i32>} : memref<1x1x8xf32, #tpu.memory_space<vmem>>, vector<1x1x8xf32>,
    %63 = arith.mulf %57, %57 : vector<288x8xf32>
    %cst_54 = arith.constant dense<0.000000e+00> : vector<8xf32>
    %64 = vector.multi_reduction <add>, %63, %cst_54 [0] : vector<288x8xf32> to vector<8xf32>
    %65 = vector.shape_cast %64 : vector<8xf32> to vector<1x8xf32>
    %c0_55 = arith.constant 0 : index
    %c0_56 = arith.constant 0 : index
    %c0_57 = arith.constant 0 : index
    %66 = vector.load %arg5[%c0_55, %c0_56, %c0_57] : memref<1x1x8xf32, #tpu.memory_space<vmem>>, vector<1x1x8xf32>
    %67 = vector.shape_cast %66 : vector<1x1x8xf32> to vector<1x8xf32>
    %68 = vector.shape_cast %65 : vector<1x8xf32> to vector<1x1x8xf32>
    tpu.vector_store %arg5[%c0_55, %c0_56, %c0_57], %68 {strides = array<i32>} : memref<1x1x8xf32, #tpu.memory_space<vmem>>, vector<1x1x8xf32>,
    return
  }
  func.func @transform_0(%arg0: i32) -> (i32, i32, i32) {
    %c0_i32 = arith.constant 0 : i32
    %c0_i32_0 = arith.constant 0 : i32
    %c0_i32_1 = arith.constant 0 : i32
    return %arg0, %c0_i32, %c0_i32_0 : i32, i32, i32
  }
  func.func @transform_1(%arg0: i32) -> (i32, i32, i32) {
    %c0_i32 = arith.constant 0 : i32
    %c0_i32_0 = arith.constant 0 : i32
    %c0_i32_1 = arith.constant 0 : i32
    %c0_i32_2 = arith.constant 0 : i32
    return %c0_i32, %c0_i32_0, %c0_i32_1 : i32, i32, i32
  }
  func.func @transform_2(%arg0: i32) -> (i32, i32) {
    %c0_i32 = arith.constant 0 : i32
    %c0_i32_0 = arith.constant 0 : i32
    %c0_i32_1 = arith.constant 0 : i32
    return %c0_i32, %c0_i32_0 : i32, i32
  }
  func.func @transform_3(%arg0: i32) -> (i32, i32, i32) {
    %c0_i32 = arith.constant 0 : i32
    %c0_i32_0 = arith.constant 0 : i32
    %c0_i32_1 = arith.constant 0 : i32
    return %arg0, %c0_i32, %c0_i32_0 : i32, i32, i32
  }
  func.func @transform_4(%arg0: i32) -> (i32, i32, i32) {
    %c0_i32 = arith.constant 0 : i32
    %c0_i32_0 = arith.constant 0 : i32
    %c0_i32_1 = arith.constant 0 : i32
    return %arg0, %c0_i32, %c0_i32_0 : i32, i32, i32
  }
}

module attributes {stable_mosaic.version = 11 : i64} {
  func.func @conv_bn_relu_kernel(%arg0: i32, %arg1: memref<1x328x4xbf16, #tpu.memory_space<vmem>>, %arg2: memref<9x4x8xbf16, #tpu.memory_space<vmem>>, %arg3: memref<1x8xf32, #tpu.memory_space<vmem>>, %arg4: memref<1x8xf32, #tpu.memory_space<vmem>>, %arg5: memref<1x288x8xf32, #tpu.memory_space<vmem>>) attributes {dimension_semantics = [#tpu.dimension_semantics<parallel>], iteration_bounds = array<i64: 2>, scalar_prefetch = 0 : i64, scratch_operands = 0 : i64, tpu.core_type = #tpu.core_type<tc>, window_params = [{transform_indices = @transform_0, window_bounds = array<i64: 1, 328, 4>}, {pipeline_mode = #tpu.pipeline_mode<synchronous>, transform_indices = @transform_1, window_bounds = array<i64: 9, 4, 8>}, {pipeline_mode = #tpu.pipeline_mode<synchronous>, transform_indices = @transform_2, window_bounds = array<i64: 1, 8>}, {pipeline_mode = #tpu.pipeline_mode<synchronous>, transform_indices = @transform_3, window_bounds = array<i64: 1, 8>}, {transform_indices = @transform_4, window_bounds = array<i64: 1, 288, 8>}]} {
    %cst = arith.constant 0.000000e+00 : f32
    %0 = vector.broadcast %cst : f32 to vector<288x8xf32>
    %c0 = arith.constant 0 : index
    %c0_0 = arith.constant 0 : index
    %c0_1 = arith.constant 0 : index
    %1 = vector.load %arg1[%c0, %c0_0, %c0_1] : memref<1x328x4xbf16, #tpu.memory_space<vmem>>, vector<1x288x4xbf16>
    %2 = vector.shape_cast %1 : vector<1x288x4xbf16> to vector<288x4xbf16>
    %c0_2 = arith.constant 0 : index
    %c0_3 = arith.constant 0 : index
    %c0_4 = arith.constant 0 : index
    %3 = vector.load %arg2[%c0_2, %c0_3, %c0_4] : memref<9x4x8xbf16, #tpu.memory_space<vmem>>, vector<1x4x8xbf16>
    %4 = vector.shape_cast %3 : vector<1x4x8xbf16> to vector<4x8xbf16>
    %cst_5 = arith.constant dense<0.000000e+00> : vector<288x8xf32>
    %5 = tpu.matmul %2, %4, %cst_5 {dimension_numbers = #tpu.dot_dimension_numbers<[1], [0], [0], [1], [0, 0, 1, 1], [], []>} : vector<288x4xbf16>, vector<4x8xbf16>, vector<288x8xf32> -> vector<288x8xf32>
    %6 = arith.addf %0, %5 : vector<288x8xf32>
    %c0_6 = arith.constant 0 : index
    %c1 = arith.constant 1 : index
    %c0_7 = arith.constant 0 : index
    %7 = vector.load %arg1[%c0_6, %c1, %c0_7] : memref<1x328x4xbf16, #tpu.memory_space<vmem>>, vector<1x288x4xbf16>
    %8 = vector.shape_cast %7 : vector<1x288x4xbf16> to vector<288x4xbf16>
    %c1_8 = arith.constant 1 : index
    %c0_9 = arith.constant 0 : index
    %c0_10 = arith.constant 0 : index
    %9 = vector.load %arg2[%c1_8, %c0_9, %c0_10] : memref<9x4x8xbf16, #tpu.memory_space<vmem>>, vector<1x4x8xbf16>
    %10 = vector.shape_cast %9 : vector<1x4x8xbf16> to vector<4x8xbf16>
    %cst_11 = arith.constant dense<0.000000e+00> : vector<288x8xf32>
    %11 = tpu.matmul %8, %10, %cst_11 {dimension_numbers = #tpu.dot_dimension_numbers<[1], [0], [0], [1], [0, 0, 1, 1], [], []>} : vector<288x4xbf16>, vector<4x8xbf16>, vector<288x8xf32> -> vector<288x8xf32>
    %12 = arith.addf %6, %11 : vector<288x8xf32>
    %c0_12 = arith.constant 0 : index
    %c2 = arith.constant 2 : index
    %c0_13 = arith.constant 0 : index
    %13 = vector.load %arg1[%c0_12, %c2, %c0_13] : memref<1x328x4xbf16, #tpu.memory_space<vmem>>, vector<1x288x4xbf16>
    %14 = vector.shape_cast %13 : vector<1x288x4xbf16> to vector<288x4xbf16>
    %c2_14 = arith.constant 2 : index
    %c0_15 = arith.constant 0 : index
    %c0_16 = arith.constant 0 : index
    %15 = vector.load %arg2[%c2_14, %c0_15, %c0_16] : memref<9x4x8xbf16, #tpu.memory_space<vmem>>, vector<1x4x8xbf16>
    %16 = vector.shape_cast %15 : vector<1x4x8xbf16> to vector<4x8xbf16>
    %cst_17 = arith.constant dense<0.000000e+00> : vector<288x8xf32>
    %17 = tpu.matmul %14, %16, %cst_17 {dimension_numbers = #tpu.dot_dimension_numbers<[1], [0], [0], [1], [0, 0, 1, 1], [], []>} : vector<288x4xbf16>, vector<4x8xbf16>, vector<288x8xf32> -> vector<288x8xf32>
    %18 = arith.addf %12, %17 : vector<288x8xf32>
    %c0_18 = arith.constant 0 : index
    %c18 = arith.constant 18 : index
    %c0_19 = arith.constant 0 : index
    %19 = vector.load %arg1[%c0_18, %c18, %c0_19] : memref<1x328x4xbf16, #tpu.memory_space<vmem>>, vector<1x288x4xbf16>
    %20 = vector.shape_cast %19 : vector<1x288x4xbf16> to vector<288x4xbf16>
    %c3 = arith.constant 3 : index
    %c0_20 = arith.constant 0 : index
    %c0_21 = arith.constant 0 : index
    %21 = vector.load %arg2[%c3, %c0_20, %c0_21] : memref<9x4x8xbf16, #tpu.memory_space<vmem>>, vector<1x4x8xbf16>
    %22 = vector.shape_cast %21 : vector<1x4x8xbf16> to vector<4x8xbf16>
    %cst_22 = arith.constant dense<0.000000e+00> : vector<288x8xf32>
    %23 = tpu.matmul %20, %22, %cst_22 {dimension_numbers = #tpu.dot_dimension_numbers<[1], [0], [0], [1], [0, 0, 1, 1], [], []>} : vector<288x4xbf16>, vector<4x8xbf16>, vector<288x8xf32> -> vector<288x8xf32>
    %24 = arith.addf %18, %23 : vector<288x8xf32>
    %c0_23 = arith.constant 0 : index
    %c19 = arith.constant 19 : index
    %c0_24 = arith.constant 0 : index
    %25 = vector.load %arg1[%c0_23, %c19, %c0_24] : memref<1x328x4xbf16, #tpu.memory_space<vmem>>, vector<1x288x4xbf16>
    %26 = vector.shape_cast %25 : vector<1x288x4xbf16> to vector<288x4xbf16>
    %c4 = arith.constant 4 : index
    %c0_25 = arith.constant 0 : index
    %c0_26 = arith.constant 0 : index
    %27 = vector.load %arg2[%c4, %c0_25, %c0_26] : memref<9x4x8xbf16, #tpu.memory_space<vmem>>, vector<1x4x8xbf16>
    %28 = vector.shape_cast %27 : vector<1x4x8xbf16> to vector<4x8xbf16>
    %cst_27 = arith.constant dense<0.000000e+00> : vector<288x8xf32>
    %29 = tpu.matmul %26, %28, %cst_27 {dimension_numbers = #tpu.dot_dimension_numbers<[1], [0], [0], [1], [0, 0, 1, 1], [], []>} : vector<288x4xbf16>, vector<4x8xbf16>, vector<288x8xf32> -> vector<288x8xf32>
    %30 = arith.addf %24, %29 : vector<288x8xf32>
    %c0_28 = arith.constant 0 : index
    %c20 = arith.constant 20 : index
    %c0_29 = arith.constant 0 : index
    %31 = vector.load %arg1[%c0_28, %c20, %c0_29] : memref<1x328x4xbf16, #tpu.memory_space<vmem>>, vector<1x288x4xbf16>
    %32 = vector.shape_cast %31 : vector<1x288x4xbf16> to vector<288x4xbf16>
    %c5 = arith.constant 5 : index
    %c0_30 = arith.constant 0 : index
    %c0_31 = arith.constant 0 : index
    %33 = vector.load %arg2[%c5, %c0_30, %c0_31] : memref<9x4x8xbf16, #tpu.memory_space<vmem>>, vector<1x4x8xbf16>
    %34 = vector.shape_cast %33 : vector<1x4x8xbf16> to vector<4x8xbf16>
    %cst_32 = arith.constant dense<0.000000e+00> : vector<288x8xf32>
    %35 = tpu.matmul %32, %34, %cst_32 {dimension_numbers = #tpu.dot_dimension_numbers<[1], [0], [0], [1], [0, 0, 1, 1], [], []>} : vector<288x4xbf16>, vector<4x8xbf16>, vector<288x8xf32> -> vector<288x8xf32>
    %36 = arith.addf %30, %35 : vector<288x8xf32>
    %c0_33 = arith.constant 0 : index
    %c36 = arith.constant 36 : index
    %c0_34 = arith.constant 0 : index
    %37 = vector.load %arg1[%c0_33, %c36, %c0_34] : memref<1x328x4xbf16, #tpu.memory_space<vmem>>, vector<1x288x4xbf16>
    %38 = vector.shape_cast %37 : vector<1x288x4xbf16> to vector<288x4xbf16>
    %c6 = arith.constant 6 : index
    %c0_35 = arith.constant 0 : index
    %c0_36 = arith.constant 0 : index
    %39 = vector.load %arg2[%c6, %c0_35, %c0_36] : memref<9x4x8xbf16, #tpu.memory_space<vmem>>, vector<1x4x8xbf16>
    %40 = vector.shape_cast %39 : vector<1x4x8xbf16> to vector<4x8xbf16>
    %cst_37 = arith.constant dense<0.000000e+00> : vector<288x8xf32>
    %41 = tpu.matmul %38, %40, %cst_37 {dimension_numbers = #tpu.dot_dimension_numbers<[1], [0], [0], [1], [0, 0, 1, 1], [], []>} : vector<288x4xbf16>, vector<4x8xbf16>, vector<288x8xf32> -> vector<288x8xf32>
    %42 = arith.addf %36, %41 : vector<288x8xf32>
    %c0_38 = arith.constant 0 : index
    %c37 = arith.constant 37 : index
    %c0_39 = arith.constant 0 : index
    %43 = vector.load %arg1[%c0_38, %c37, %c0_39] : memref<1x328x4xbf16, #tpu.memory_space<vmem>>, vector<1x288x4xbf16>
    %44 = vector.shape_cast %43 : vector<1x288x4xbf16> to vector<288x4xbf16>
    %c7 = arith.constant 7 : index
    %c0_40 = arith.constant 0 : index
    %c0_41 = arith.constant 0 : index
    %45 = vector.load %arg2[%c7, %c0_40, %c0_41] : memref<9x4x8xbf16, #tpu.memory_space<vmem>>, vector<1x4x8xbf16>
    %46 = vector.shape_cast %45 : vector<1x4x8xbf16> to vector<4x8xbf16>
    %cst_42 = arith.constant dense<0.000000e+00> : vector<288x8xf32>
    %47 = tpu.matmul %44, %46, %cst_42 {dimension_numbers = #tpu.dot_dimension_numbers<[1], [0], [0], [1], [0, 0, 1, 1], [], []>} : vector<288x4xbf16>, vector<4x8xbf16>, vector<288x8xf32> -> vector<288x8xf32>
    %48 = arith.addf %42, %47 : vector<288x8xf32>
    %c0_43 = arith.constant 0 : index
    %c38 = arith.constant 38 : index
    %c0_44 = arith.constant 0 : index
    %49 = vector.load %arg1[%c0_43, %c38, %c0_44] : memref<1x328x4xbf16, #tpu.memory_space<vmem>>, vector<1x288x4xbf16>
    %50 = vector.shape_cast %49 : vector<1x288x4xbf16> to vector<288x4xbf16>
    %c8 = arith.constant 8 : index
    %c0_45 = arith.constant 0 : index
    %c0_46 = arith.constant 0 : index
    %51 = vector.load %arg2[%c8, %c0_45, %c0_46] : memref<9x4x8xbf16, #tpu.memory_space<vmem>>, vector<1x4x8xbf16>
    %52 = vector.shape_cast %51 : vector<1x4x8xbf16> to vector<4x8xbf16>
    %cst_47 = arith.constant dense<0.000000e+00> : vector<288x8xf32>
    %53 = tpu.matmul %50, %52, %cst_47 {dimension_numbers = #tpu.dot_dimension_numbers<[1], [0], [0], [1], [0, 0, 1, 1], [], []>} : vector<288x4xbf16>, vector<4x8xbf16>, vector<288x8xf32> -> vector<288x8xf32>
    %54 = arith.addf %48, %53 : vector<288x8xf32>
    %c0_48 = arith.constant 0 : index
    %c0_49 = arith.constant 0 : index
    %55 = vector.load %arg3[%c0_48, %c0_49] : memref<1x8xf32, #tpu.memory_space<vmem>>, vector<1x8xf32>
    %56 = vector.broadcast %55 : vector<1x8xf32> to vector<288x8xf32>
    %57 = arith.mulf %54, %56 : vector<288x8xf32>
    %c0_50 = arith.constant 0 : index
    %c0_51 = arith.constant 0 : index
    %58 = vector.load %arg4[%c0_50, %c0_51] : memref<1x8xf32, #tpu.memory_space<vmem>>, vector<1x8xf32>
    %59 = vector.broadcast %58 : vector<1x8xf32> to vector<288x8xf32>
    %60 = arith.addf %57, %59 : vector<288x8xf32>
    %cst_52 = arith.constant 0.000000e+00 : f32
    %61 = vector.broadcast %cst_52 : f32 to vector<288x8xf32>
    %62 = arith.maximumf %60, %61 : vector<288x8xf32>
    %c0_53 = arith.constant 0 : index
    %c0_54 = arith.constant 0 : index
    %c0_55 = arith.constant 0 : index
    %63 = vector.load %arg5[%c0_53, %c0_54, %c0_55] : memref<1x288x8xf32, #tpu.memory_space<vmem>>, vector<1x288x8xf32>
    %64 = vector.shape_cast %63 : vector<1x288x8xf32> to vector<288x8xf32>
    %65 = vector.shape_cast %62 : vector<288x8xf32> to vector<1x288x8xf32>
    tpu.vector_store %arg5[%c0_53, %c0_54, %c0_55], %65 {strides = array<i32>} : memref<1x288x8xf32, #tpu.memory_space<vmem>>, vector<1x288x8xf32>,
    return
  }
  func.func @transform_0(%arg0: i32) -> (i32, i32, i32) {
    %c0_i32 = arith.constant 0 : i32
    %c0_i32_0 = arith.constant 0 : i32
    %c0_i32_1 = arith.constant 0 : i32
    return %arg0, %c0_i32, %c0_i32_0 : i32, i32, i32
  }
  func.func @transform_1(%arg0: i32) -> (i32, i32, i32) {
    %c0_i32 = arith.constant 0 : i32
    %c0_i32_0 = arith.constant 0 : i32
    %c0_i32_1 = arith.constant 0 : i32
    %c0_i32_2 = arith.constant 0 : i32
    return %c0_i32, %c0_i32_0, %c0_i32_1 : i32, i32, i32
  }
  func.func @transform_2(%arg0: i32) -> (i32, i32) {
    %c0_i32 = arith.constant 0 : i32
    %c0_i32_0 = arith.constant 0 : i32
    %c0_i32_1 = arith.constant 0 : i32
    return %c0_i32, %c0_i32_0 : i32, i32
  }
  func.func @transform_3(%arg0: i32) -> (i32, i32) {
    %c0_i32 = arith.constant 0 : i32
    %c0_i32_0 = arith.constant 0 : i32
    %c0_i32_1 = arith.constant 0 : i32
    return %c0_i32, %c0_i32_0 : i32, i32
  }
  func.func @transform_4(%arg0: i32) -> (i32, i32, i32) {
    %c0_i32 = arith.constant 0 : i32
    %c0_i32_0 = arith.constant 0 : i32
    %c0_i32_1 = arith.constant 0 : i32
    return %arg0, %c0_i32, %c0_i32_0 : i32, i32, i32
  }
}

</mosaic_0001>

<bundles_post_ra>
// kernel: cnn_block_forward.2
= control target key start
LH: loop header
LB: loop body
LE: loop exit
PB: predicated region body
PF: predicated region fallthrough
CT: control target
= control target key end

     0   :  { %s5043_s15 = smov 0   ;;  %s6608_s0 = inlined_call_operand.vmem [shape: bf16[2,328,4], index: 0, kind: input, shape index: {}]   ;;  %s6609_s1 = inlined_call_operand.vmem [shape: bf16[9,4,8], index: 1, kind: input, shape index: {}]   ;;  %s6610_s2 = inlined_call_operand.vmem [shape: f32[288,1], index: 2, kind: input, shape index: {}]   ;;  %s6611_s3 = inlined_call_operand.vmem [shape: f32[2,1,8], index: 3, kind: output, shape index: {0}]   ;;  %s6612_s4 = inlined_call_operand.vmem [shape: f32[2,1,8], index: 4, kind: output, shape index: {1}]  }
   0x1 LB: > { %s4170_s16 = sadd.s32 4294967295, %s5015_s15   ;;  %p4174_p0 = scmp.ge.s32.totalorder %s5015_s15, 1  ;;  %s5015_s15 = sphi %s5043_s15, %s15_s15  }
   0x2   : > { %p165_p1 = scmp.lt.s32.totalorder %s5015_s15, 3 }
   0x4   : > { %p166_p2 = pnand %p4174_p0, %p165_p1 }
   0x6   : > { %169 = sbr.rel (%p166_p2) target bundleno = 573 (0x23d), region = 32 }
   0xb   : > { %v4176_v0 = vld [vmem:[%s6609_s1 + $0x2] sm:$0x3]  ;;  %vm541_vm0 = vcmask 1041408   ;;  %p192_p3 = scmp.lt.s32.totalorder %s4170_s16, 1  ;;  %v4232_v2 = vld [vmem:[%s6609_s1 + $0x4] sm:$0x3] }
   0xc   : > { %4925 = vmatprep.subr.msk.bf16.mxu0 %vm541_vm0, %v4176_v0  ;;  %4926 = vmatprep.subr.msk.bf16.mxu1 %vm541_vm0, %v4176_v0  ;;  %v543_v1 = vsel %vm541_vm0, %v4176_v0, 0  ;;  %v240_v3 = vld [vmem:[%s6609_s1] sm:$0x3]  ;;  %vm337_vm1 = vsmask.f32 7424  ;;  %vm486_vm2 = vcmask 31744  }
   0xd   : > { %4582 = vmatpush3.bf16.msra.mxu0 %v543_v1  ;;  %4924 = vmatpush3.bf16.msra.mxu1 %v543_v1  ;;  %s6664_s16 = smov (!%p192_p3, %s4170_s16), 1  ;;  %v1037_v8 = vsel %vm541_vm0, %v4232_v2, 0  ;;  %v759_v16 = vsel %vm541_vm0, %v240_v3, 0  ;;  %v5116_v33 = vld [vmem:[%s6609_s1 + $0x8] sm:$0x3]  ;;  %vm944_vm3 = vcmask 1046528  }
   0xe   : > { %4928 = vmatprep.subr.msk.bf16.mxu0 %vm541_vm0, %v4232_v2  ;;  %4927 = vmatprep.subr.msk.bf16.mxu1 %vm541_vm0, %v240_v3  ;;  %s4935_s23 = smul.u32 164, %s6664_s16  ;;  %v5136_v45 = vld [vmem:[%s6609_s1 + $0x6] sm:$0x3]  ;;  %vm2144_vm4 = vcmask 1045504   ;;  %vm1697_vm5 = vsmask.f32 6400  ;;  %s199_s19 = scalar_lea.vmem %s6611_s3, %s6664_s16 }
   0xf   : > { %vm3344_vm6 = vcmask 1044480   ;;  %vm2897_vm7 = vsmask.f32 5376  ;;  %vm3904_vm8 = vcmask 64512   ;;  %vm3982_vm9 = vcmask 57344   ;;  %s202_s22 = scalar_lea.vmem %s6612_s4, %s6664_s16 }
  0x10   : > { %s5071_s26 = scalar_lea.vmem %s6608_s0, %s4935_s23 }
  0x11   : > { %v204_v4 = vld [vmem:[%s5071_s26] sm:$0xf]  ;;  %v5075_v5 = vld [vmem:[%s5071_s26 + $0x4] sm:$0xf]  ;;  %v5081_v7 = vld [vmem:[%s5071_s26 + $0x8] sm:$0xff]  }
  0x12   : > { %v5078_v6 = vcombine.low %v204_v4, %v5075_v5  ;;  %v346_v11 = vshll.u32 %v5081_v7, 16  ;;  %v350_v12 = vshrl.u32 %v5081_v7, 16  ;;  %v5089_v13 = vld [vmem:[%s5071_s26 + $0x50] sm:$0xff]   ;;  %v5092_v14 = vld [vmem:[%s5071_s26 + $0x58] sm:$0xff]   ;;  %v5104_v24 = vld [vmem:[%s5071_s26 + $0x60] sm:$0xff]  }
  0x13   : > { %v5095_v15 = vld [vmem:[%s5071_s26 + $0x10] sm:$0xff]   ;;  %v418_v19 = vshll.u32 %v5089_v13, 16  ;;  %v422_v20 = vshrl.u32 %v5089_v13, 16  ;;  %v426_v21 = vshll.u32 %v5092_v14, 16  ;;  %v430_v22 = vshrl.u32 %v5092_v14, 16  ;;  %v5109_v28 = vld [vmem:[%s5071_s26 + $0x18] sm:$0xff]  }
  0x14   : > { %v339_v9 = vshrl.u32 %v5078_v6, 16  ;;  %v341_v10 = vshll.u32 %v5078_v6, 16  ;;  %v348_v18 = vrot.slane %v346_v11, 1  ;;  %v354_v23 = vshll.u32 %v5095_v15, 16  ;;  %v5122_v37 = vld [vmem:[%s5071_s26 + $0x68] sm:$0xff]   ;;  %v5126_v39 = vld [vmem:[%s5071_s26 + $0x20] sm:$0xff]  }
  0x15   : > { %v5106_v27 = vrot.slane %v418_v19, 1  ;;  %v428_v29 = vrot.slane %v426_v21, 1  ;;  %v434_v31 = vshll.u32 %v5104_v24, 16  ;;  %v358_v32 = vshrl.u32 %v5095_v15, 16  ;;  %v5131_v44 = vld [vmem:[%s5071_s26 + $0x70] sm:$0xff]   ;;  %v5143_v50 = vld [vmem:[%s5071_s26 + $0x28] sm:$0xff]  }
  0x16   : > { %v343_v17 = vrot.slane %v341_v10, 1  ;;  %v352_v26 = vor.u32 %v350_v12, %v348_v18  ;;  %v356_v30 = vrot.slane %v354_v23, 1  ;;  %v362_v36 = vshll.u32 %v5109_v28, 16  ;;  %v5158_v62 = vld [vmem:[%s5071_s26 + $0x78] sm:$0xff]   ;;  %v5168_v10 = vld [vmem:[%s5071_s26 + $0x30] sm:$0xff]   ;;  %v5171_v11 = vld [vmem:[%s5071_s26 + $0x80] sm:$0xff]  }
  0x17   : > { %v424_v35 = vor.u32 %v422_v20, %v5106_v27  ;;  %v438_v38 = vshrl.u32 %v5104_v24, 16  ;;  %v432_v40 = vor.u32 %v430_v22, %v428_v29  ;;  %v436_v42 = vrot.slane %v434_v31, 1  ;;  %v5180_v23 = vld [vmem:[%s5071_s26 + $0x38] sm:$0xff]  }
  0x18   : > { %v344_v25 = vor.u32 %v343_v17, %v339_v9  ;;  %v357_v41 = vsel %vm337_vm1, %v352_v26, %v356_v30  ;;  %v360_v43 = vor.u32 %v358_v32, %v356_v30  ;;  %v364_v47 = vrot.slane %v362_v36, 1  ;;  %v5185_v26 = vld [vmem:[%s5071_s26 + $0x88] sm:$0xff]  }
  0x19   : > { %v429_v46 = vsel %vm337_vm1, %v424_v35, %v428_v29  ;;  %v442_v48 = vshll.u32 %v5122_v37, 16  ;;  %v366_v49 = vshrl.u32 %v5109_v28, 16  ;;  %v437_v51 = vsel %vm337_vm1, %v432_v40, %v436_v42  ;;  %v5197_v40 = vld [vmem:[%s5071_s26 + $0x48] sm:$0xff]  }
  0x1a   : > { %v349_v34 = vsel %vm337_vm1, %v344_v25, %v348_v18  ;;  %4603 = vmatprep.mubr.msk.bf16.mxu1 %vm486_vm2, %v429_v46  ;;  %v440_v52 = vor.u32 %v438_v38, %v436_v42  ;;  %v370_v53 = vshll.u32 %v5126_v39, 16  ;;  %v446_v54 = vshrl.u32 %v5122_v37, 16  ;;  %v5194_v38 = vld [vmem:[%s5071_s26 + $0x40] sm:$0xff]  }
  0x1b   : > { %4583 = vmatprep.mubr.msk.bf16.mxu0 %vm486_vm2, %v349_v34  ;;  %4604 = vmatmul.mubr.msk.bf16.vlgmr.msra.gmra.mxu1 %vm486_vm2, %v437_v51  ;;  %v365_v55 = vsel %vm337_vm1, %v360_v43, %v364_v47  ;;  %v444_v56 = vrot.slane %v442_v48, 1  ;;  %v368_v57 = vor.u32 %v366_v49, %v364_v47  ;;  %v450_v58 = vshll.u32 %v5131_v44, 16  ;;  %v4964_v43 = vld [vmem:[%s5071_s26 + $0x90] ss:$0 sps:$4 sm:$0x11]  }
  0x1c   : > { %4584 = vmatmul.mubr.msk.bf16.vlgmr.msra.gmra.mxu0 %vm486_vm2, %v357_v41  ;;  %4620 = vmatpush3.bf16.msra.mxu1 %v759_v16  ;;  %v372_v59 = vrot.slane %v370_v53, 1  ;;  %v374_v60 = vshrl.u32 %v5126_v39, 16  ;;  %v378_v61 = vshll.u32 %v5143_v50, 16  ;;  %v454_v2 = vshrl.u32 %v5131_v44, 16 }
  0x1d   : > { %4658 = vmatpush3.bf16.msra.mxu0 %v1037_v8  ;;  %4587 = vmatprep.mubr.msk.bf16.mxu0 %vm486_vm2, %v365_v55  ;;  %v445_v63 = vsel %vm337_vm1, %v440_v52, %v444_v56  ;;  %v448_v0 = vor.u32 %v446_v54, %v444_v56  ;;  %v452_v1 = vrot.slane %v450_v58, 1  ;;  %v458_v9 = vshll.u32 %v5158_v62, 16 }
  0x1e   : > { %4930 = vmatprep.subr.msk.bf16.mxu0 %vm541_vm0, %v5116_v33  ;;  %4929 = vmatprep.subr.msk.bf16.mxu1 %vm541_vm0, %v5136_v45  ;;  %v373_v3 = vsel %vm337_vm1, %v368_v57, %v372_v59  ;;  %v376_v4 = vor.u32 %v374_v60, %v372_v59  ;;  %v380_v8 = vrot.slane %v378_v61, 1  ;;  %v382_v17 = vshrl.u32 %v5143_v50, 16 }
  0x1f   : > { %4607 = vmatprep.mubr.msk.bf16.mxu1 %vm486_vm2, %v445_v63  ;;  %v453_v12 = vsel %vm337_vm1, %v448_v0, %v452_v1  ;;  %v456_v16 = vor.u32 %v454_v2, %v452_v1  ;;  %v462_v18 = vshrl.u32 %v5158_v62, 16  ;;  %v460_v20 = vrot.slane %v458_v9, 1  ;;  %v938_v63 = vld [vmem:[%s5071_s26] sm:$0xe] }
  0x20   : > { %v381_v19 = vsel %vm337_vm1, %v376_v4, %v380_v8  ;;  %v386_v21 = vshll.u32 %v5168_v10, 16  ;;  %v466_v22 = vshll.u32 %v5171_v11, 16  ;;  %v390_v25 = vshrl.u32 %v5168_v10, 16 }
  0x21   : > { %v461_v29 = vsel %vm337_vm1, %v456_v16, %v460_v20  ;;  %v384_v30 = vor.u32 %v382_v17, %v380_v8  ;;  %v394_v34 = vshll.u32 %v5180_v23, 16  ;;  %v470_v35 = vshrl.u32 %v5171_v11, 16 }
  0x22   : > { %v388_v31 = vrot.slane %v386_v21, 1  ;;  %v468_v32 = vrot.slane %v466_v22, 1  ;;  %v474_v36 = vshll.u32 %v5185_v26, 16  ;;  %v464_v41 = vor.u32 %v462_v18, %v460_v20 }
  0x23   : > { %4608 = vmatmul.mubr.msk.bf16.gmra.mxu1 %vm486_vm2, %v453_v12  ;;  %v396_v46 = vrot.slane %v394_v34, 1  ;;  %v402_v49 = vshll.u32 %v5194_v38, 16  ;;  %v398_v52 = vshrl.u32 %v5180_v23, 16  ;;  %v406_v54 = vshrl.u32 %v5194_v38, 16 }
  0x24   : > { %4588 = vmatmul.mubr.msk.bf16.gmra.mxu0 %vm486_vm2, %v373_v3  ;;  %4611 = vmatprep.mubr.msk.bf16.mxu1 %vm486_vm2, %v461_v29  ;;  %v392_v42 = vor.u32 %v390_v25, %v388_v31  ;;  %v472_v47 = vor.u32 %v470_v35, %v468_v32  ;;  %v476_v48 = vrot.slane %v474_v36, 1  ;;  %v389_v51 = vsel %vm337_vm1, %v384_v30, %v388_v31 }
  0x25   : > { %4591 = vmatprep.mubr.msk.bf16.mxu0 %vm486_vm2, %v381_v19  ;;  %v410_v55 = vshll.u32 %v5197_v40, 16  ;;  %v469_v56 = vsel %vm337_vm1, %v464_v41, %v468_v32  ;;  %v478_v57 = vshrl.u32 %v5185_v26, 16  ;;  %v482_v58 = vshll.u32 %v4964_v43, 16 }
  0x26   : > { %v397_v53 = vsel %vm337_vm1, %v392_v42, %v396_v46  ;;  %v477_v59 = vsel %vm337_vm1, %v472_v47, %v476_v48  ;;  %v404_v60 = vrot.slane %v402_v49, 1  ;;  %v400_v61 = vor.u32 %v398_v52, %v396_v46  ;;  %v5296_v46 = vld [vmem:[%s5071_s26 + $0x10] sm:$0xff]   ;;  %v5301_v49 = vld [vmem:[%s5071_s26 + $0x18] sm:$0xff]  }
  0x27   : > { %v412_v1 = vrot.slane %v410_v55, 1  ;;  %v480_v2 = vor.u32 %v478_v57, %v476_v48  ;;  %v484_v3 = vrot.slane %v482_v58, 1  ;;  %v414_v8 = vshrl.u32 %v5197_v40, 16  ;;  %v5314_v55 = vld [vmem:[%s5071_s26 + $0x30] sm:$0xff]  }
  0x28   : > { %v408_v0 = vor.u32 %v406_v54, %v404_v60  ;;  %v405_v4 = vsel %vm337_vm1, %v400_v61, %v404_v60  ;;  %v4233_v12 = vcombine.low %v938_v63, %v5075_v5  ;;  %v978_v17 = vrot.slane %v5185_v26, 1  ;;  %v5329_v61 = vld [vmem:[%s5071_s26 + $0x38] sm:$0xff]  }
  0x29   : > { %v485_v16 = vsel %vm337_vm1, %v480_v2, %v484_v3  ;;  %v416_v18 = vor.u32 %v414_v8, %v412_v1  ;;  %v980_v19 = vrot.slane %v4964_v43, 1  ;;  %v946_v21 = vrot.slane %v5081_v7, 1  ;;  %v2138_v43 = vld [vmem:[%s5071_s26 + $0x8] sm:$0xc]  ;;  %v5339_v2 = vld [vmem:[%s5071_s26 + $0x40] sm:$0xff]  }
  0x2a   : > { %v413_v9 = vsel %vm337_vm1, %v408_v0, %v412_v1  ;;  %v945_v20 = vrot.slane %v4233_v12, 1  ;;  %v1476_v29 = vsel %vm541_vm0, %v5136_v45, 0  ;;  %v948_v30 = vrot.slane %v5095_v15, 1  ;;  %v5347_v8 = vld [vmem:[%s5071_s26 + $0x48] sm:$0xff]  }
  0x2b   : > { %4612 = vmatmul.mubr.msk.bf16.gmra.mxu1 %vm486_vm2, %v469_v56  ;;  %v5230_v5 = vsel %vm944_vm3, %v978_v17, %v980_v19  ;;  %v421_v22 = vsel %vm337_vm1, %v416_v18, %v5106_v27  ;;  %v950_v27 = vrot.slane %v5109_v28, 1  ;;  %v1923_v31 = vsel %vm541_vm0, %v5116_v33, 0 }
  0x2c   : > { %4592 = vmatmul.mubr.msk.bf16.gmra.mxu0 %vm486_vm2, %v389_v51  ;;  %4615 = vmatprep.mubr.msk.bf16.mxu1 %vm486_vm2, %v477_v59  ;;  %v947_v25 = vsel %vm944_vm3, %v945_v20, %v946_v21  ;;  %v949_v45 = vsel %vm944_vm3, %v946_v21, %v948_v30  ;;  %v954_v34 = vrot.slane %v5143_v50, 1  ;;  %v958_v36 = vrot.slane %v5180_v23, 1  ;;  %v5305_v51 = vld [vmem:[%s5071_s26 + $0x20] sm:$0xff]  }
  0x2d   : > { %4595 = vmatprep.mubr.msk.bf16.mxu0 %vm486_vm2, %v397_v53  ;;  %v951_v32 = vsel %vm944_vm3, %v948_v30, %v950_v27  ;;  %v960_v42 = vrot.slane %v5194_v38, 1  ;;  %v2146_v53 = vrot.slane %v5296_v46, 2  ;;  %v2148_v54 = vrot.slane %v5301_v49, 2  ;;  %v5377_v30 = vld [vmem:[%s5071_s26 + $0x58] sm:$0xff]  }
  0x2e   : > { %v2150_v57 = vrot.slane %v5305_v51, 2  ;;  %v964_v58 = vrot.slane %v5089_v13, 1  ;;  %v966_v59 = vrot.slane %v5092_v14, 1  ;;  %v2154_v1 = vrot.slane %v5314_v55, 2 }
  0x2f   : > { %v961_v48 = vsel %vm944_vm3, %v958_v36, %v960_v42  ;;  %v5324_v60 = vsel %vm2144_vm4, %v2146_v53, %v2148_v54  ;;  %v2160_v18 = vrot.slane %v5347_v8, 2  ;;  %v968_v20 = vrot.slane %v5104_v24, 1 }
  0x30   : > { %v5332_v63 = vsel %vm2144_vm4, %v2148_v54, %v2150_v57 }
  0x33   : > { %4616 = vmatmul.mubr.msk.bf16.gmra.mxu1 %vm486_vm2, %v485_v16  ;;  %v2158_v16 = vrot.slane %v5339_v2, 2 }
  0x34   : > { %4596 = vmatmul.mubr.msk.bf16.gmra.mxu0 %vm486_vm2, %v405_v4  ;;  %4621 = vmatprep.mubr.msk.bf16.mxu1 %vm486_vm2, %v5078_v6  ;;  %v5243_v6 = vld [vmem:[%s6609_s1 + $0xa] sm:$0x3]  ;;  %v2156_v4 = vrot.slane %v5329_v61, 2 }
  0x35   : > { %4599 = vmatprep.mubr.msk.bf16.mxu0 %vm486_vm2, %v413_v9  ;;  %v5365_v21 = vsel %vm2144_vm4, %v2158_v16, %v2160_v18 }
  0x36   : > { %v5354_v12 = vsel %vm2144_vm4, %v2154_v1, %v2156_v4  ;;  %v5360_v19 = vsel %vm2144_vm4, %v2156_v4, %v2158_v16 }
  0x3b   : > { %4622 = vmatmul.mubr.msk.bf16.vlgmr.msra.gmra.mxu1 %vm486_vm2, %v5081_v7  ;;  %v5259_v7 = vld [vmem:[%s6609_s1 + $0xc] sm:$0x3] }
  0x3c   : > { %4600 = vmatmul.mubr.msk.bf16.gmra.mxu0 %vm486_vm2, %v421_v22  ;;  %4696 = vmatpush3.bf16.msra.mxu1 %v1476_v29  ;;  %v970_v22 = vrot.slane %v5122_v37, 1  ;;  %v969_v29 = vsel %vm944_vm3, %v966_v59, %v968_v20 }
  0x3d   : > { %4659 = vmatprep.mubr.msk.bf16.mxu0 %vm486_vm2, %v947_v25  ;;  %4625 = vmatprep.mubr.msk.bf16.mxu1 %vm486_vm2, %v5095_v15  ;;  %v952_v15 = vrot.slane %v5126_v39, 1  ;;  %v5373_v25 = vld [vmem:[%s5071_s26 + $0x50] sm:$0xff]  }
  0x3e   : > { %4931 = vmatprep.subr.msk.bf16.mxu1 %vm541_vm0, %v5243_v6 }
  0x3f   : > { %v953_v33 = vsel %vm944_vm3, %v950_v27, %v952_v15  ;;  %v955_v35 = vsel %vm944_vm3, %v952_v15, %v954_v34  ;;  %v971_v27 = vsel %vm944_vm3, %v968_v20, %v970_v22  ;;  %v974_v15 = vrot.slane %v5158_v62, 1 }
  0x43   : > { %4626 = vmatmul.mubr.msk.bf16.gmra.mxu1 %vm486_vm2, %v5109_v28  ;;  %v956_v28 = vrot.slane %v5168_v10, 1 }
  0x44   : > { %4660 = vmatmul.mubr.msk.bf16.vlgmr.msra.gmra.mxu0 %vm486_vm2, %v949_v45  ;;  %4629 = vmatprep.mubr.msk.bf16.mxu1 %vm486_vm2, %v5126_v39  ;;  %v2162_v45 = vrot.slane %v5373_v25, 2 }
  0x45   : > { %4734 = vmatpush3.bf16.msra.mxu0 %v1923_v31  ;;  %4663 = vmatprep.mubr.msk.bf16.mxu0 %vm486_vm2, %v951_v32  ;;  %v957_v39 = vsel %vm944_vm3, %v954_v34, %v956_v28  ;;  %v959_v41 = vsel %vm944_vm3, %v956_v28, %v958_v36  ;;  %v1252_v34 = vld [vmem:[%s5071_s26 + $0x8] sm:$0xe] }
  0x46   : > { %4932 = vmatprep.subr.msk.bf16.mxu0 %vm541_vm0, %v5259_v7  ;;  %v5384_v31 = vsel %vm2144_vm4, %v2160_v18, %v2162_v45  ;;  %v5402_v28 = vld [vmem:[%s5071_s26 + $0x68] sm:$0xff]  }
  0x4b   : > { %4630 = vmatmul.mubr.msk.bf16.gmra.mxu1 %vm486_vm2, %v5143_v50  ;;  %v962_v50 = vrot.slane %v5197_v40, 1 }
  0x4c   : > { %4664 = vmatmul.mubr.msk.bf16.gmra.mxu0 %vm486_vm2, %v953_v33  ;;  %4633 = vmatprep.mubr.msk.bf16.mxu1 %vm486_vm2, %v5168_v10  ;;  %v5293_v10 = vld [vmem:[%s5071_s26 + $0xc] sm:$0xf]  ;;  %v5398_v33 = vld [vmem:[%s5071_s26 + $0x60] sm:$0xff]  }
  0x4d   : > { %4667 = vmatprep.mubr.msk.bf16.mxu0 %vm486_vm2, %v955_v35  ;;  %v4311_v47 = vcombine.low %v2138_v43, %v5293_v10 }
  0x4f   : > { %v2145_v52 = vrot.slane %v4311_v47, 2  ;;  %v1707_v47 = vshrl.u32 %v5296_v46, 16 }
  0x51   : > { %v5317_v56 = vsel %vm2144_vm4, %v2145_v52, %v2146_v53  ;;  %v1385_v52 = vrot.slane %v5296_v46, 1  ;;  %v5425_v53 = vld [vmem:[%s5071_s26 + $0x70] sm:$0xff]  }
  0x52   : > { %v2170_v4 = vrot.slane %v5425_v53, 2 }
  0x53   : > { %4634 = vmatmul.mubr.msk.bf16.gmra.mxu1 %vm486_vm2, %v5180_v23  ;;  %v963_v23 = vsel %vm944_vm3, %v960_v42, %v962_v50  ;;  %v976_v42 = vrot.slane %v5171_v11, 1 }
  0x54   : > { %4668 = vmatmul.mubr.msk.bf16.gmra.mxu0 %vm486_vm2, %v957_v39  ;;  %4637 = vmatprep.mubr.msk.bf16.mxu1 %vm486_vm2, %v5194_v38  ;;  %v5309_v38 = vld [vmem:[%s5071_s26 + $0x28] sm:$0xff]   ;;  %v2166_v39 = vrot.slane %v5398_v33, 2 }
  0x55   : > { %4671 = vmatprep.mubr.msk.bf16.mxu0 %vm486_vm2, %v959_v41  ;;  %v2152_v0 = vrot.slane %v5309_v38, 2  ;;  %v4253_v41 = vcombine.low %v1252_v34, %v5293_v10  ;;  %v977_v54 = vsel %vm944_vm3, %v974_v15, %v976_v42  ;;  %v5458_v34 = vld [vmem:[%s5071_s26 + $0x88] sm:$0xff]  }
  0x57   : > { %v5342_v3 = vsel %vm2144_vm4, %v2150_v57, %v2152_v0  ;;  %v5350_v9 = vsel %vm2144_vm4, %v2152_v0, %v2154_v1  ;;  %v1699_v43 = vshrl.u32 %v4253_v41, 16  ;;  %v1702_v10 = vshll.u32 %v4253_v41, 16 }
  0x58   : > { %v979_v57 = vsel %vm944_vm3, %v976_v42, %v978_v17  ;;  %v1709_v0 = vrot.slane %v1707_v47, 1  ;;  %v1716_v17 = vshrl.u32 %v5301_v49, 16  ;;  %v1737_v47 = vshll.u32 %v5309_v38, 16 }
  0x5b   : > { %4638 = vmatmul.mubr.msk.bf16.gmra.mxu1 %vm486_vm2, %v5197_v40  ;;  %v965_v40 = vsel %vm944_vm3, %v962_v50, %v964_v58 }
  0x5c   : > { %4672 = vmatmul.mubr.msk.bf16.gmra.mxu0 %vm486_vm2, %v961_v48  ;;  %4641 = vmatprep.mubr.msk.bf16.mxu1 %vm486_vm2, %v5089_v13  ;;  %v967_v13 = vsel %vm944_vm3, %v964_v58, %v966_v59  ;;  %v1710_v48 = vshll.u32 %v5296_v46, 16  ;;  %v5432_v58 = vld [vmem:[%s5071_s26 + $0x78] sm:$0xff]   ;;  %v1704_v59 = vrot.slane %v1702_v10, 2  ;;  %v1734_v10 = vshrl.u32 %v5309_v38, 16 }
  0x5d   : > { %4675 = vmatprep.mubr.msk.bf16.mxu0 %vm486_vm2, %v963_v23  ;;  %v1384_v23 = vrot.slane %v4253_v41, 1 }
  0x5e   : > { %v1712_v1 = vrot.slane %v1710_v48, 2 }
  0x5f   : > { %v1386_v46 = vsel %vm944_vm3, %v1384_v23, %v1385_v52  ;;  %v1743_v23 = vshrl.u32 %v5314_v55, 16 }
  0x60   : > { %v1713_v20 = vor.u32 %v1712_v1, %v1709_v0  ;;  %v2676_v0 = vsel %vm541_vm0, %v5259_v7, 0  ;;  %v1736_v1 = vrot.slane %v1734_v10, 1 }
  0x63   : > { %4642 = vmatmul.mubr.msk.bf16.gmra.mxu1 %vm486_vm2, %v5092_v14  ;;  %v2164_v14 = vrot.slane %v5377_v30, 2 }
  0x64   : > { %4676 = vmatmul.mubr.msk.bf16.gmra.mxu0 %vm486_vm2, %v965_v40  ;;  %4645 = vmatprep.mubr.msk.bf16.mxu1 %vm486_vm2, %v5104_v24  ;;  %v972_v24 = vrot.slane %v5131_v44, 1 }
  0x65   : > { %4679 = vmatprep.mubr.msk.bf16.mxu0 %vm486_vm2, %v967_v13  ;;  %v5389_v32 = vsel %vm2144_vm4, %v2162_v45, %v2164_v14  ;;  %v1719_v13 = vshll.u32 %v5301_v49, 16  ;;  %v1389_v45 = vrot.slane %v5305_v51, 1 }
  0x66   : > { %v973_v35 = vsel %vm944_vm3, %v970_v22, %v972_v24  ;;  %v975_v36 = vsel %vm944_vm3, %v972_v24, %v974_v15  ;;  %v1725_v22 = vshrl.u32 %v5305_v51, 16  ;;  %v1718_v24 = vrot.slane %v1716_v17, 1 }
  0x67   : > { %v1721_v15 = vrot.slane %v1719_v13, 2  ;;  %v1745_v17 = vrot.slane %v1743_v23, 1 }
  0x6b   : > { %4646 = vmatmul.mubr.msk.bf16.gmra.mxu1 %vm486_vm2, %v5122_v37  ;;  %v2168_v37 = vrot.slane %v5402_v28, 2 }
  0x6c   : > { %4680 = vmatmul.mubr.msk.bf16.gmra.mxu0 %vm486_vm2, %v969_v29  ;;  %4649 = vmatprep.mubr.msk.bf16.mxu1 %vm486_vm2, %v5131_v44  ;;  %v5410_v44 = vsel %vm2144_vm4, %v2164_v14, %v2166_v39  ;;  %v1728_v29 = vshll.u32 %v5305_v51, 16  ;;  %v5455_v14 = vld [vmem:[%s5071_s26 + $0x80] sm:$0xff]  }
  0x6d   : > { %4683 = vmatprep.mubr.msk.bf16.mxu0 %vm486_vm2, %v971_v27  ;;  %v5415_v50 = vsel %vm2144_vm4, %v2166_v39, %v2168_v37  ;;  %v5439_v40 = vsel %vm2144_vm4, %v2168_v37, %v2170_v4  ;;  %v1387_v27 = vrot.slane %v5301_v49, 1  ;;  %v2174_v39 = vrot.slane %v5455_v14, 2 }
  0x6e   : > { %v2176_v37 = vrot.slane %v5458_v34, 2  ;;  %v2237_v49 = vsel %vm541_vm0, %v5243_v6, 0 }
  0x6f   : > { %v1388_v41 = vsel %vm944_vm3, %v1385_v52, %v1387_v27  ;;  %v1390_v51 = vsel %vm944_vm3, %v1387_v27, %v1389_v45  ;;  %v1746_v52 = vshll.u32 %v5314_v55, 16  ;;  %v1752_v27 = vshrl.u32 %v5329_v61, 16 }
  0x70   : > { %v5481_v6 = vsel %vm2144_vm4, %v2174_v39, %v2176_v37 }
  0x73   : > { %4650 = vmatmul.mubr.msk.bf16.gmra.mxu1 %vm486_vm2, %v5158_v62  ;;  %v1701_v62 = vrot.slane %v1699_v43, 1  ;;  %v1722_v43 = vor.u32 %v1721_v15, %v1718_v24 }
  0x74   : > { %4684 = vmatmul.mubr.msk.bf16.gmra.mxu0 %vm486_vm2, %v973_v35  ;;  %4653 = vmatprep.mubr.msk.bf16.mxu1 %vm486_vm2, %v5171_v11  ;;  %v2172_v11 = vrot.slane %v5432_v58, 2  ;;  %v1727_v35 = vrot.slane %v1725_v22, 1 }
  0x75   : > { %4687 = vmatprep.mubr.msk.bf16.mxu0 %vm486_vm2, %v975_v36  ;;  %v1705_v18 = vor.u32 %v1704_v59, %v1701_v62  ;;  %v1730_v36 = vrot.slane %v1728_v29, 2  ;;  %v5490_v62 = vld [vmem:[%s5071_s26 + $0x90] sm:$0xff]   ;;  %v1723_v59 = vsel %vm1697_vm5, %v1713_v20, %v1722_v43 }
  0x76   : > { %v5445_v16 = vsel %vm2144_vm4, %v2170_v4, %v2172_v11  ;;  %v5470_v42 = vsel %vm2144_vm4, %v2172_v11, %v2174_v39  ;;  %v1739_v4 = vrot.slane %v1737_v47, 2  ;;  %v5498_v11 = vld [vmem:[%s5071_s26 + $0x98] ss:$0 sps:$4 sm:$0x33]   ;;  %v1397_v39 = vrot.slane %v5339_v2, 1 }
  0x77   : > { %v1731_v48 = vor.u32 %v1730_v36, %v1727_v35  ;;  %v1764_v35 = vshll.u32 %v5339_v2, 16  ;;  %v1395_v36 = vrot.slane %v5329_v61, 1 }
  0x78   : > { %v1740_v29 = vor.u32 %v1739_v4, %v1736_v1  ;;  %v5543_v1 = vld [vmem:[%s5071_s26 + $0x14] sm:$0xf]  ;;  %v3338_v4 = vld [vmem:[%s5071_s26 + $0x10] sm:$0x8] }
  0x79   : > { %v1766_v10 = vrot.slane %v1764_v35, 2  ;;  %v1398_v23 = vsel %vm944_vm3, %v1395_v36, %v1397_v39 }
  0x7b   : > { %4654 = vmatmul.mubr.msk.bf16.gmra.mxu1 %vm486_vm2, %v5185_v26  ;;  %v1714_v26 = vsel %vm1697_vm5, %v1705_v18, %v1713_v20  ;;  %v5506_v18 = vld [vmem:[%s6609_s1 + $0x10] sm:$0x3]  ;;  %v2180_v20 = vrot.slane %v5498_v11, 2 }
  0x7c   : > { %4688 = vmatmul.mubr.msk.bf16.gmra.mxu0 %vm486_vm2, %v977_v54  ;;  %4697 = vmatprep.mubr.msk.bf16.mxu1 %vm486_vm2, %v1386_v46  ;;  %v1391_v54 = vrot.slane %v5309_v38, 1  ;;  %v1732_v46 = vsel %vm1697_vm5, %v1722_v43, %v1731_v48  ;;  %v1748_v38 = vrot.slane %v1746_v52, 2 }
  0x7d   : > { %4691 = vmatprep.mubr.msk.bf16.mxu0 %vm486_vm2, %v979_v57  ;;  %v1393_v57 = vrot.slane %v5314_v55, 1  ;;  %v2178_v55 = vrot.slane %v5490_v62, 2 }
  0x7e   : > { %v1392_v13 = vsel %vm944_vm3, %v1389_v45, %v1391_v54  ;;  %v1755_v45 = vshll.u32 %v5329_v61, 16  ;;  %v1749_v15 = vor.u32 %v1748_v38, %v1745_v17 }
  0x7f   : > { %v1394_v7 = vsel %vm944_vm3, %v1391_v54, %v1393_v57  ;;  %v5512_v22 = vsel %vm2144_vm4, %v2176_v37, %v2178_v55  ;;  %v5518_v24 = vsel %vm2144_vm4, %v2178_v55, %v2180_v20  ;;  %v1754_v37 = vrot.slane %v1752_v27, 1  ;;  %v5548_v55 = vld [vmem:[%s5071_s26 + $0x18] sm:$0xff]   ;;  %v5553_v27 = vld [vmem:[%s5071_s26 + $0x20] sm:$0xff]  }
  0x80   : > { %v1396_v47 = vsel %vm944_vm3, %v1393_v57, %v1395_v36  ;;  %v1779_v54 = vshrl.u32 %v5373_v25, 16  ;;  %v1782_v57 = vshll.u32 %v5373_v25, 16  ;;  %v1788_v36 = vshrl.u32 %v5377_v30, 16 }
  0x83   : > { %4698 = vmatmul.mubr.msk.bf16.vlgmr.msra.gmra.mxu1 %vm486_vm2, %v1388_v41  ;;  %v1741_v41 = vsel %vm1697_vm5, %v1731_v48, %v1740_v29  ;;  %v1773_v48 = vshll.u32 %v5347_v8, 16 }
  0x84   : > { %4692 = vmatmul.mubr.msk.bf16.gmra.mxu0 %vm486_vm2, %v5230_v5  ;;  %v5478_v5 = vld [vmem:[%s6609_s1 + $0xe] sm:$0x3]  ;;  %4772 = vmatpush3.bf16.msra.mxu1 %v2237_v49  ;;  %v1757_v49 = vrot.slane %v1755_v45, 2  ;;  %v3346_v45 = vrot.slane %v5548_v55, 3 }
  0x85   : > { %4735 = vmatprep.mubr.msk.bf16.mxu0 %vm486_vm2, %v1714_v26  ;;  %4701 = vmatprep.mubr.msk.bf16.mxu1 %vm486_vm2, %v1390_v51  ;;  %v1761_v26 = vshrl.u32 %v5339_v2, 16  ;;  %v1750_v51 = vsel %vm1697_vm5, %v1740_v29, %v1749_v15  ;;  %v1770_v2 = vshrl.u32 %v5347_v8, 16  ;;  %v1775_v38 = vrot.slane %v1773_v48, 2 }
  0x86   : > { %4933 = vmatprep.subr.msk.bf16.mxu1 %vm541_vm0, %v5478_v5  ;;  %v1758_v61 = vor.u32 %v1757_v49, %v1754_v37  ;;  %v1784_v29 = vrot.slane %v1782_v57, 2  ;;  %v1797_v49 = vshrl.u32 %v5398_v33, 16 }
  0x87   : > { %v1763_v43 = vrot.slane %v1761_v26, 1  ;;  %v1772_v17 = vrot.slane %v1770_v2, 1  ;;  %v6613_v26 = vrot.slane %v5553_v27, 3 }
  0x89   : > { %v1767_v52 = vor.u32 %v1766_v10, %v1763_v43  ;;  %v1776_v35 = vor.u32 %v1775_v38, %v1772_v17  ;;  %v5572_v43 = vsel %vm3344_vm6, %v3346_v45, %v6613_v26  ;;  %v1403_v10 = vrot.slane %v5377_v30, 1 }
  0x8a   : > { %v1809_v17 = vshll.u32 %v5402_v28, 16 }
  0x8b   : > { %4702 = vmatmul.mubr.msk.bf16.gmra.mxu1 %vm486_vm2, %v1392_v13  ;;  %v4389_v13 = vcombine.low %v3338_v4, %v5543_v1  ;;  %v1768_v20 = vsel %vm1697_vm5, %v1758_v61, %v1767_v52 }
  0x8c   : > { %4736 = vmatmul.mubr.msk.bf16.vlgmr.msra.gmra.mxu0 %vm486_vm2, %v1723_v59  ;;  %4705 = vmatprep.mubr.msk.bf16.mxu1 %vm486_vm2, %v1394_v7  ;;  %v1399_v59 = vrot.slane %v5347_v8, 1  ;;  %v1781_v7 = vrot.slane %v1779_v54, 1  ;;  %v1799_v54 = vrot.slane %v1797_v49, 1  ;;  %v3655_v49 = vld [vmem:[%s6610_s2 + $0x18] sm:$0xff] }
  0x8d   : > { %4810 = vmatpush3.bf16.msra.mxu0 %v2676_v0  ;;  %4739 = vmatprep.mubr.msk.bf16.mxu0 %vm486_vm2, %v1732_v46  ;;  %v1401_v0 = vrot.slane %v5373_v25, 1  ;;  %v1759_v46 = vsel %vm1697_vm5, %v1749_v15, %v1758_v61  ;;  %v3345_v25 = vrot.slane %v4389_v13, 3  ;;  %v1790_v61 = vrot.slane %v1788_v36, 1 }
  0x8e   : > { %4934 = vmatprep.subr.msk.bf16.mxu0 %vm541_vm0, %v5506_v18  ;;  %v1400_v8 = vsel %vm944_vm3, %v1397_v39, %v1399_v59  ;;  %v1785_v39 = vor.u32 %v1784_v29, %v1781_v7  ;;  %v1818_v13 = vshll.u32 %v5425_v53, 16  ;;  %v3654_v7 = vld [vmem:[%s6610_s2 + $0x10] sm:$0xff]  ;;  %v3653_v29 = vld [vmem:[%s6610_s2 + $0x8] sm:$0xff] }
  0x8f   : > { %v1402_v15 = vsel %vm944_vm3, %v1399_v59, %v1401_v0  ;;  %v5564_v37 = vsel %vm3344_vm6, %v3345_v25, %v3346_v45  ;;  %v5017_v59 = vmov 0   ;;  %v1404_v4 = vsel %vm944_vm3, %v1401_v0, %v1403_v10 }
  0x90   : > { %v1786_v48 = vsel %vm1697_vm5, %v1776_v35, %v1785_v39  ;;  %4945 = vset.pattern.permute.xlu0 %v5017_v59  ;;  %4946 = vset.pattern.permute.xlu1 %v5017_v59  ;;  %v1815_v0 = vshrl.u32 %v5425_v53, 16  ;;  %v1413_v59 = vrot.slane %v5455_v14, 1 }
  0x91   : > { %3700 = vperm.xlu1 %4946, %v3654_v7   ;;  %v1845_v7 = vshll.u32 %v5458_v34, 16 }
  0x92   : > { %v1817_v36 = vrot.slane %v1815_v0, 1  ;;  %v3659_v0 = vld [vmem:[%s6610_s2 + $0x38] sm:$0xff] }
  0x93   : > { %4706 = vmatmul.mubr.msk.bf16.gmra.mxu1 %vm486_vm2, %v1396_v47  ;;  %v1405_v47 = vrot.slane %v5398_v33, 1 }
  0x94   : > { %4740 = vmatmul.mubr.msk.bf16.gmra.mxu0 %vm486_vm2, %v1741_v41  ;;  %4709 = vmatprep.mubr.msk.bf16.mxu1 %vm486_vm2, %v1398_v23  ;;  %v1791_v41 = vshll.u32 %v5377_v30, 16  ;;  %v1777_v23 = vsel %vm1697_vm5, %v1767_v52, %v1776_v35  ;;  %v1806_v52 = vshrl.u32 %v5402_v28, 16 }
  0x95   : > { %4743 = vmatprep.mubr.msk.bf16.mxu0 %vm486_vm2, %v1750_v51  ;;  %v1800_v51 = vshll.u32 %v5398_v33, 16  ;;  %v1406_v30 = vsel %vm944_vm3, %v1403_v10, %v1405_v47  ;;  %3705 = vperm.xlu1 %4946, %v3655_v49   ;;  %v1824_v10 = vshrl.u32 %v5432_v58, 16  ;;  %v1847_v49 = vrot.slane %v1845_v7, 2  ;;  %v3670_v7 = vld [vmem:[%s6610_s2 + $0x90] sm:$0xff] }
  0x96   : > { %v1793_v2 = vrot.slane %v1791_v41, 2  ;;  %v1808_v45 = vrot.slane %v1806_v52, 1 }
  0x97   : > { %v1802_v57 = vrot.slane %v1800_v51, 2 }
  0x98   : > { %v1794_v33 = vor.u32 %v1793_v2, %v1790_v61  ;;  %v1833_v61 = vshrl.u32 %v5455_v14, 16  ;;  %v1836_v2 = vshll.u32 %v5455_v14, 16  ;;  %v3660_v14 = vld [vmem:[%s6610_s2 + $0x40] sm:$0xff] }
  0x99   : > { %v1803_v38 = vor.u32 %v1802_v57, %v1799_v54  ;;  %v3657_v54 = vld [vmem:[%s6610_s2 + $0x28] sm:$0xff]  ;;  %v3658_v57 = vld [vmem:[%s6610_s2 + $0x30] sm:$0xff] }
  0x9a   : > { %v1795_v25 = vsel %vm1697_vm5, %v1785_v39, %v1794_v33  ;;  %3715 = vperm.xlu1 %4946, %v3657_v54   ;;  %v1835_v52 = vrot.slane %v1833_v61, 1 }
  0x9b   : > { %4710 = vmatmul.mubr.msk.bf16.gmra.mxu1 %vm486_vm2, %v1400_v8  ;;  %v1409_v8 = vrot.slane %v5425_v53, 1  ;;  %v1804_v35 = vsel %vm1697_vm5, %v1794_v33, %v1803_v38  ;;  %v3656_v53 = vld [vmem:[%s6610_s2 + $0x20] sm:$0xff] }
  0x9c   : > { %4744 = vmatmul.mubr.msk.bf16.gmra.mxu0 %vm486_vm2, %v1759_v46  ;;  %4713 = vmatprep.mubr.msk.bf16.mxu1 %vm486_vm2, %v1402_v15  ;;  %v3652_v46 = vld [vmem:[%s6610_s2] sm:$0xff]  ;;  %v1811_v15 = vrot.slane %v1809_v17, 2 }
  0x9d   : > { %4747 = vmatprep.mubr.msk.bf16.mxu0 %vm486_vm2, %v1768_v20  ;;  %3690 = vperm.xlu0 %4945, %v3652_v46   ;;  %v1407_v20 = vrot.slane %v5402_v28, 1  ;;  %v1820_v28 = vrot.slane %v1818_v13, 2  ;;  %v1826_v46 = vrot.slane %v1824_v10, 1  ;;  %v4985_v10 = vld [vmem:[%s5071_s26 + $0x98] ss:$0 sps:$4 sm:$0x11]  }
  0x9e   : > { %v1812_v51 = vor.u32 %v1811_v15, %v1808_v45  ;;  %3725 = vperm.xlu1 %4946, %v3659_v0   ;;  %v1415_v45 = vrot.slane %v5458_v34, 1  ;;  %v3661_v15 = vld [vmem:[%s6610_s2 + $0x48] sm:$0xff]  ;;  %v3667_v0 = vld [vmem:[%s6610_s2 + $0x78] sm:$0xff] }
  0x9f   : > { %v1408_v41 = vsel %vm944_vm3, %v1405_v47, %v1407_v20  ;;  %v1410_v39 = vsel %vm944_vm3, %v1407_v20, %v1409_v8  ;;  %v1827_v47 = vshll.u32 %v5432_v58, 16  ;;  %v1842_v20 = vshrl.u32 %v5458_v34, 16 }
  0xa1   : > { %3695 = vperm.xlu0 %4945, %v3653_v29  }
  0xa2   : > { %3735 = vperm.xlu1 %4946, %v3661_v15   ;;  %v3123_v15 = vsel %vm541_vm0, %v5478_v5, 0  ;;  %v3673_v5 = vld [vmem:[%s6610_s2 + $0xa8] sm:$0xff] }
  0xa3   : > { %4714 = vmatmul.mubr.msk.bf16.gmra.mxu1 %vm486_vm2, %v1404_v4  ;;  %v1813_v4 = vsel %vm1697_vm5, %v1803_v38, %v1812_v51 }
  0xa4   : > { %4748 = vmatmul.mubr.msk.bf16.gmra.mxu0 %vm486_vm2, %v1777_v23  ;;  %4717 = vmatprep.mubr.msk.bf16.mxu1 %vm486_vm2, %v1406_v30  ;;  %v1821_v23 = vor.u32 %v1820_v28, %v1817_v36  ;;  %v1829_v30 = vrot.slane %v1827_v47, 2  ;;  %v1417_v36 = vrot.slane %v5490_v62, 1  ;;  %v3663_v47 = vld [vmem:[%s6610_s2 + $0x58] sm:$0xff] }
  0xa5   : > { %4751 = vmatprep.mubr.msk.bf16.mxu0 %vm486_vm2, %v1786_v48  ;;  %3710 = vperm.xlu0 %4945, %v3656_v53   ;;  %v1411_v48 = vrot.slane %v5432_v58, 1  ;;  %v1838_v58 = vrot.slane %v1836_v2, 2  ;;  %v1860_v2 = vshrl.u32 %v5498_v11, 16 }
  0xa6   : > { %v1822_v33 = vsel %vm1697_vm5, %v1812_v51, %v1821_v23  ;;  %v1830_v13 = vor.u32 %v1829_v30, %v1826_v46  ;;  %v1416_v51 = vsel %vm944_vm3, %v1413_v59, %v1415_v45  ;;  %3745 = vperm.xlu1 %4946, %v3663_v47   ;;  %v3666_v46 = vld [vmem:[%s6610_s2 + $0x70] sm:$0xff] }
  0xa7   : > { %v1412_v17 = vsel %vm944_vm3, %v1409_v8, %v1411_v48  ;;  %v1414_v38 = vsel %vm944_vm3, %v1411_v48, %v1413_v59  ;;  %v1839_v29 = vor.u32 %v1838_v58, %v1835_v52  ;;  %v1851_v8 = vshrl.u32 %v5490_v62, 16  ;;  %v2452_v59 = vld [vmem:[%s5071_s26 + $0x10] sm:$0xc] }
  0xa8   : > { %v1831_v28 = vsel %vm1697_vm5, %v1821_v23, %v1830_v13  ;;  %v1418_v23 = vsel %vm944_vm3, %v1415_v45, %v1417_v36  ;;  %v1863_v48 = vshll.u32 %v5498_v11, 16  ;;  %v1862_v11 = vrot.slane %v1860_v2, 1  ;;  %v3672_v45 = vld [vmem:[%s6610_s2 + $0xa0] sm:$0xff]  ;;  %v3678_v47 = vld [vmem:[%s6610_s2 + $0xd0] sm:$0xff] }
  0xa9   : > { %3720 = vperm.xlu0 %4945, %v3658_v57   ;;  %v1840_v53 = vsel %vm1697_vm5, %v1830_v13, %v1839_v29  ;;  %v1419_v57 = vrot.slane %v4985_v10, 1  ;;  %v5679_v58 = vcombine.low %v2452_v59, %v5543_v1  ;;  %v2585_v13 = vrot.slane %v5548_v55, 2  ;;  %v3677_v10 = vld [vmem:[%s6610_s2 + $0xc8] sm:$0xff]  ;;  %v3680_v2 = vld [vmem:[%s6610_s2 + $0xe0] sm:$0xff] }
  0xab   : > { %4718 = vmatmul.mubr.msk.bf16.gmra.mxu1 %vm486_vm2, %v1408_v41  ;;  %v1844_v41 = vrot.slane %v1842_v20, 1  ;;  %v2584_v1 = vrot.slane %v5679_v58, 2  ;;  %v3669_v20 = vld [vmem:[%s6610_s2 + $0x88] sm:$0xff] }
  0xac   : > { %4752 = vmatmul.mubr.msk.bf16.gmra.mxu0 %vm486_vm2, %v1795_v25  ;;  %4721 = vmatprep.mubr.msk.bf16.mxu1 %vm486_vm2, %v1410_v39  ;;  %v1854_v25 = vshll.u32 %v5490_v62, 16  ;;  %v1853_v39 = vrot.slane %v1851_v8, 1  ;;  %v3664_v62 = vld [vmem:[%s6610_s2 + $0x60] sm:$0xff] }
  0xad   : > { %4755 = vmatprep.mubr.msk.bf16.mxu0 %vm486_vm2, %v1804_v35  ;;  %3730 = vperm.xlu0 %4945, %v3660_v14   ;;  %v3662_v35 = vld [vmem:[%s6610_s2 + $0x50] sm:$0xff]  ;;  %v1848_v61 = vor.u32 %v1847_v49, %v1844_v41  ;;  %v3668_v14 = vld [vmem:[%s6610_s2 + $0x80] sm:$0xff]  ;;  %v2586_v8 = vsel %vm2144_vm4, %v2584_v1, %v2585_v13 }
  0xae   : > { %v1856_v34 = vrot.slane %v1854_v25, 2  ;;  %v5704_v25 = vld [vmem:[%s5071_s26 + $0x28] sm:$0xff]   ;;  %v5730_v49 = vld [vmem:[%s5071_s26 + $0x30] sm:$0xff]   ;;  %v3684_v1 = vld [vmem:[%s6610_s2 + $0x100] sm:$0xff] }
  0xaf   : > { %v1849_v30 = vsel %vm1697_vm5, %v1839_v29, %v1848_v61 }
  0xb0   : > { %v1857_v54 = vor.u32 %v1856_v34, %v1853_v39  ;;  %v3675_v39 = vld [vmem:[%s6610_s2 + $0xb8] sm:$0xff]  ;;  %v3676_v34 = vld [vmem:[%s6610_s2 + $0xc0] sm:$0xff] }
  0xb1   : > { %3740 = vperm.xlu0 %4945, %v3662_v35   ;;  %v2587_v35 = vrot.slane %v5553_v27, 2 }
  0xb2   : > { %v1858_v52 = vsel %vm1697_vm5, %v1848_v61, %v1857_v54  ;;  %v5764_v61 = vld [vmem:[%s5071_s26 + $0x48] sm:$0xff]  }
  0xb3   : > { %4722 = vmatmul.mubr.msk.bf16.gmra.mxu1 %vm486_vm2, %v1412_v17  ;;  %v1420_v17 = vsel %vm944_vm3, %v1417_v36, %v1419_v57  ;;  %v2589_v36 = vrot.slane %v5704_v25, 2  ;;  %v2588_v41 = vsel %vm2144_vm4, %v2585_v13, %v2587_v35 }
  0xb4   : > { %4756 = vmatmul.mubr.msk.bf16.gmra.mxu0 %vm486_vm2, %v1813_v4  ;;  %4725 = vmatprep.mubr.msk.bf16.mxu1 %vm486_vm2, %v1414_v38  ;;  %v3665_v4 = vld [vmem:[%s6610_s2 + $0x68] sm:$0xff] }
  0xb5   : > { %4759 = vmatprep.mubr.msk.bf16.mxu0 %vm486_vm2, %v1822_v33  ;;  %3750 = vperm.xlu0 %4945, %v3664_v62   ;;  %v1865_v33 = vrot.slane %v1863_v48, 2 }
  0xb6   : > { %3755 = vperm.xlu1 %4946, %v3665_v4   ;;  %v2597_v4 = vrot.slane %v5764_v61, 2 }
  0xb7   : > { %v1866_v38 = vor.u32 %v1865_v33, %v1862_v11 }
  0xb9   : > { %3760 = vperm.xlu0 %4945, %v3666_v46   ;;  %v1867_v29 = vsel %vm1697_vm5, %v1857_v54, %v1866_v38  ;;  %v3681_v46 = vld [vmem:[%s6610_s2 + $0xe8] sm:$0xff]  ;;  %v3683_v38 = vld [vmem:[%s6610_s2 + $0xf8] sm:$0xff] }
  0xba   : > { %3765 = vperm.xlu1 %4946, %v3667_v0  }
  0xbb   : > { %4726 = vmatmul.mubr.msk.bf16.gmra.mxu1 %vm486_vm2, %v1416_v51 }
  0xbc   : > { %4760 = vmatmul.mubr.msk.bf16.gmra.mxu0 %vm486_vm2, %v1831_v28  ;;  %4729 = vmatprep.mubr.msk.bf16.mxu1 %vm486_vm2, %v1418_v23  ;;  %v3674_v28 = vld [vmem:[%s6610_s2 + $0xb0] sm:$0xff]  ;;  %v5760_v23 = vld [vmem:[%s5071_s26 + $0x40] sm:$0xff]  }
  0xbd   : > { %4763 = vmatprep.mubr.msk.bf16.mxu0 %vm486_vm2, %v1840_v53  ;;  %3770 = vperm.xlu0 %4945, %v3668_v14   ;;  %v2590_v53 = vsel %vm2144_vm4, %v2587_v35, %v2589_v36  ;;  %v2595_v54 = vrot.slane %v5760_v23, 2  ;;  %v5806_v14 = vld [vmem:[%s5071_s26 + $0x58] sm:$0xff]  }
  0xbe   : > { %3775 = vperm.xlu1 %4946, %v3669_v20  }
  0xbf   : > { %v2598_v0 = vsel %vm2144_vm4, %v2595_v54, %v2597_v4 }
  0xc1   : > { %3780 = vperm.xlu0 %4945, %v3670_v7  }
  0xc3   : > { %4730 = vmatmul.mubr.msk.bf16.gmra.mxu1 %vm486_vm2, %v1420_v17 }
  0xc4   : > { %4764 = vmatmul.mubr.msk.bf16.gmra.mxu0 %vm486_vm2, %v1849_v30  ;;  %4773 = vmatprep.mubr.msk.bf16.mxu1 %vm486_vm2, %v5317_v56  ;;  %v3671_v56 = vld [vmem:[%s6610_s2 + $0x98] sm:$0xff]  ;;  %v3682_v30 = vld [vmem:[%s6610_s2 + $0xf0] sm:$0xff] }
  0xc5   : > { %4767 = vmatprep.mubr.msk.bf16.mxu0 %vm486_vm2, %v1858_v52  ;;  %3785 = vperm.xlu1 %4946, %v3671_v56   ;;  %v5798_v52 = vld [vmem:[%s5071_s26 + $0x50] sm:$0xff]   ;;  %v2601_v56 = vrot.slane %v5806_v14, 2 }
  0xc6   : > { %3790 = vperm.xlu0 %4945, %v3672_v45   ;;  %v2599_v7 = vrot.slane %v5798_v52, 2  ;;  %v3685_v45 = vld [vmem:[%s6610_s2 + $0x108] sm:$0xff] }
  0xc9   : > { %3795 = vperm.xlu1 %4946, %v3673_v5   ;;  %v5842_v5 = vld [vmem:[%s5071_s26 + $0x60] sm:$0xff]  }
  0xca   : > { %3800 = vperm.xlu0 %4945, %v3674_v28  }
  0xcb   : > { %4774 = vmatmul.mubr.msk.bf16.vlgmr.msra.gmra.mxu1 %vm486_vm2, %v5324_v60  ;;  %v3437_v60 = vsel %vm541_vm0, %v5506_v18, 0  ;;  %v2591_v18 = vrot.slane %v5730_v49, 2 }
  0xcc   : > { %4768 = vmatmul.mubr.msk.bf16.gmra.mxu0 %vm486_vm2, %v1867_v29  ;;  %4848 = vmatpush3.bf16.msra.mxu1 %v3123_v15  ;;  %v3686_v15 = vld [vmem:[%s6610_s2 + $0x110] sm:$0xff] }
  0xcd   : > { %4811 = vmatprep.mubr.msk.bf16.mxu0 %vm486_vm2, %v2586_v8  ;;  %4777 = vmatprep.mubr.msk.bf16.mxu1 %vm486_vm2, %v5332_v63  ;;  %v5736_v63 = vld [vmem:[%s5071_s26 + $0x38] sm:$0xff]   ;;  %v2592_v62 = vsel %vm2144_vm4, %v2589_v36, %v2591_v18 }
  0xce   : > { %3805 = vperm.xlu1 %4946, %v3675_v39   ;;  %v2593_v51 = vrot.slane %v5736_v63, 2  ;;  %3810 = vperm.xlu0 %4945, %v3676_v34  }
  0xd2   : > { %3815 = vperm.xlu1 %4946, %v3677_v10   ;;  %3820 = vperm.xlu0 %4945, %v3678_v47  }
  0xd3   : > { %4778 = vmatmul.mubr.msk.bf16.gmra.mxu1 %vm486_vm2, %v5342_v3  ;;  %v2594_v3 = vsel %vm2144_vm4, %v2591_v18, %v2593_v51  ;;  %v2603_v18 = vrot.slane %v5842_v5, 2 }
  0xd4   : > { %4812 = vmatmul.mubr.msk.bf16.vlgmr.msra.gmra.mxu0 %vm486_vm2, %v2588_v41  ;;  %4781 = vmatprep.mubr.msk.bf16.mxu1 %vm486_vm2, %v5350_v9  ;;  %v3679_v9 = vld [vmem:[%s6610_s2 + $0xd8] sm:$0xff]  ;;  %v2602_v41 = vsel %vm2144_vm4, %v2599_v7, %v2601_v56 }
  0xd5   : > { %4886 = vmatpush3.bf16.msra.mxu0 %v3437_v60  ;;  %4815 = vmatprep.mubr.msk.bf16.mxu0 %vm486_vm2, %v2590_v53  ;;  %v5850_v60 = vld [vmem:[%s5071_s26 + $0x68] sm:$0xff]   ;;  %v3687_v53 = vld [vmem:[%s6610_s2 + $0x118] sm:$0xff] }
  0xd6   : > { %3825 = vperm.xlu1 %4946, %v3679_v9   ;;  %3830 = vperm.xlu0 %4945, %v3680_v2   ;;  %v2605_v47 = vrot.slane %v5850_v60, 2  ;;  %v2604_v9 = vsel %vm2144_vm4, %v2601_v56, %v2603_v18  ;;  %v5877_v2 = vld [vmem:[%s5071_s26 + $0x70] sm:$0xff]  }
  0xda   : > { %3835 = vperm.xlu1 %4946, %v3681_v46   ;;  %3840 = vperm.xlu0 %4945, %v3682_v30   ;;  %v5885_v46 = vld [vmem:[%s5071_s26 + $0x78] sm:$0xff]  }
  0xdb   : > { %v5777_v57 = vpop.f32.mrf.mxu1  ;;  %4782 = vmatmul.mubr.msk.bf16.gmra.mxu1 %vm486_vm2, %v5354_v12  ;;  %v2596_v12 = vsel %vm2144_vm4, %v2593_v51, %v2595_v54 }
  0xdc   : > { %v5772_v48 = vpop.f32.mrf.mxu0  ;;  %4816 = vmatmul.mubr.msk.bf16.gmra.mxu0 %vm486_vm2, %v2592_v62  ;;  %4785 = vmatprep.mubr.msk.bf16.mxu1 %vm486_vm2, %v5360_v19 }
  0xdd   : > { %4819 = vmatprep.mubr.msk.bf16.mxu0 %vm486_vm2, %v2594_v3  ;;  %v5792_v11 = vpop.f32.mrf.mxu1 }
  0xde   : > { %v5781_v59 = vpop.f32.mrf.mxu0  ;;  %3845 = vperm.xlu1 %4946, %v3683_v38   ;;  %3850 = vperm.xlu0 %4945, %v3684_v1   ;;  %v2609_v1 = vrot.slane %v5885_v46, 2 }
  0xdf   : > { %v5800_v17 = vpop.f32.mrf.mxu1 }
  0xe0   : > { %v5794_v33 = vpop.f32.mrf.mxu0 }
  0xe1   : > { %v5814_v13 = vpop.f32.mrf.mxu1 }
  0xe2   : > { %v5802_v19 = vpop.f32.mrf.mxu0  ;;  %3855 = vperm.xlu1 %4946, %v3685_v45   ;;  %3860 = vperm.xlu0 %4945, %v3686_v15   ;;  %v5909_v15 = vld [vmem:[%s5071_s26 + $0x80] sm:$0xff]  }
  0xe3   : > { %v5821_v29 = vpop.f32.mrf.mxu1  ;;  %4786 = vmatmul.mubr.msk.bf16.gmra.mxu1 %vm486_vm2, %v5365_v21  ;;  %v2600_v21 = vsel %vm2144_vm4, %v2597_v4, %v2599_v7  ;;  %6628 = vst [vmem:[#allocation10_spill] sm:$0xff] %v5909_v15 }
  0xe4   : > { %v5816_v20 = vpop.f32.mrf.mxu0  ;;  %4820 = vmatmul.mubr.msk.bf16.gmra.mxu0 %vm486_vm2, %v2596_v12  ;;  %4789 = vmatprep.mubr.msk.bf16.mxu1 %vm486_vm2, %v5384_v31  ;;  %v2607_v12 = vrot.slane %v5877_v2, 2 }
  0xe5   : > { %4823 = vmatprep.mubr.msk.bf16.mxu0 %vm486_vm2, %v2598_v0  ;;  %v5836_v35 = vpop.f32.mrf.mxu1 }
  0xe6   : > { %v5825_v8 = vpop.f32.mrf.mxu0  ;;  %3865 = vperm.xlu1 %4946, %v3687_v53   ;;  %v2608_v45 = vsel %vm2144_vm4, %v2605_v47, %v2607_v12  ;;  %v5917_v53 = vld [vmem:[%s5071_s26 + $0x88] sm:$0xff]  }
  0xe7   : > { %v5844_v28 = vpop.f32.mrf.mxu1  ;;  %6630 = vst [vmem:[#allocation12_spill] sm:$0xff] %v5917_v53 }
  0xe8   : > { %v5838_v36 = vpop.f32.mrf.mxu0  ;;  %6620 = vst [vmem:[#allocation2_spill] sm:$0xff] %v5844_v28 }
  0xe9   : > { %v5855_v39 = vpop.f32.mrf.mxu1 }
  0xea   : > { %v5846_v31 = vpop.f32.mrf.mxu0  ;;  %6621 = vst [vmem:[#allocation3_spill] sm:$0xff] %v5855_v39 }
  0xeb   : > { %v5862_v51 = vpop.f32.mrf.mxu1  ;;  %4790 = vmatmul.mubr.msk.bf16.gmra.mxu1 %vm486_vm2, %v5389_v32  ;;  %v2606_v32 = vsel %vm2144_vm4, %v2603_v18, %v2605_v47 }
  0xec   : > { %v5857_v34 = vpop.f32.mrf.mxu0  ;;  %4824 = vmatmul.mubr.msk.bf16.gmra.mxu0 %vm486_vm2, %v2600_v21  ;;  %6622 = vst [vmem:[#allocation4_spill] sm:$0xff] %v5862_v51  ;;  %4793 = vmatprep.mubr.msk.bf16.mxu1 %vm486_vm2, %v5410_v44 }
  0xed   : > { %4827 = vmatprep.mubr.msk.bf16.mxu0 %vm486_vm2, %v2602_v41  ;;  %v5871_v62 = vpop.f32.mrf.mxu1 }
  0xee   : > { %v5866_v10 = vpop.f32.mrf.mxu0  ;;  %6623 = vst [vmem:[#allocation5_spill] sm:$0xff] %v5871_v62  ;;  %v5949_v62 = vld [vmem:[%s5071_s26 + $0x98] sm:$0xff]  }
  0xef   : > { %v5879_v54 = vpop.f32.mrf.mxu1  ;;  %6632 = vst [vmem:[#allocation14_spill] sm:$0xff] %v5949_v62 }
  0xf0   : > { %v5873_v3 = vpop.f32.mrf.mxu0  ;;  %6624 = vst [vmem:[#allocation6_spill] sm:$0xff] %v5879_v54  ;;  %v5943_v54 = vld [vmem:[%s5071_s26 + $0x90] sm:$0xff]  }
  0xf1   : > { %v5887_v30 = vpop.f32.mrf.mxu1 }
  0xf2   : > { %v5881_v4 = vpop.f32.mrf.mxu0  ;;  %6625 = vst [vmem:[#allocation7_spill] sm:$0xff] %v5887_v30 }
  0xf3   : > { %v5894_v0 = vpop.f32.mrf.mxu1  ;;  %4794 = vmatmul.mubr.msk.bf16.gmra.mxu1 %vm486_vm2, %v5415_v50  ;;  %v2610_v50 = vsel %vm2144_vm4, %v2607_v12, %v2609_v1  ;;  %v2613_v12 = vrot.slane %v5917_v53, 2 }
  0xf4   : > { %v5889_v44 = vpop.f32.mrf.mxu0  ;;  %4828 = vmatmul.mubr.msk.bf16.gmra.mxu0 %vm486_vm2, %v2604_v9  ;;  %6626 = vst [vmem:[#allocation8_spill] sm:$0xff] %v5894_v0  ;;  %4797 = vmatprep.mubr.msk.bf16.mxu1 %vm486_vm2, %v5439_v40  ;;  %v2611_v40 = vrot.slane %v5909_v15, 2 }
  0xf5   : > { %4831 = vmatprep.mubr.msk.bf16.mxu0 %vm486_vm2, %v2606_v32  ;;  %v5903_v7 = vpop.f32.mrf.mxu1 }
  0xf6   : > { %v5898_v38 = vpop.f32.mrf.mxu0  ;;  %6627 = vst [vmem:[#allocation9_spill] sm:$0xff] %v5903_v7  ;;  %v2907_v7 = vshrl.u32 %v5548_v55, 16  ;;  %v2612_v30 = vsel %vm2144_vm4, %v2609_v1, %v2611_v40 }
  0xf7   : > { %v5911_v21 = vpop.f32.mrf.mxu1 }
  0xf8   : > { %v5905_v56 = vpop.f32.mrf.mxu0  ;;  %6629 = vst [vmem:[#allocation11_spill] sm:$0xff] %v5911_v21  ;;  %v2902_v21 = vshll.u32 %v5679_v58, 16 }
  0xf9   : > { %v5919_v18 = vpop.f32.mrf.mxu1 }
  0xfa   : > { %v5913_v41 = vpop.f32.mrf.mxu0  ;;  %6631 = vst [vmem:[#allocation13_spill] sm:$0xff] %v5919_v18  ;;  %v2904_v53 = vrot.slane %v2902_v21, 3 }
  0xfb   : > { %v4623_v47 = vpop.f32.mrf.mxu1  ;;  %4798 = vmatmul.mubr.msk.bf16.gmra.mxu1 %vm486_vm2, %v5445_v16  ;;  %v2910_v16 = vshll.u32 %v5548_v55, 16 }
  0xfc   : > { %v5921_v9 = vpop.f32.mrf.mxu0  ;;  %4832 = vmatmul.mubr.msk.bf16.gmra.mxu0 %vm486_vm2, %v2608_v45  ;;  %v804_v26 = vadd.f32 %v4623_v47, %v5772_v48  ;;  %4801 = vmatprep.mubr.msk.bf16.mxu1 %vm486_vm2, %v5470_v42  ;;  %v2614_v42 = vsel %vm2144_vm4, %v2611_v40, %v2613_v12  ;;  %v2615_v40 = vrot.slane %v5943_v54, 2 }
  0xfd   : > { %4835 = vmatprep.mubr.msk.bf16.mxu0 %vm486_vm2, %v2610_v50  ;;  %v795_v45 = vpop.f32.mrf.mxu1  ;;  %v2899_v50 = vshrl.u32 %v5679_v58, 16 }
  0xfe   : > { %v5928_v32 = vpop.f32.mrf.mxu0  ;;  %v796_v0 = vadd.f32 %v795_v45, %v5781_v59  ;;  %v2909_v59 = vrot.slane %v2907_v7, 2  ;;  %v2912_v45 = vrot.slane %v2910_v16, 3 }
  0xff   : > { %v4624_v48 = vpop.f32.mrf.mxu1  ;;  %v2901_v55 = vrot.slane %v2899_v50, 2 }
 0x100   : > { %v5934_v18 = vpop.f32.mrf.mxu0  ;;  %v807_v51 = vadd.f32 %v4624_v48, %v5794_v33  ;;  %v2617_v48 = vrot.slane %v5949_v62, 2  ;;  %v2913_v16 = vor.u32 %v2912_v45, %v2909_v59 }
 0x101   : > { %v798_v58 = vpop.f32.mrf.mxu1  ;;  %v2905_v50 = vor.u32 %v2904_v53, %v2901_v55 }
 0x102   : > { %v5945_v47 = vpop.f32.mrf.mxu0  ;;  %v799_v1 = vadd.f32 %v798_v58, %v5802_v19  ;;  %v2919_v19 = vshll.u32 %v5553_v27, 16 }
 0x103   : > { %v4627_v28 = vpop.f32.mrf.mxu1  ;;  %4802 = vmatmul.mubr.msk.bf16.gmra.mxu1 %vm486_vm2, %v5481_v6  ;;  %v2925_v6 = vshrl.u32 %v5704_v25, 16 }
 0x104   : > { %v4661_v39 = vpop.f32.mrf.mxu0  ;;  %4836 = vmatmul.mubr.msk.bf16.gmra.mxu0 %vm486_vm2, %v2612_v30  ;;  %v820_v30 = vadd.f32 %v4627_v28, %v5816_v20  ;;  %4805 = vmatprep.mubr.msk.bf16.mxu1 %vm486_vm2, %v5512_v22  ;;  %v2616_v28 = vsel %vm2144_vm4, %v2613_v12, %v2615_v40  ;;  %v5006_v22 = vld [vmem:[%s5071_s26 + $0xa0] ss:$0 sps:$4 sm:$0x33]   ;;  %v2921_v59 = vrot.slane %v2919_v19, 3  ;;  %v2937_v19 = vshll.u32 %v5730_v49, 16 }
 0x105   : > { %v5954_v15 = vadd.f32 %v4661_v39, %v804_v26  ;;  %4839 = vmatprep.mubr.msk.bf16.mxu0 %vm486_vm2, %v2614_v42  ;;  %v2916_v26 = vshrl.u32 %v5553_v27, 16  ;;  %v811_v39 = vpop.f32.mrf.mxu1  ;;  %v2928_v42 = vshll.u32 %v5704_v25, 16 }
 0x106   : > { %v1073_v33 = vpop.f32.mrf.mxu0  ;;  %v812_v58 = vadd.f32 %v811_v39, %v5825_v8  ;;  %v2914_v8 = vsel %vm2897_vm7, %v2905_v50, %v2913_v16 }
 0x107   : > { %6633 = vst [vmem:[#allocation15_spill] sm:$0xff] %v5954_v15  ;;  %v5962_v7 = vadd.f32 %v1073_v33, %v796_v0  ;;  %v4628_v0 = vpop.f32.mrf.mxu1  ;;  %v2918_v55 = vrot.slane %v2916_v26, 2  ;;  %v2930_v12 = vrot.slane %v2928_v42, 3  ;;  %v2934_v26 = vshrl.u32 %v5730_v49, 16 }
 0x108   : > { %v4662_v21 = vpop.f32.mrf.mxu0  ;;  %v823_v15 = vadd.f32 %v4628_v0, %v5838_v36  ;;  %v2943_v42 = vshrl.u32 %v5736_v63, 16 }
 0x109   : > { %6634 = vst [vmem:[#allocation16_spill] sm:$0xff] %v5962_v7  ;;  %v5971_v20 = vadd.f32 %v4662_v21, %v807_v51  ;;  %v2618_v7 = vsel %vm2144_vm4, %v2615_v40, %v2617_v48  ;;  %v814_v45 = vpop.f32.mrf.mxu1  ;;  %v2927_v51 = vrot.slane %v2925_v6, 2  ;;  %v2619_v40 = vrot.slane %v5006_v22, 2 }
 0x10a   : > { %v1076_v33 = vpop.f32.mrf.mxu0  ;;  %v815_v39 = vadd.f32 %v814_v45, %v5846_v31  ;;  %v2922_v31 = vor.u32 %v2921_v59, %v2918_v55  ;;  %v2939_v45 = vrot.slane %v2937_v19, 3 }
 0x10b   : > { %v5977_v53 = vadd.f32 %v1076_v33, %v799_v1  ;;  %v4631_v36 = vpop.f32.mrf.mxu1  ;;  %4806 = vmatmul.mubr.msk.bf16.gmra.mxu1 %vm486_vm2, %v5518_v24  ;;  %v2620_v0 = vsel %vm2144_vm4, %v2617_v48, %v2619_v40 }
 0x10c   : > { %v4665_v62 = vpop.f32.mrf.mxu0  ;;  %4840 = vmatmul.mubr.msk.bf16.gmra.mxu0 %vm486_vm2, %v2616_v28  ;;  %v836_v50 = vadd.f32 %v4631_v36, %v5857_v34  ;;  %4849 = vmatprep.mubr.msk.bf16.mxu1 %vm486_vm2, %v2914_v8  ;;  %v2946_v28 = vshll.u32 %v5736_v63, 16  ;;  %v2923_v59 = vsel %vm2897_vm7, %v2913_v16, %v2922_v31 }
 0x10d   : > { %v5982_v21 = vadd.f32 %v4665_v62, %v820_v30  ;;  %4843 = vmatprep.mubr.msk.bf16.mxu0 %vm486_vm2, %v2618_v7  ;;  %v827_v62 = vpop.f32.mrf.mxu1  ;;  %v2931_v7 = vor.u32 %v2930_v12, %v2927_v51 }
 0x10e   : > { %v1089_v1 = vpop.f32.mrf.mxu0  ;;  %v828_v24 = vadd.f32 %v827_v62, %v5866_v10  ;;  %v2948_v36 = vrot.slane %v2946_v28, 3 }
 0x10f   : > { %v5990_v6 = vadd.f32 %v1089_v1, %v812_v58  ;;  %v4632_v33 = vpop.f32.mrf.mxu1  ;;  %v2936_v58 = vrot.slane %v2934_v26, 2  ;;  %v2932_v10 = vsel %vm2897_vm7, %v2922_v31, %v2931_v7  ;;  %v3350_v1 = vrot.slane %v5704_v25, 3 }
 0x110   : > { %v4666_v30 = vpop.f32.mrf.mxu0  ;;  %v839_v8 = vadd.f32 %v4632_v33, %v5873_v3  ;;  %v6635_v33 = vrot.slane %v5553_v27, 3 }
 0x111   : > { %v5996_v22 = vadd.f32 %v4666_v30, %v823_v15  ;;  %v830_v51 = vpop.f32.mrf.mxu1  ;;  %v2945_v15 = vrot.slane %v2943_v42, 2  ;;  %v2940_v16 = vor.u32 %v2939_v45, %v2936_v58  ;;  %v2961_v30 = vshrl.u32 %v5764_v61, 16 }
 0x112   : > { %v1092_v34 = vpop.f32.mrf.mxu0  ;;  %v831_v48 = vadd.f32 %v830_v51, %v5881_v4  ;;  %v2952_v4 = vshrl.u32 %v5760_v23, 16  ;;  %v2964_v42 = vshll.u32 %v5764_v61, 16 }
 0x113   : > { %v6000_v55 = vadd.f32 %v1092_v34, %v815_v39  ;;  %v4635_v3 = vpop.f32.mrf.mxu1  ;;  %4850 = vmatmul.mubr.msk.bf16.vlgmr.msra.gmra.mxu1 %vm486_vm2, %v2923_v59  ;;  %v3351_v34 = vsel %vm3344_vm6, %v6635_v33, %v3350_v1 }
 0x114   : > { %v4669_v12 = vpop.f32.mrf.mxu0  ;;  %4844 = vmatmul.mubr.msk.bf16.gmra.mxu0 %vm486_vm2, %v2620_v0  ;;  %v852_v26 = vadd.f32 %v4635_v3, %v5889_v44  ;;  %4853 = vmatprep.mubr.msk.bf16.mxu1 %vm486_vm2, %v2932_v10  ;;  %v2941_v0 = vsel %vm2897_vm7, %v2931_v7, %v2940_v16  ;;  %v2954_v59 = vrot.slane %v2952_v4, 2  ;;  %v3354_v3 = vrot.slane %v5736_v63, 3 }
 0x115   : > { %v6006_v40 = vadd.f32 %v4669_v12, %v836_v50  ;;  %4887 = vmatprep.mubr.msk.bf16.mxu0 %vm486_vm2, %v5564_v37  ;;  %v2955_v50 = vshll.u32 %v5760_v23, 16  ;;  %v843_v31 = vpop.f32.mrf.mxu1  ;;  %v2949_v37 = vor.u32 %v2948_v36, %v2945_v15  ;;  %v2966_v15 = vrot.slane %v2964_v42, 3 }
 0x116   : > { %v1105_v39 = vpop.f32.mrf.mxu0  ;;  %v844_v28 = vadd.f32 %v843_v31, %v5898_v38  ;;  %v2979_v31 = vshrl.u32 %v5806_v14, 16 }
 0x117   : > { %v6013_v19 = vadd.f32 %v1105_v39, %v828_v24  ;;  %v4636_v44 = vpop.f32.mrf.mxu1  ;;  %v2957_v51 = vrot.slane %v2955_v50, 3  ;;  %v2950_v38 = vsel %vm2897_vm7, %v2940_v16, %v2949_v37  ;;  %v2973_v39 = vshll.u32 %v5798_v52, 16 }
 0x118   : > { %v4670_v62 = vpop.f32.mrf.mxu0  ;;  %v855_v58 = vadd.f32 %v4636_v44, %v5905_v56  ;;  %v3352_v56 = vrot.slane %v5730_v49, 3 }
 0x119   : > { %v6021_v25 = vadd.f32 %v4670_v62, %v839_v8  ;;  %v846_v12 = vpop.f32.mrf.mxu1  ;;  %v2963_v8 = vrot.slane %v2961_v30, 2  ;;  %v2982_v62 = vshll.u32 %v5806_v14, 16 }
 0x11a   : > { %v1108_v24 = vpop.f32.mrf.mxu0  ;;  %v847_v7 = vadd.f32 %v846_v12, %v5913_v41  ;;  %v2958_v41 = vor.u32 %v2957_v51, %v2954_v59  ;;  %v3353_v42 = vsel %vm3344_vm6, %v3350_v1, %v3352_v56 }
 0x11b   : > { %v6028_v45 = vadd.f32 %v1108_v24, %v831_v48  ;;  %v4639_v36 = vpop.f32.mrf.mxu1  ;;  %4854 = vmatmul.mubr.msk.bf16.gmra.mxu1 %vm486_vm2, %v2941_v0  ;;  %v2967_v49 = vor.u32 %v2966_v15, %v2963_v8  ;;  %v2975_v0 = vrot.slane %v2973_v39, 3  ;;  %v2984_v1 = vrot.slane %v2982_v62, 3 }
 0x11c   : > { %v4673_v10 = vpop.f32.mrf.mxu0  ;;  %4888 = vmatmul.mubr.msk.bf16.vlgmr.msra.gmra.mxu0 %vm486_vm2, %v5572_v43  ;;  %v2970_v43 = vshrl.u32 %v5798_v52, 16  ;;  %v868_v16 = vadd.f32 %v4639_v36, %v5921_v9  ;;  %4857 = vmatprep.mubr.msk.bf16.mxu1 %vm486_vm2, %v2950_v38  ;;  %v2959_v59 = vsel %vm2897_vm7, %v2949_v37, %v2958_v41  ;;  %v2988_v36 = vshrl.u32 %v5842_v5, 16 }
 0x11d   : > { %v6034_v27 = vadd.f32 %v4673_v10, %v852_v26  ;;  %4891 = vmatprep.mubr.msk.bf16.mxu0 %vm486_vm2, %v3351_v34  ;;  %v859_v26 = vpop.f32.mrf.mxu1 }
 0x11e   : > { %v1121_v48 = vpop.f32.mrf.mxu0  ;;  %v860_v63 = vadd.f32 %v859_v26, %v5928_v32  ;;  %v2972_v24 = vrot.slane %v2970_v43, 2  ;;  %v2968_v32 = vsel %vm2897_vm7, %v2958_v41, %v2967_v49 }
 0x11f   : > { %v6043_v4 = vadd.f32 %v1121_v48, %v844_v28  ;;  %v4640_v44 = vpop.f32.mrf.mxu1  ;;  %v3355_v28 = vsel %vm3344_vm6, %v3352_v56, %v3354_v3 }
 0x120   : > { %v4674_v50 = vpop.f32.mrf.mxu0  ;;  %v871_v33 = vadd.f32 %v4640_v44, %v5934_v18  ;;  %v3356_v18 = vrot.slane %v5760_v23, 3  ;;  %v2976_v15 = vor.u32 %v2975_v0, %v2972_v24  ;;  %v2997_v23 = vshrl.u32 %v5850_v60, 16 }
 0x121   : > { %v6049_v30 = vadd.f32 %v4674_v50, %v855_v58  ;;  %v862_v51 = vpop.f32.mrf.mxu1  ;;  %v2981_v58 = vrot.slane %v2979_v31, 2  ;;  %v2990_v44 = vrot.slane %v2988_v36, 2  ;;  %v3018_v36 = vshll.u32 %v5885_v46, 16 }
 0x122   : > { %v1124_v9 = vpop.f32.mrf.mxu0  ;;  %v863_v10 = vadd.f32 %v862_v51, %v5945_v47  ;;  %v2991_v47 = vshll.u32 %v5842_v5, 16  ;;  %v3357_v26 = vsel %vm3344_vm6, %v3354_v3, %v3356_v18  ;;  %v2977_v31 = vsel %vm2897_vm7, %v2967_v49, %v2976_v15 }
 0x123   : > { %v6054_v34 = vadd.f32 %v1124_v9, %v847_v7  ;;  %v4643_v8 = vpop.f32.mrf.mxu1  ;;  %4858 = vmatmul.mubr.msk.bf16.gmra.mxu1 %vm486_vm2, %v2959_v59  ;;  %v3358_v7 = vrot.slane %v5764_v61, 3  ;;  %v2985_v39 = vor.u32 %v2984_v1, %v2981_v58  ;;  %v3006_v58 = vshrl.u32 %v5877_v2, 16 }
 0x124   : > { %v4677_v12 = vpop.f32.mrf.mxu0  ;;  %4892 = vmatmul.mubr.msk.bf16.gmra.mxu0 %vm486_vm2, %v3353_v42  ;;  %4861 = vmatprep.mubr.msk.bf16.mxu1 %vm486_vm2, %v2968_v32  ;;  %v2993_v9 = vrot.slane %v2991_v47, 3  ;;  %v3362_v32 = vrot.slane %v5806_v14, 3  ;;  %v3009_v1 = vshll.u32 %v5877_v2, 16 }
 0x125   : > { %v6060_v38 = vadd.f32 %v4677_v12, %v868_v16  ;;  %4895 = vmatprep.mubr.msk.bf16.mxu0 %vm486_vm2, %v3355_v28  ;;  %v875_v48 = vpop.f32.mrf.mxu1  ;;  %v3000_v16 = vshll.u32 %v5850_v60, 16  ;;  %v3359_v62 = vsel %vm3344_vm6, %v3356_v18, %v3358_v7  ;;  %v2986_v0 = vsel %vm2897_vm7, %v2976_v15, %v2985_v39 }
 0x126   : > { %v1137_v37 = vpop.f32.mrf.mxu0  ;;  %v876_v59 = vadd.f32 %v875_v48, %v5792_v11  ;;  %v2994_v11 = vor.u32 %v2993_v9, %v2990_v44  ;;  %v3015_v15 = vshrl.u32 %v5885_v46, 16 }
 0x127   : > { %v6066_v56 = vadd.f32 %v1137_v37, %v860_v63  ;;  %v4644_v61 = vpop.f32.mrf.mxu1  ;;  %v884_v63 = vadd.f32 %v4643_v8, %v5777_v57  ;;  %v3002_v3 = vrot.slane %v3000_v16, 3  ;;  %v3360_v57 = vrot.slane %v5798_v52, 3 }
 0x128   : > { %v4678_v43 = vpop.f32.mrf.mxu0  ;;  %v3008_v16 = vrot.slane %v3006_v58, 2  ;;  %v3017_v44 = vrot.slane %v3015_v15, 2 }
 0x129   : > { %v6073_v41 = vadd.f32 %v4678_v43, %v871_v33  ;;  %v878_v28 = vpop.f32.mrf.mxu1  ;;  %v2999_v33 = vrot.slane %v2997_v23, 2  ;;  %v3361_v48 = vsel %vm3344_vm6, %v3358_v7, %v3360_v57  ;;  %v3363_v23 = vsel %vm3344_vm6, %v3360_v57, %v3362_v32 }
 0x12a   : > { %v1140_v50 = vpop.f32.mrf.mxu0  ;;  %v879_v14 = vadd.f32 %v878_v28, %v5814_v13  ;;  %v3020_v7 = vrot.slane %v3018_v36, 3 }
 0x12b   : > { %v6079_v42 = vadd.f32 %v1140_v50, %v863_v10  ;;  %v4647_v49 = vpop.f32.mrf.mxu1  ;;  %4862 = vmatmul.mubr.msk.bf16.gmra.mxu1 %vm486_vm2, %v2977_v31  ;;  %v887_v10 = vadd.f32 %v4644_v61, %v5800_v17  ;;  %v3003_v52 = vor.u32 %v3002_v3, %v2999_v33  ;;  %v2995_v31 = vsel %vm2897_vm7, %v2985_v39, %v2994_v11  ;;  %v6636_v3 = vld [vmem:[#allocation2_spill] sm:$0xff] }
 0x12c   : > { %v4681_v24 = vpop.f32.mrf.mxu0  ;;  %4896 = vmatmul.mubr.msk.bf16.gmra.mxu0 %vm486_vm2, %v3357_v26  ;;  %4865 = vmatprep.mubr.msk.bf16.mxu1 %vm486_vm2, %v2986_v0  ;;  %v3011_v26 = vrot.slane %v3009_v1, 3  ;;  %v900_v61 = vadd.f32 %v4647_v49, %v5821_v29  ;;  %v3364_v29 = vrot.slane %v5842_v5, 3  ;;  %v3366_v33 = vrot.slane %v5850_v60, 3 }
 0x12d   : > { %v6084_v51 = vadd.f32 %v4681_v24, %v884_v63  ;;  %4899 = vmatprep.mubr.msk.bf16.mxu0 %vm486_vm2, %v3359_v62  ;;  %v891_v8 = vpop.f32.mrf.mxu1  ;;  %v3004_v13 = vsel %vm2897_vm7, %v2994_v11, %v3003_v52  ;;  %v3021_v5 = vor.u32 %v3020_v7, %v3017_v44  ;;  %v6641_v7 = vld [vmem:[#allocation5_spill] sm:$0xff] }
 0x12e   : > { %v1153_v12 = vpop.f32.mrf.mxu0  ;;  %v892_v9 = vadd.f32 %v891_v8, %v5836_v35  ;;  %v3012_v0 = vor.u32 %v3011_v26, %v3008_v16  ;;  %v6637_v35 = vld [vmem:[#allocation10_spill] sm:$0xff]  ;;  %v3365_v36 = vsel %vm3344_vm6, %v3362_v32, %v3364_v29 }
 0x12f   : > { %v6093_v18 = vadd.f32 %v1153_v12, %v876_v59  ;;  %v4648_v43 = vpop.f32.mrf.mxu1  ;;  %v3024_v49 = vshrl.u32 %v6637_v35, 16  ;;  %v3027_v12 = vshll.u32 %v6637_v35, 16 }
 0x130   : > { %v4682_v37 = vpop.f32.mrf.mxu0  ;;  %v903_v59 = vadd.f32 %v4648_v43, %v6636_v3  ;;  %v3013_v43 = vsel %vm2897_vm7, %v3003_v52, %v3012_v0  ;;  %v3368_v52 = vrot.slane %v5877_v2, 3  ;;  %v3370_v3 = vrot.slane %v5885_v46, 3  ;;  %v6644_v46 = vld [vmem:[#allocation7_spill] sm:$0xff] }
 0x131   : > { %v6099_v47 = vadd.f32 %v4682_v37, %v887_v10  ;;  %v894_v62 = vpop.f32.mrf.mxu1  ;;  %v6638_v10 = vld [vmem:[#allocation12_spill] sm:$0xff]  ;;  %v6639_v37 = vld [vmem:[#allocation3_spill] sm:$0xff] }
 0x132   : > { %v1156_v17 = vpop.f32.mrf.mxu0  ;;  %v3033_v11 = vshrl.u32 %v6638_v10, 16  ;;  %v3036_v8 = vshll.u32 %v6638_v10, 16  ;;  %v895_v15 = vadd.f32 %v894_v62, %v6639_v37  ;;  %v3022_v62 = vsel %vm2897_vm7, %v3012_v0, %v3021_v5  ;;  %v6643_v37 = vld [vmem:[#allocation14_spill] sm:$0xff] }
 0x133   : > { %v6104_v50 = vadd.f32 %v1156_v17, %v879_v14  ;;  %v4651_v24 = vpop.f32.mrf.mxu1  ;;  %4866 = vmatmul.mubr.msk.bf16.gmra.mxu1 %vm486_vm2, %v2995_v31  ;;  %v3367_v17 = vsel %vm3344_vm6, %v3364_v29, %v3366_v33  ;;  %v3029_v31 = vrot.slane %v3027_v12, 3  ;;  %v3045_v0 = vshll.u32 %v5943_v54, 16 }
 0x134   : > { %v4685_v63 = vpop.f32.mrf.mxu0  ;;  %4900 = vmatmul.mubr.msk.bf16.gmra.mxu0 %vm486_vm2, %v3361_v48  ;;  %4869 = vmatprep.mubr.msk.bf16.mxu1 %vm486_vm2, %v3004_v13  ;;  %v3035_v44 = vrot.slane %v3033_v11, 2  ;;  %v3038_v32 = vrot.slane %v3036_v8, 3 }
 0x135   : > { %v6110_v28 = vadd.f32 %v4685_v63, %v900_v61  ;;  %4903 = vmatprep.mubr.msk.bf16.mxu0 %vm486_vm2, %v3363_v23  ;;  %v907_v58 = vpop.f32.mrf.mxu1  ;;  %v6640_v23 = vld [vmem:[#allocation4_spill] sm:$0xff]  ;;  %v3026_v61 = vrot.slane %v3024_v49, 2  ;;  %v6642_v49 = vld [vmem:[#allocation6_spill] sm:$0xff] }
 0x136   : > { %v1169_v39 = vpop.f32.mrf.mxu0  ;;  %v916_v16 = vadd.f32 %v4651_v24, %v6640_v23  ;;  %v3039_v8 = vor.u32 %v3038_v32, %v3035_v44 }
 0x137   : > { %v6117_v57 = vadd.f32 %v1169_v39, %v892_v9  ;;  %v4652_v14 = vpop.f32.mrf.mxu1  ;;  %v908_v9 = vadd.f32 %v907_v58, %v6641_v7  ;;  %v3030_v58 = vor.u32 %v3029_v31, %v3026_v61  ;;  %v6156_v61 = vld [vmem:[%s5071_s26 + $0xa0] ss:$0 sps:$4 sm:$0x77]   ;;  %v6645_v31 = vld [vmem:[#allocation8_spill] sm:$0xff] }
 0x138   : > { %v4686_v1 = vpop.f32.mrf.mxu0  ;;  %v919_v12 = vadd.f32 %v4652_v14, %v6642_v49 }
 0x139   : > { %v6125_v60 = vadd.f32 %v4686_v1, %v903_v59  ;;  %v910_v63 = vpop.f32.mrf.mxu1  ;;  %v3042_v59 = vshrl.u32 %v5943_v54, 16  ;;  %v3031_v7 = vsel %vm2897_vm7, %v3021_v5, %v3030_v58 }
 0x13a   : > { %v1172_v48 = vpop.f32.mrf.mxu0 }
 0x13b   : > { %v6131_v26 = vadd.f32 %v1172_v48, %v895_v15  ;;  %v4655_v29 = vpop.f32.mrf.mxu1  ;;  %4870 = vmatmul.mubr.msk.bf16.gmra.mxu1 %vm486_vm2, %v3013_v43  ;;  %v3051_v15 = vshrl.u32 %v6643_v37, 16  ;;  %v911_v48 = vadd.f32 %v910_v63, %v6644_v46  ;;  %v3374_v46 = vrot.slane %v6638_v10, 3 }
 0x13c   : > { %v4689_v13 = vpop.f32.mrf.mxu0  ;;  %4904 = vmatmul.mubr.msk.bf16.gmra.mxu0 %vm486_vm2, %v3365_v36  ;;  %4873 = vmatprep.mubr.msk.bf16.mxu1 %vm486_vm2, %v3022_v62  ;;  %v3054_v36 = vshll.u32 %v6643_v37, 16  ;;  %v3047_v62 = vrot.slane %v3045_v0, 3  ;;  %v932_v44 = vadd.f32 %v4655_v29, %v6645_v31  ;;  %v3372_v29 = vrot.slane %v6637_v35, 3 }
 0x13d   : > { %v6136_v39 = vadd.f32 %v4689_v13, %v916_v16  ;;  %4907 = vmatprep.mubr.msk.bf16.mxu0 %vm486_vm2, %v3367_v17  ;;  %v923_v11 = vpop.f32.mrf.mxu1  ;;  %v3369_v17 = vsel %vm3344_vm6, %v3366_v33, %v3368_v52  ;;  %v3371_v16 = vsel %vm3344_vm6, %v3368_v52, %v3370_v3  ;;  %v3044_v13 = vrot.slane %v3042_v59, 2 }
 0x13e   : > { %v1185_v24 = vpop.f32.mrf.mxu0  ;;  %v3040_v33 = vsel %vm2897_vm7, %v3030_v58, %v3039_v8  ;;  %v3056_v49 = vrot.slane %v3054_v36, 3  ;;  %v6647_v58 = vld [vmem:[#allocation11_spill] sm:$0xff] }
 0x13f   : > { %v6145_v1 = vadd.f32 %v1185_v24, %v908_v9  ;;  %v4656_v14 = vpop.f32.mrf.mxu1  ;;  %v3053_v24 = vrot.slane %v3051_v15, 2  ;;  %v6648_v36 = vld [vmem:[#allocation15_spill] sm:$0xff] }
 0x140   : > { %v4690_v2 = vpop.f32.mrf.mxu0  ;;  %v935_v15 = vadd.f32 %v4656_v14, %v6647_v58 }
 0x141   : > { %v6151_v43 = vadd.f32 %v4690_v2, %v919_v12  ;;  %v926_v9 = vpop.f32.mrf.mxu1  ;;  %v6646_v12 = vld [vmem:[#allocation9_spill] sm:$0xff]  ;;  %v3048_v2 = vor.u32 %v3047_v62, %v3044_v13  ;;  %v3057_v31 = vor.u32 %v3056_v49, %v3053_v24  ;;  %v6650_v13 = vld [vmem:[#allocation16_spill] sm:$0xff] }
 0x142   : > { %v1188_v23 = vpop.f32.mrf.mxu0  ;;  %v924_v52 = vadd.f32 %v923_v11, %v6646_v12 }
 0x143   : > { %v6159_v32 = vadd.f32 %v1188_v23, %v911_v48  ;;  %v4699_v0 = vpop.f32.mrf.mxu1  ;;  %4874 = vmatmul.mubr.msk.bf16.gmra.mxu1 %vm486_vm2, %v3031_v7  ;;  %v3060_v48 = vshrl.u32 %v6156_v61, 16  ;;  %v3063_v23 = vshll.u32 %v6156_v61, 16 }
 0x144   : > { %v4693_v63 = vpop.f32.mrf.mxu0  ;;  %4908 = vmatmul.mubr.msk.bf16.gmra.mxu0 %vm486_vm2, %v3369_v17  ;;  %v1657_v17 = vadd.f32 %v4699_v0, %v6648_v36  ;;  %4877 = vmatprep.mubr.msk.bf16.mxu1 %vm486_vm2, %v3040_v33  ;;  %v3375_v0 = vsel %vm3344_vm6, %v3372_v29, %v3374_v46 }
 0x145   : > { %v6165_v59 = vadd.f32 %v4693_v63, %v932_v44  ;;  %4911 = vmatprep.mubr.msk.bf16.mxu0 %vm486_vm2, %v3371_v16  ;;  %v1512_v35 = vpop.f32.mrf.mxu1  ;;  %v6649_v44 = vld [vmem:[#allocation13_spill] sm:$0xff]  ;;  %v3373_v63 = vsel %vm3344_vm6, %v3370_v3, %v3372_v29  ;;  %v3062_v58 = vrot.slane %v3060_v48, 2  ;;  %v3065_v24 = vrot.slane %v3063_v23, 3 }
 0x146   : > { %v1201_v5 = vpop.f32.mrf.mxu0  ;;  %v927_v7 = vadd.f32 %v926_v9, %v6649_v44  ;;  %v1655_v62 = vadd.f32 %v1512_v35, %v6650_v13  ;;  %v3378_v48 = vrot.slane %v6643_v37, 3 }
 0x147   : > { %v6174_v11 = vadd.f32 %v1201_v5, %v924_v52  ;;  %v4700_v14 = vpop.f32.mrf.mxu1  ;;  %v3049_v52 = vsel %vm2897_vm7, %v3039_v8, %v3048_v2  ;;  %v3376_v8 = vrot.slane %v5943_v54, 3 }
 0x148   : > { %v4694_v16 = vpop.f32.mrf.mxu0  ;;  %v1658_v33 = vadd.f32 %v4700_v14, %v5971_v20 }
 0x149   : > { %v6180_v10 = vadd.f32 %v4694_v16, %v935_v15  ;;  %v1515_v49 = vpop.f32.mrf.mxu1  ;;  %v3058_v15 = vsel %vm2897_vm7, %v3048_v2, %v3057_v31  ;;  %v3066_v2 = vor.u32 %v3065_v24, %v3062_v58  ;;  %v3377_v54 = vsel %vm3344_vm6, %v3374_v46, %v3376_v8 }
 0x14a   : > { %v1204_v12 = vpop.f32.mrf.mxu0  ;;  %v1656_v3 = vadd.f32 %v1515_v49, %v5977_v53  ;;  %v3380_v46 = vrot.slane %v6156_v61, 3 }
 0x14b   : > { %v6186_v5 = vadd.f32 %v1204_v12, %v927_v7  ;;  %v4703_v29 = vpop.f32.mrf.mxu1  ;;  %4878 = vmatmul.mubr.msk.bf16.gmra.mxu1 %vm486_vm2, %v3049_v52 }
 0x14c   : > { %v4737_v9 = vpop.f32.mrf.mxu0  ;;  %4912 = vmatmul.mubr.msk.bf16.gmra.mxu0 %vm486_vm2, %v3373_v63  ;;  %v1661_v23 = vadd.f32 %v4703_v29, %v5982_v21  ;;  %4881 = vmatprep.mubr.msk.bf16.mxu1 %vm486_vm2, %v3058_v15  ;;  %v3379_v63 = vsel %vm3344_vm6, %v3376_v8, %v3378_v48 }
 0x14d   : > { %v6191_v36 = vadd.f32 %v4737_v9, %v1657_v17  ;;  %4915 = vmatprep.mubr.msk.bf16.mxu0 %vm486_vm2, %v3375_v0  ;;  %v1528_v53 = vpop.f32.mrf.mxu1 }
 0x14e   : > { %v1959_v20 = vpop.f32.mrf.mxu0  ;;  %v1659_v16 = vadd.f32 %v1528_v53, %v5990_v6 }
 0x14f   : > { %v6198_v35 = vadd.f32 %v1959_v20, %v1655_v62  ;;  %v4704_v7 = vpop.f32.mrf.mxu1  ;;  %v3067_v62 = vsel %vm2897_vm7, %v3057_v31, %v3066_v2 }
 0x150   : > { %v4738_v17 = vpop.f32.mrf.mxu0  ;;  %v1662_v37 = vadd.f32 %v4704_v7, %v5996_v22 }
 0x151   : > { %v6202_v44 = vadd.f32 %v4738_v17, %v1658_v33  ;;  %v1531_v14 = vpop.f32.mrf.mxu1 }
 0x152   : > { %v1962_v13 = vpop.f32.mrf.mxu0  ;;  %v1660_v6 = vadd.f32 %v1531_v14, %v6000_v55  ;;  %v3381_v55 = vsel %vm3344_vm6, %v3378_v48, %v3380_v46 }
 0x153   : > { %v6207_v21 = vadd.f32 %v1962_v13, %v1656_v3  ;;  %v4707_v0 = vpop.f32.mrf.mxu1  ;;  %4882 = vmatmul.mubr.msk.bf16.gmra.mxu1 %vm486_vm2, %v3067_v62 }
 0x154   : > { %v4741_v12 = vpop.f32.mrf.mxu0  ;;  %4916 = vmatmul.mubr.msk.bf16.gmra.mxu0 %vm486_vm2, %v3377_v54  ;;  %v1665_v33 = vadd.f32 %v4707_v0, %v6006_v40 }
 0x155   : > { %v6212_v52 = vadd.f32 %v4741_v12, %v1661_v23  ;;  %4919 = vmatprep.mubr.msk.bf16.mxu0 %vm486_vm2, %v3379_v63  ;;  %v1544_v31 = vpop.f32.mrf.mxu1 }
 0x156   : > { %v1975_v22 = vpop.f32.mrf.mxu0  ;;  %v1663_v49 = vadd.f32 %v1544_v31, %v6013_v19 }
 0x157   : > { %v6218_v58 = vadd.f32 %v1975_v22, %v1659_v16  ;;  %v4708_v15 = vpop.f32.mrf.mxu1 }
 0x158   : > { %v4742_v24 = vpop.f32.mrf.mxu0  ;;  %v1666_v61 = vadd.f32 %v4708_v15, %v6021_v25 }
 0x159   : > { %v6221_v9 = vadd.f32 %v4742_v24, %v1662_v37  ;;  %v1547_v29 = vpop.f32.mrf.mxu1 }
 0x15a   : > { %v1978_v3 = vpop.f32.mrf.mxu0  ;;  %v1664_v40 = vadd.f32 %v1547_v29, %v6028_v45 }
 0x15b   : > { %v6225_v8 = vadd.f32 %v1978_v3, %v1660_v6  ;;  %v4711_v2 = vpop.f32.mrf.mxu1 }
 0x15c   : > { %v4745_v20 = vpop.f32.mrf.mxu0  ;;  %4920 = vmatmul.mubr.msk.bf16.gmra.mxu0 %vm486_vm2, %v3381_v55  ;;  %v1669_v53 = vadd.f32 %v4711_v2, %v6034_v27 }
 0x15d   : > { %v6229_v23 = vadd.f32 %v4745_v20, %v1665_v33  ;;  %v1560_v48 = vpop.f32.mrf.mxu1 }
 0x15e   : > { %v1991_v19 = vpop.f32.mrf.mxu0  ;;  %v1667_v25 = vadd.f32 %v1560_v48, %v6043_v4 }
 0x15f   : > { %v6232_v17 = vadd.f32 %v1991_v19, %v1663_v49  ;;  %v4712_v7 = vpop.f32.mrf.mxu1 }
 0x160   : > { %v4746_v16 = vpop.f32.mrf.mxu0  ;;  %v1670_v63 = vadd.f32 %v4712_v7, %v6049_v30 }
 0x161   : > { %v6235_v54 = vadd.f32 %v4746_v16, %v1666_v61  ;;  %v1563_v45 = vpop.f32.mrf.mxu1 }
 0x162   : > { %v1994_v13 = vpop.f32.mrf.mxu0  ;;  %v1668_v14 = vadd.f32 %v1563_v45, %v6054_v34 }
 0x163   : > { %v6238_v37 = vadd.f32 %v1994_v13, %v1664_v40  ;;  %v4715_v27 = vpop.f32.mrf.mxu1 }
 0x164   : > { %v4749_v62 = vpop.f32.mrf.mxu0  ;;  %v1673_v46 = vadd.f32 %v4715_v27, %v6060_v38 }
 0x165   : > { %v6241_v12 = vadd.f32 %v4749_v62, %v1669_v53  ;;  %v1576_v4 = vpop.f32.mrf.mxu1 }
 0x166   : > { %v2007_v6 = vpop.f32.mrf.mxu0  ;;  %v1671_v33 = vadd.f32 %v1576_v4, %v6066_v56 }
 0x167   : > { %v6244_v0 = vadd.f32 %v2007_v6, %v1667_v25  ;;  %v4716_v30 = vpop.f32.mrf.mxu1 }
 0x168   : > { %v4750_v22 = vpop.f32.mrf.mxu0  ;;  %v1674_v49 = vadd.f32 %v4716_v30, %v6073_v41 }
 0x169   : > { %v6247_v31 = vadd.f32 %v4750_v22, %v1670_v63  ;;  %v1579_v34 = vpop.f32.mrf.mxu1 }
 0x16a   : > { %v2010_v24 = vpop.f32.mrf.mxu0  ;;  %v1672_v3 = vadd.f32 %v1579_v34, %v6079_v42 }
 0x16b   : > { %v6250_v55 = vadd.f32 %v2010_v24, %v1668_v14  ;;  %v4719_v38 = vpop.f32.mrf.mxu1 }
 0x16c   : > { %v4753_v15 = vpop.f32.mrf.mxu0  ;;  %v1677_v20 = vadd.f32 %v4719_v38, %v6084_v51 }
 0x16d   : > { %v6253_v61 = vadd.f32 %v4753_v15, %v1673_v46  ;;  %v1592_v56 = vpop.f32.mrf.mxu1 }
 0x16e   : > { %v2023_v29 = vpop.f32.mrf.mxu0  ;;  %v1675_v19 = vadd.f32 %v1592_v56, %v6093_v18 }
 0x16f   : > { %v6256_v40 = vadd.f32 %v2023_v29, %v1671_v33  ;;  %v4720_v41 = vpop.f32.mrf.mxu1 }
 0x170   : > { %v4754_v2 = vpop.f32.mrf.mxu0  ;;  %v1678_v16 = vadd.f32 %v4720_v41, %v6099_v47 }
 0x171   : > { %v6259_v53 = vadd.f32 %v4754_v2, %v1674_v49  ;;  %v1595_v42 = vpop.f32.mrf.mxu1 }
 0x172   : > { %v2026_v48 = vpop.f32.mrf.mxu0  ;;  %v1676_v13 = vadd.f32 %v1595_v42, %v6104_v50 }
 0x173   : > { %v6262_v25 = vadd.f32 %v2026_v48, %v1672_v3  ;;  %v4723_v51 = vpop.f32.mrf.mxu1 }
 0x174   : > { %v4757_v7 = vpop.f32.mrf.mxu0  ;;  %v1681_v62 = vadd.f32 %v4723_v51, %v6110_v28 }
 0x175   : > { %v6265_v63 = vadd.f32 %v4757_v7, %v1677_v20  ;;  %v1608_v18 = vpop.f32.mrf.mxu1 }
 0x176   : > { %v2039_v45 = vpop.f32.mrf.mxu0  ;;  %v1679_v6 = vadd.f32 %v1608_v18, %v6117_v57 }
 0x177   : > { %v6268_v14 = vadd.f32 %v2039_v45, %v1675_v19  ;;  %v4724_v47 = vpop.f32.mrf.mxu1 }
 0x178   : > { %v4758_v27 = vpop.f32.mrf.mxu0  ;;  %v1682_v22 = vadd.f32 %v4724_v47, %v6125_v60 }
 0x179   : > { %v6271_v46 = vadd.f32 %v4758_v27, %v1678_v16  ;;  %v1611_v50 = vpop.f32.mrf.mxu1 }
 0x17a   : > { %v2042_v4 = vpop.f32.mrf.mxu0  ;;  %v1680_v24 = vadd.f32 %v1611_v50, %v6131_v26 }
 0x17b   : > { %v6274_v33 = vadd.f32 %v2042_v4, %v1676_v13  ;;  %v4727_v28 = vpop.f32.mrf.mxu1 }
 0x17c   : > { %v4761_v30 = vpop.f32.mrf.mxu0  ;;  %v1685_v15 = vadd.f32 %v4727_v28, %v6136_v39 }
 0x17d   : > { %v6277_v49 = vadd.f32 %v4761_v30, %v1681_v62  ;;  %v1624_v57 = vpop.f32.mrf.mxu1 }
 0x17e   : > { %v2055_v34 = vpop.f32.mrf.mxu0  ;;  %v1683_v29 = vadd.f32 %v1624_v57, %v6145_v1 }
 0x17f   : > { %v6280_v3 = vadd.f32 %v2055_v34, %v1679_v6  ;;  %v4728_v60 = vpop.f32.mrf.mxu1 }
 0x180   : > { %v4762_v38 = vpop.f32.mrf.mxu0  ;;  %v1686_v2 = vadd.f32 %v4728_v60, %v6151_v43 }
 0x181   : > { %v6283_v20 = vadd.f32 %v4762_v38, %v1682_v22  ;;  %v1627_v26 = vpop.f32.mrf.mxu1 }
 0x182   : > { %v2058_v56 = vpop.f32.mrf.mxu0  ;;  %v1684_v48 = vadd.f32 %v1627_v26, %v6159_v32 }
 0x183   : > { %v6286_v19 = vadd.f32 %v2058_v56, %v1680_v24  ;;  %v4731_v39 = vpop.f32.mrf.mxu1 }
 0x184   : > { %v4765_v41 = vpop.f32.mrf.mxu0  ;;  %v1689_v7 = vadd.f32 %v4731_v39, %v6165_v59 }
 0x185   : > { %v6289_v16 = vadd.f32 %v4765_v41, %v1685_v15  ;;  %v1640_v1 = vpop.f32.mrf.mxu1 }
 0x186   : > { %v2071_v42 = vpop.f32.mrf.mxu0  ;;  %v1687_v45 = vadd.f32 %v1640_v1, %v6174_v11 }
 0x187   : > { %v6292_v13 = vadd.f32 %v2071_v42, %v1683_v29  ;;  %v4732_v43 = vpop.f32.mrf.mxu1 }
 0x188   : > { %v4766_v51 = vpop.f32.mrf.mxu0  ;;  %v1690_v27 = vadd.f32 %v4732_v43, %v6180_v10 }
 0x189   : > { %v6295_v62 = vadd.f32 %v4766_v51, %v1686_v2  ;;  %v1643_v32 = vpop.f32.mrf.mxu1 }
 0x18a   : > { %v2074_v18 = vpop.f32.mrf.mxu0  ;;  %v1688_v4 = vadd.f32 %v1643_v32, %v6186_v5 }
 0x18b   : > { %v6298_v6 = vadd.f32 %v2074_v18, %v1684_v48  ;;  %v4775_v59 = vpop.f32.mrf.mxu1 }
 0x18c   : > { %v4769_v47 = vpop.f32.mrf.mxu0  ;;  %v2418_v30 = vadd.f32 %v4775_v59, %v6191_v36 }
 0x18d   : > { %v6301_v22 = vadd.f32 %v4769_v47, %v1689_v7  ;;  %v2273_v11 = vpop.f32.mrf.mxu1 }
 0x18e   : > { %v2087_v50 = vpop.f32.mrf.mxu0  ;;  %v2416_v34 = vadd.f32 %v2273_v11, %v6198_v35 }
 0x18f   : > { %v6304_v24 = vadd.f32 %v2087_v50, %v1687_v45  ;;  %v4776_v10 = vpop.f32.mrf.mxu1 }
 0x190   : > { %v4770_v28 = vpop.f32.mrf.mxu0  ;;  %v2419_v38 = vadd.f32 %v4776_v10, %v6202_v44 }
 0x191   : > { %v6307_v15 = vadd.f32 %v4770_v28, %v1690_v27  ;;  %v2276_v5 = vpop.f32.mrf.mxu1 }
 0x192   : > { %v2090_v57 = vpop.f32.mrf.mxu0  ;;  %v2417_v56 = vadd.f32 %v2276_v5, %v6207_v21 }
 0x193   : > { %v6310_v29 = vadd.f32 %v2090_v57, %v1688_v4  ;;  %v4779_v36 = vpop.f32.mrf.mxu1 }
 0x194   : > { %v4813_v60 = vpop.f32.mrf.mxu0  ;;  %v2422_v41 = vadd.f32 %v4779_v36, %v6212_v52 }
 0x195   : > { %v6313_v2 = vadd.f32 %v4813_v60, %v2418_v30  ;;  %v2289_v35 = vpop.f32.mrf.mxu1 }
 0x196   : > { %v2712_v26 = vpop.f32.mrf.mxu0  ;;  %v2420_v42 = vadd.f32 %v2289_v35, %v6218_v58 }
 0x197   : > { %v6316_v48 = vadd.f32 %v2712_v26, %v2416_v34  ;;  %v4780_v44 = vpop.f32.mrf.mxu1 }
 0x198   : > { %v4814_v39 = vpop.f32.mrf.mxu0  ;;  %v2423_v51 = vadd.f32 %v4780_v44, %v6221_v9 }
 0x199   : > { %v6319_v7 = vadd.f32 %v4814_v39, %v2419_v38  ;;  %v2292_v21 = vpop.f32.mrf.mxu1 }
 0x19a   : > { %v2715_v1 = vpop.f32.mrf.mxu0  ;;  %v2421_v18 = vadd.f32 %v2292_v21, %v6225_v8 }
 0x19b   : > { %v6322_v45 = vadd.f32 %v2715_v1, %v2417_v56  ;;  %v4783_v52 = vpop.f32.mrf.mxu1 }
 0x19c   : > { %v4817_v43 = vpop.f32.mrf.mxu0  ;;  %v2426_v47 = vadd.f32 %v4783_v52, %v6229_v23 }
 0x19d   : > { %v6325_v27 = vadd.f32 %v4817_v43, %v2422_v41  ;;  %v2305_v58 = vpop.f32.mrf.mxu1 }
 0x19e   : > { %v2728_v32 = vpop.f32.mrf.mxu0  ;;  %v2424_v50 = vadd.f32 %v2305_v58, %v6232_v17 }
 0x19f   : > { %v6328_v4 = vadd.f32 %v2728_v32, %v2420_v42  ;;  %v4784_v9 = vpop.f32.mrf.mxu1 }
 0x1a0   : > { %v4818_v59 = vpop.f32.mrf.mxu0  ;;  %v2427_v28 = vadd.f32 %v4784_v9, %v6235_v54 }
 0x1a1   : > { %v6331_v30 = vadd.f32 %v4818_v59, %v2423_v51  ;;  %v2308_v8 = vpop.f32.mrf.mxu1 }
 0x1a2   : > { %v2731_v11 = vpop.f32.mrf.mxu0  ;;  %v2425_v57 = vadd.f32 %v2308_v8, %v6238_v37 }
 0x1a3   : > { %v6334_v34 = vadd.f32 %v2731_v11, %v2421_v18  ;;  %v4787_v23 = vpop.f32.mrf.mxu1 }
 0x1a4   : > { %v4821_v10 = vpop.f32.mrf.mxu0  ;;  %v2430_v60 = vadd.f32 %v4787_v23, %v6241_v12 }
 0x1a5   : > { %v6337_v38 = vadd.f32 %v4821_v10, %v2426_v47  ;;  %v2321_v17 = vpop.f32.mrf.mxu1 }
 0x1a6   : > { %v2744_v5 = vpop.f32.mrf.mxu0  ;;  %v2428_v26 = vadd.f32 %v2321_v17, %v6244_v0 }
 0x1a7   : > { %v6340_v56 = vadd.f32 %v2744_v5, %v2424_v50  ;;  %v4788_v54 = vpop.f32.mrf.mxu1 }
 0x1a8   : > { %v4822_v36 = vpop.f32.mrf.mxu0  ;;  %v2431_v39 = vadd.f32 %v4788_v54, %v6247_v31 }
 0x1a9   : > { %v6343_v41 = vadd.f32 %v4822_v36, %v2427_v28  ;;  %v2324_v37 = vpop.f32.mrf.mxu1 }
 0x1aa   : > { %v2747_v35 = vpop.f32.mrf.mxu0  ;;  %v2429_v1 = vadd.f32 %v2324_v37, %v6250_v55 }
 0x1ab   : > { %v6346_v42 = vadd.f32 %v2747_v35, %v2425_v57  ;;  %v4791_v12 = vpop.f32.mrf.mxu1  ;;  %v6372_v35 = vpop.permute.xlu0 %3690 }
 0x1ac   : > { %v4825_v44 = vpop.f32.mrf.mxu0  ;;  %v2434_v43 = vadd.f32 %v4791_v12, %v6253_v61 }
 0x1ad   : > { %v6349_v51 = vadd.f32 %v4825_v44, %v2430_v60  ;;  %v2337_v0 = vpop.f32.mrf.mxu1 }
 0x1ae   : > { %v2760_v21 = vpop.f32.mrf.mxu0  ;;  %v2432_v32 = vadd.f32 %v2337_v0, %v6256_v40 }
 0x1af   : > { %v6352_v18 = vadd.f32 %v2760_v21, %v2428_v26  ;;  %v4792_v31 = vpop.f32.mrf.mxu1 }
 0x1b0   : > { %v4826_v52 = vpop.f32.mrf.mxu0  ;;  %v2435_v59 = vadd.f32 %v4792_v31, %v6259_v53  ;;  %v6385_v31 = vpop.permute.xlu0 %3695 }
 0x1b1   : > { %v6355_v47 = vadd.f32 %v4826_v52, %v2431_v39  ;;  %v2340_v55 = vpop.f32.mrf.mxu1 }
 0x1b2   : > { %v2763_v58 = vpop.f32.mrf.mxu0  ;;  %v2433_v11 = vadd.f32 %v2340_v55, %v6262_v25 }
 0x1b3   : > { %v6358_v50 = vadd.f32 %v2763_v58, %v2429_v1  ;;  %v4795_v61 = vpop.f32.mrf.mxu1  ;;  %v6377_v1 = vpop.permute.xlu1 %3700 }
 0x1b4   : > { %v4829_v9 = vpop.f32.mrf.mxu0  ;;  %v2438_v10 = vadd.f32 %v4795_v61, %v6265_v63 }
 0x1b5   : > { %v6361_v28 = vadd.f32 %v4829_v9, %v2434_v43  ;;  %v2353_v40 = vpop.f32.mrf.mxu1 }
 0x1b6   : > { %v2776_v8 = vpop.f32.mrf.mxu0  ;;  %v2436_v5 = vadd.f32 %v2353_v40, %v6268_v14 }
 0x1b7   : > { %v6364_v57 = vadd.f32 %v2776_v8, %v2432_v32  ;;  %v4796_v53 = vpop.f32.mrf.mxu1  ;;  %v6390_v9 = vpop.permute.xlu1 %3705 }
 0x1b8   : > { %v4830_v23 = vpop.f32.mrf.mxu0  ;;  %v2439_v36 = vadd.f32 %v4796_v53, %v6271_v46 }
 0x1b9   : > { %v6367_v60 = vadd.f32 %v4830_v23, %v2435_v59  ;;  %v2356_v25 = vpop.f32.mrf.mxu1 }
 0x1ba   : > { %v2779_v17 = vpop.f32.mrf.mxu0  ;;  %v2437_v63 = vadd.f32 %v2356_v25, %v6274_v33 }
 0x1bb   : > { %v6370_v26 = vadd.f32 %v2779_v17, %v2433_v11  ;;  %v4799_v37 = vpop.f32.mrf.mxu1  ;;  %v6403_v25 = vpop.permute.xlu1 %3715 }
 0x1bc   : > { %v4833_v54 = vpop.f32.mrf.mxu0  ;;  %v2442_v14 = vadd.f32 %v4799_v37, %v6277_v49 }
 0x1bd   : > { %v6375_v39 = vadd.f32 %v4833_v54, %v2438_v10  ;;  %v2369_v21 = vpop.f32.mrf.mxu1 }
 0x1be   : > { %v2792_v44 = vpop.f32.mrf.mxu0  ;;  %v2440_v43 = vadd.f32 %v2369_v21, %v6280_v3 }
 0x1bf   : > { %v6380_v12 = vadd.f32 %v2792_v44, %v2436_v5  ;;  %v4800_v52 = vpop.f32.mrf.mxu1  ;;  %v6398_v5 = vpop.permute.xlu0 %3710 }
 0x1c0   : > { %v4834_v46 = vpop.f32.mrf.mxu0  ;;  %v2443_v33 = vadd.f32 %v4800_v52, %v6283_v20 }
 0x1c1   : > { %v6383_v0 = vadd.f32 %v4834_v46, %v2439_v36  ;;  %v2372_v59 = vpop.f32.mrf.mxu1 }
 0x1c2   : > { %v2795_v32 = vpop.f32.mrf.mxu0  ;;  %v2441_v49 = vadd.f32 %v2372_v59, %v6286_v19 }
 0x1c3   : > { %v6388_v58 = vadd.f32 %v2795_v32, %v2437_v63  ;;  %v4803_v61 = vpop.f32.mrf.mxu1  ;;  %v6411_v46 = vpop.permute.xlu0 %3720 }
 0x1c4   : > { %v4837_v55 = vpop.f32.mrf.mxu0  ;;  %v2446_v8 = vadd.f32 %v4803_v61, %v6289_v16 }
 0x1c5   : > { %v6393_v11 = vadd.f32 %v4837_v55, %v2442_v14  ;;  %v2385_v40 = vpop.f32.mrf.mxu1 }
 0x1c6   : > { %v2808_v3 = vpop.f32.mrf.mxu0  ;;  %v2444_v20 = vadd.f32 %v2385_v40, %v6292_v13 }
 0x1c7   : > { %v6396_v10 = vadd.f32 %v2808_v3, %v2440_v43  ;;  %v4804_v17 = vpop.f32.mrf.mxu1  ;;  %v6424_v40 = vpop.permute.xlu0 %3730 }
 0x1c8   : > { %v4838_v23 = vpop.f32.mrf.mxu0  ;;  %v2447_v19 = vadd.f32 %v4804_v17, %v6295_v62 }
 0x1c9   : > { %v6401_v53 = vadd.f32 %v4838_v23, %v2443_v33  ;;  %v2388_v63 = vpop.f32.mrf.mxu1  ;;  %v6416_v33 = vpop.permute.xlu1 %3725 }
 0x1ca   : > { %v2811_v36 = vpop.f32.mrf.mxu0  ;;  %v2445_v37 = vadd.f32 %v2388_v63, %v6298_v6 }
 0x1cb   : > { %v6406_v54 = vadd.f32 %v2811_v36, %v2441_v49  ;;  %v4807_v14 = vpop.f32.mrf.mxu1 }
 0x1cc   : > { %v4841_v16 = vpop.f32.mrf.mxu0  ;;  %v2450_v13 = vadd.f32 %v4807_v14, %v6301_v22  ;;  %v6435_v14 = vpop.permute.xlu0 %3740 }
 0x1cd   : > { %v6409_v44 = vadd.f32 %v4841_v16, %v2446_v8  ;;  %v2401_v52 = vpop.f32.mrf.mxu1  ;;  %v6429_v36 = vpop.permute.xlu1 %3735 }
 0x1ce   : > { %v2824_v21 = vpop.f32.mrf.mxu0  ;;  %v2448_v62 = vadd.f32 %v2401_v52, %v6304_v24 }
 0x1cf   : > { %v6414_v43 = vadd.f32 %v2824_v21, %v2444_v20  ;;  %v4808_v55 = vpop.f32.mrf.mxu1 }
 0x1d0   : > { %v4842_v32 = vpop.f32.mrf.mxu0  ;;  %v2451_v49 = vadd.f32 %v4808_v55, %v6307_v15 }
 0x1d1   : > { %v6419_v59 = vadd.f32 %v4842_v32, %v2447_v19  ;;  %v2404_v3 = vpop.f32.mrf.mxu1 }
 0x1d2   : > { %v2827_v6 = vpop.f32.mrf.mxu0  ;;  %v2449_v22 = vadd.f32 %v2404_v3, %v6310_v29 }
 0x1d3   : > { %6651 = vst [vmem:[#allocation2_spill] sm:$0xff] %v6419_v59  ;;  %v6422_v61 = vadd.f32 %v2827_v6, %v2445_v37  ;;  %v4851_v20 = vpop.f32.mrf.mxu1 }
 0x1d4   : > { %v4845_v8 = vpop.f32.mrf.mxu0  ;;  %v3304_v32 = vadd.f32 %v4851_v20, %v6313_v2 }
 0x1d5   : > { %6652 = vst [vmem:[#allocation10_spill] sm:$0xff] %v6422_v61  ;;  %v6427_v23 = vadd.f32 %v4845_v8, %v2450_v13  ;;  %v3159_v19 = vpop.f32.mrf.mxu1  ;;  %v6439_v13 = vpop.permute.xlu1 %3745 }
 0x1d6   : > { %v2840_v17 = vpop.f32.mrf.mxu0  ;;  %v3302_v55 = vadd.f32 %v3159_v19, %v6316_v48 }
 0x1d7   : > { %6653 = vst [vmem:[#allocation12_spill] sm:$0xff] %v6427_v23  ;;  %v6431_v24 = vadd.f32 %v2840_v17, %v2448_v62  ;;  %v4852_v15 = vpop.f32.mrf.mxu1 }
 0x1d8   : > { %v4846_v63 = vpop.f32.mrf.mxu0 }
 0x1d9   : > { %6654 = vst [vmem:[#allocation3_spill] sm:$0xff] %v6431_v24  ;;  %v6433_v16 = vadd.f32 %v4846_v63, %v2451_v49  ;;  %v3162_v52 = vpop.f32.mrf.mxu1  ;;  %v3305_v49 = vadd.f32 %v4852_v15, %v6319_v7  ;;  %v6448_v2 = vpop.permute.xlu1 %3755 }
 0x1da   : > { %v2843_v37 = vpop.f32.mrf.mxu0 }
 0x1db   : > { %6655 = vst [vmem:[#allocation4_spill] sm:$0xff] %v6433_v16  ;;  %v6437_v21 = vadd.f32 %v2843_v37, %v2449_v22  ;;  %v4855_v62 = vpop.f32.mrf.mxu1  ;;  %v6444_v16 = vpop.permute.xlu0 %3750  ;;  %v3303_v37 = vadd.f32 %v3162_v52, %v6322_v45 }
 0x1dc   : > { %v4889_v29 = vpop.f32.mrf.mxu0  ;;  %v3308_v20 = vadd.f32 %v4855_v62, %v6325_v27 }
 0x1dd   : > { %6656 = vst [vmem:[#allocation5_spill] sm:$0xff] %v6437_v21  ;;  %v3618_v3 = vadd.f32 %v4889_v29, %v3304_v32  ;;  %v3175_v17 = vpop.f32.mrf.mxu1 }
 0x1de   : > { %v3473_v6 = vpop.f32.mrf.mxu0  ;;  %v3306_v29 = vadd.f32 %v3175_v17, %v6328_v4 }
 0x1df   : > { %v3616_v8 = vadd.f32 %v3473_v6, %v3302_v55  ;;  %v4856_v21 = vpop.f32.mrf.mxu1  ;;  %v3870_v48 = vmul.f32 %v6377_v1, %v3618_v3 }
 0x1e0   : > { %v4890_v63 = vpop.f32.mrf.mxu0 }
 0x1e1   : > { %v3868_v22 = vmul.f32 %v6372_v35, %v3616_v8  ;;  %v3619_v24 = vadd.f32 %v4890_v63, %v3305_v49  ;;  %v3178_v19 = vpop.f32.mrf.mxu1  ;;  %v6455_v8 = vpop.permute.xlu0 %3760  ;;  %v3908_v1 = vsel %vm3904_vm8, %v3870_v48, 0.0  ;;  %v3986_v3 = vmul.f32 %v3870_v48, %v3870_v48 }
 0x1e2   : > { %v3476_v23 = vpop.f32.mrf.mxu0 }
 0x1e3   : > { %v3617_v7 = vadd.f32 %v3476_v23, %v3303_v37  ;;  %v3984_v32 = vmul.f32 %v3868_v22, %v3868_v22  ;;  %v3871_v35 = vmul.f32 %v6390_v9, %v3619_v24  ;;  %v4859_v52 = vpop.f32.mrf.mxu1  ;;  %v3905_v62 = vsel %vm3904_vm8, %v3868_v22, 0.0  ;;  %v6461_v24 = vpop.permute.xlu1 %3765 }
 0x1e4   : > { %v4893_v15 = vpop.f32.mrf.mxu0  ;;  %v3309_v23 = vadd.f32 %v4856_v21, %v6331_v30  ;;  %v3307_v37 = vadd.f32 %v3178_v19, %v6334_v34  ;;  %v3312_v61 = vadd.f32 %v4859_v52, %v6337_v38 }
 0x1e5   : > { %v3869_v45 = vmul.f32 %v6385_v31, %v3617_v7  ;;  %v3622_v55 = vadd.f32 %v4893_v15, %v3308_v20  ;;  %v3191_v17 = vpop.f32.mrf.mxu1  ;;  %v4020_v31 = vsel %vm3904_vm8, %v3984_v32, 0.0  ;;  %v3987_v63 = vmul.f32 %v3871_v35, %v3871_v35 }
 0x1e6   : > { %v3489_v6 = vpop.f32.mrf.mxu0  ;;  %v3910_v32 = vsel %vm3904_vm8, %v3871_v35, 0.0 }
 0x1e7   : > { %v3620_v27 = vadd.f32 %v3489_v6, %v3306_v29  ;;  %v3906_v4 = vsel %vm3904_vm8, %v3869_v45, 0.0  ;;  %v3985_v49 = vmul.f32 %v3869_v45, %v3869_v45  ;;  %v3874_v7 = vmul.f32 %v6411_v46, %v3622_v55  ;;  %v4860_v30 = vpop.f32.mrf.mxu1  ;;  %v6472_v46 = vpop.permute.xlu0 %3770 }
 0x1e8   : > { %v4894_v9 = vpop.f32.mrf.mxu0  ;;  %v3907_v20 = vadd.f32 %v3906_v4, %v3905_v62  ;;  %v4023_v29 = vsel %vm3904_vm8, %v3986_v3, 0.0 }
 0x1e9   : > { %v4021_v48 = vsel %vm3904_vm8, %v3985_v49, 0.0  ;;  %v3872_v22 = vmul.f32 %v6398_v5, %v3620_v27  ;;  %v3623_v21 = vadd.f32 %v4894_v9, %v3309_v23  ;;  %v3194_v19 = vpop.f32.mrf.mxu1  ;;  %v4025_v5 = vsel %vm3904_vm8, %v3987_v63, 0.0 }
 0x1ea   : > { %v3492_v15 = vpop.f32.mrf.mxu0  ;;  %v3909_v45 = vadd.f32 %v3908_v1, %v3907_v20  ;;  %v4022_v6 = vadd.f32 %v4021_v48, %v4020_v31  ;;  %v3990_v3 = vmul.f32 %v3874_v7, %v3874_v7  ;;  %v3310_v1 = vadd.f32 %v3191_v17, %v6340_v56 }
 0x1eb   : > { %v3988_v59 = vmul.f32 %v3872_v22, %v3872_v22  ;;  %v3875_v34 = vmul.f32 %v6416_v33, %v3623_v21  ;;  %v3621_v62 = vadd.f32 %v3492_v15, %v3307_v37  ;;  %v3912_v38 = vsel %vm3904_vm8, %v3872_v22, 0.0  ;;  %v4863_v52 = vpop.f32.mrf.mxu1  ;;  %v6478_v33 = vpop.permute.xlu1 %3775 }
 0x1ec   : > { %v4897_v4 = vpop.f32.mrf.mxu0  ;;  %v4024_v55 = vadd.f32 %v4023_v29, %v4022_v6  ;;  %v3911_v27 = vadd.f32 %v3910_v32, %v3909_v45  ;;  %v3313_v63 = vadd.f32 %v4860_v30, %v6343_v41  ;;  %v3916_v22 = vsel %vm3904_vm8, %v3874_v7, 0.0 }
 0x1ed   : > { %v3626_v23 = vadd.f32 %v4897_v4, %v3312_v61  ;;  %v3873_v35 = vmul.f32 %v6403_v25, %v3621_v62  ;;  %v4027_v37 = vsel %vm3904_vm8, %v3988_v59, 0.0  ;;  %v3991_v20 = vmul.f32 %v3875_v34, %v3875_v34  ;;  %v3207_v21 = vpop.f32.mrf.mxu1  ;;  %v6488_v62 = vpop.permute.xlu0 %3780 }
 0x1ee   : > { %v3505_v49 = vpop.f32.mrf.mxu0  ;;  %v3913_v9 = vadd.f32 %v3912_v38, %v3911_v27  ;;  %v4026_v31 = vadd.f32 %v4025_v5, %v4024_v55  ;;  %v3311_v45 = vadd.f32 %v3194_v19, %v6346_v42  ;;  %v4031_v4 = vsel %vm3904_vm8, %v3990_v3, 0.0 }
 0x1ef   : > { %v3914_v61 = vsel %vm3904_vm8, %v3873_v35, 0.0  ;;  %v3989_v48 = vmul.f32 %v3873_v35, %v3873_v35  ;;  %v3624_v56 = vadd.f32 %v3505_v49, %v3310_v1  ;;  %v3878_v29 = vmul.f32 %v6435_v14, %v3626_v23  ;;  %v4864_v41 = vpop.f32.mrf.mxu1 }
 0x1f0   : > { %v4898_v17 = vpop.f32.mrf.mxu0  ;;  %v4028_v25 = vadd.f32 %v4027_v37, %v4026_v31  ;;  %v3915_v15 = vadd.f32 %v3914_v61, %v3913_v9  ;;  %v3918_v5 = vsel %vm3904_vm8, %v3875_v34, 0.0  ;;  %v4033_v27 = vsel %vm3904_vm8, %v3991_v20, 0.0 }
 0x1f1   : > { %v4029_v6 = vsel %vm3904_vm8, %v3989_v48, 0.0  ;;  %v3876_v59 = vmul.f32 %v6424_v40, %v3624_v56  ;;  %v3627_v30 = vadd.f32 %v4898_v17, %v3313_v63  ;;  %v3316_v14 = vadd.f32 %v4863_v52, %v6349_v51  ;;  %v3210_v19 = vpop.f32.mrf.mxu1  ;;  %v6494_v40 = vpop.permute.xlu1 %3785 }
 0x1f2   : > { %v3508_v32 = vpop.f32.mrf.mxu0  ;;  %v3917_v7 = vadd.f32 %v3916_v22, %v3915_v15  ;;  %v4030_v55 = vadd.f32 %v4029_v6, %v4028_v25  ;;  %v3924_v35 = vsel %vm3904_vm8, %v3878_v29, 0.0  ;;  %v3314_v34 = vadd.f32 %v3207_v21, %v6352_v18  ;;  %v6504_v21 = vpop.permute.xlu0 %3790 }
 0x1f3   : > { %v3992_v42 = vmul.f32 %v3876_v59, %v3876_v59  ;;  %v3625_v23 = vadd.f32 %v3508_v32, %v3311_v45  ;;  %v3879_v3 = vmul.f32 %v6439_v13, %v3627_v30  ;;  %v3920_v9 = vsel %vm3904_vm8, %v3876_v59, 0.0  ;;  %v4867_v37 = vpop.f32.mrf.mxu1 }
 0x1f4   : > { %v4901_v1 = vpop.f32.mrf.mxu0  ;;  %v4032_v38 = vadd.f32 %v4031_v4, %v4030_v55  ;;  %v3919_v49 = vadd.f32 %v3918_v5, %v3917_v7  ;;  %v3994_v63 = vmul.f32 %v3878_v29, %v3878_v29  ;;  %v3317_v48 = vadd.f32 %v4864_v41, %v6355_v47 }
 0x1f5   : > { %v3877_v31 = vmul.f32 %v6429_v36, %v3625_v23  ;;  %v3630_v51 = vadd.f32 %v4901_v1, %v3316_v14  ;;  %v4035_v56 = vsel %vm3904_vm8, %v3992_v42, 0.0  ;;  %v3223_v13 = vpop.f32.mrf.mxu1  ;;  %v3995_v36 = vmul.f32 %v3879_v3, %v3879_v3  ;;  %v6510_v4 = vpop.permute.xlu1 %3795 }
 0x1f6   : > { %v3521_v52 = vpop.f32.mrf.mxu0  ;;  %v3921_v20 = vadd.f32 %v3920_v9, %v3919_v49  ;;  %v4034_v61 = vadd.f32 %v4033_v27, %v4032_v38  ;;  %v3315_v45 = vadd.f32 %v3210_v19, %v6358_v50  ;;  %v4039_v5 = vsel %vm3904_vm8, %v3994_v63, 0.0 }
 0x1f7   : > { %v3922_v17 = vsel %vm3904_vm8, %v3877_v31, 0.0  ;;  %v3993_v22 = vmul.f32 %v3877_v31, %v3877_v31  ;;  %v3628_v25 = vadd.f32 %v3521_v52, %v3314_v34  ;;  %v3882_v59 = vmul.f32 %v6455_v8, %v3630_v51  ;;  %v4868_v41 = vpop.f32.mrf.mxu1 }
 0x1f8   : > { %v4902_v18 = vpop.f32.mrf.mxu0  ;;  %v4036_v15 = vadd.f32 %v4035_v56, %v4034_v61  ;;  %v3923_v6 = vadd.f32 %v3922_v17, %v3921_v20  ;;  %v3320_v27 = vadd.f32 %v4867_v37, %v6361_v28  ;;  %v3926_v50 = vsel %vm3904_vm8, %v3879_v3, 0.0  ;;  %v3801_v37 = vpop.permute.xlu0 %3800 }
 0x1f9   : > { %v4037_v29 = vsel %vm3904_vm8, %v3993_v22, 0.0  ;;  %v3880_v47 = vmul.f32 %v6444_v16, %v3628_v25  ;;  %v3631_v30 = vadd.f32 %v4902_v18, %v3317_v48  ;;  %v3226_v19 = vpop.f32.mrf.mxu1  ;;  %v4041_v16 = vsel %vm3904_vm8, %v3995_v36, 0.0  ;;  %v3806_v22 = vpop.permute.xlu1 %3805 }
 0x1fa   : > { %v3524_v32 = vpop.f32.mrf.mxu0  ;;  %v3925_v7 = vadd.f32 %v3924_v35, %v3923_v6  ;;  %v4038_v55 = vadd.f32 %v4037_v29, %v4036_v15  ;;  %v3998_v34 = vmul.f32 %v3882_v59, %v3882_v59  ;;  %v3318_v9 = vadd.f32 %v3223_v13, %v6364_v57 }
 0x1fb   : > { %v3996_v14 = vmul.f32 %v3880_v47, %v3880_v47  ;;  %v3883_v42 = vmul.f32 %v6461_v24, %v3631_v30  ;;  %v3629_v8 = vadd.f32 %v3524_v32, %v3315_v45  ;;  %v3928_v35 = vsel %vm3904_vm8, %v3880_v47, 0.0  ;;  %v4871_v31 = vpop.f32.mrf.mxu1 }
 0x1fc   : > { %v4905_v23 = vpop.f32.mrf.mxu0  ;;  %v4040_v1 = vadd.f32 %v4039_v5, %v4038_v55  ;;  %v3927_v38 = vadd.f32 %v3926_v50, %v3925_v7  ;;  %v3321_v63 = vadd.f32 %v4868_v41, %v6367_v60  ;;  %v3932_v13 = vsel %vm3904_vm8, %v3882_v59, 0.0 }
 0x1fd   : > { %v3634_v49 = vadd.f32 %v4905_v23, %v3320_v27  ;;  %v3881_v28 = vmul.f32 %v6448_v2, %v3629_v8  ;;  %v4043_v52 = vsel %vm3904_vm8, %v3996_v14, 0.0  ;;  %v3999_v20 = vmul.f32 %v3883_v42, %v3883_v42  ;;  %v3239_v56 = vpop.f32.mrf.mxu1  ;;  %v6532_v27 = vpop.permute.xlu0 %3810 }
 0x1fe   : > { %v3537_v3 = vpop.f32.mrf.mxu0  ;;  %v3929_v51 = vadd.f32 %v3928_v35, %v3927_v38  ;;  %v4042_v24 = vadd.f32 %v4041_v16, %v4040_v1  ;;  %v3319_v15 = vadd.f32 %v3226_v19, %v6370_v26  ;;  %v4047_v47 = vsel %vm3904_vm8, %v3998_v34, 0.0  ;;  %v6539_v38 = vpop.permute.xlu1 %3815 }
 0x1ff   : > { %v3930_v61 = vsel %vm3904_vm8, %v3881_v28, 0.0  ;;  %v3997_v48 = vmul.f32 %v3881_v28, %v3881_v28  ;;  %v3632_v17 = vadd.f32 %v3537_v3, %v3318_v9  ;;  %v3886_v18 = vmul.f32 %v6488_v62, %v3634_v49  ;;  %v4872_v45 = vpop.f32.mrf.mxu1 }
 0x200   : > { %v4906_v57 = vpop.f32.mrf.mxu0  ;;  %v4044_v2 = vadd.f32 %v4043_v52, %v4042_v24  ;;  %v3931_v25 = vadd.f32 %v3930_v61, %v3929_v51  ;;  %v3934_v41 = vsel %vm3904_vm8, %v3883_v42, 0.0  ;;  %v4049_v59 = vsel %vm3904_vm8, %v3999_v20, 0.0 }
 0x201   : > { %v4045_v36 = vsel %vm3904_vm8, %v3997_v48, 0.0  ;;  %v3884_v60 = vmul.f32 %v6472_v46, %v3632_v17  ;;  %v3635_v6 = vadd.f32 %v4906_v57, %v3321_v63  ;;  %v3324_v5 = vadd.f32 %v4871_v31, %v6375_v39  ;;  %v3242_v7 = vpop.f32.mrf.mxu1  ;;  %v3821_v57 = vpop.permute.xlu0 %3820 }
 0x202   : > { %v3540_v29 = vpop.f32.mrf.mxu0  ;;  %v3933_v30 = vadd.f32 %v3932_v13, %v3931_v25  ;;  %v4046_v32 = vadd.f32 %v4045_v36, %v4044_v2  ;;  %v3940_v50 = vsel %vm3904_vm8, %v3886_v18, 0.0  ;;  %v3322_v42 = vadd.f32 %v3239_v56, %v6380_v12 }
 0x203   : > { %v4000_v62 = vmul.f32 %v3884_v60, %v3884_v60  ;;  %v3633_v26 = vadd.f32 %v3540_v29, %v3319_v15  ;;  %v3887_v19 = vmul.f32 %v6494_v40, %v3635_v6  ;;  %v3936_v8 = vsel %vm3904_vm8, %v3884_v60, 0.0  ;;  %v4875_v16 = vpop.f32.mrf.mxu1 }
 0x204   : > { %v4909_v55 = vpop.f32.mrf.mxu0  ;;  %v4048_v46 = vadd.f32 %v4047_v47, %v4046_v32  ;;  %v3935_v14 = vadd.f32 %v3934_v41, %v3933_v30  ;;  %v4002_v49 = vmul.f32 %v3886_v18, %v3886_v18  ;;  %v3325_v35 = vadd.f32 %v4872_v45, %v6383_v0 }
 0x205   : > { %v3885_v23 = vmul.f32 %v6478_v33, %v3633_v26  ;;  %v3638_v39 = vadd.f32 %v4909_v55, %v3324_v5  ;;  %v4051_v28 = vsel %vm3904_vm8, %v4000_v62, 0.0  ;;  %v3255_v12 = vpop.f32.mrf.mxu1  ;;  %v4003_v33 = vmul.f32 %v3887_v19, %v3887_v19 }
 0x206   : > { %v3553_v1 = vpop.f32.mrf.mxu0  ;;  %v3937_v34 = vadd.f32 %v3936_v8, %v3935_v14  ;;  %v4050_v9 = vadd.f32 %v4049_v59, %v4048_v46  ;;  %v3323_v52 = vadd.f32 %v3242_v7, %v6388_v58  ;;  %v4055_v13 = vsel %vm3904_vm8, %v4002_v49, 0.0 }
 0x207   : > { %v3938_v40 = vsel %vm3904_vm8, %v3885_v23, 0.0  ;;  %v4001_v31 = vmul.f32 %v3885_v23, %v3885_v23  ;;  %v3636_v3 = vadd.f32 %v3553_v1, %v3322_v42  ;;  %v3890_v61 = vmul.f32 %v3801_v37, %v3638_v39  ;;  %v4876_v56 = vpop.f32.mrf.mxu1  ;;  %v3826_v37 = vpop.permute.xlu1 %3825 }
 0x208   : > { %v4910_v51 = vpop.f32.mrf.mxu0  ;;  %v4052_v24 = vadd.f32 %v4051_v28, %v4050_v9  ;;  %v3939_v63 = vadd.f32 %v3938_v40, %v3937_v34  ;;  %v3328_v18 = vadd.f32 %v4875_v16, %v6393_v11  ;;  %v3942_v15 = vsel %vm3904_vm8, %v3887_v19, 0.0 }
 0x209   : > { %v4053_v20 = vsel %vm3904_vm8, %v4001_v31, 0.0  ;;  %v3888_v48 = vmul.f32 %v6504_v21, %v3636_v3  ;;  %v3639_v0 = vadd.f32 %v4910_v51, %v3325_v35  ;;  %v3258_v60 = vpop.f32.mrf.mxu1  ;;  %v4057_v21 = vsel %vm3904_vm8, %v4003_v33, 0.0 }
 0x20a   : > { %v3556_v17 = vpop.f32.mrf.mxu0  ;;  %v3941_v2 = vadd.f32 %v3940_v50, %v3939_v63  ;;  %v4054_v25 = vadd.f32 %v4053_v20, %v4052_v24  ;;  %v4006_v30 = vmul.f32 %v3890_v61, %v3890_v61  ;;  %v3326_v32 = vadd.f32 %v3255_v12, %v6396_v10  ;;  %v3831_v10 = vpop.permute.xlu0 %3830 }
 0x20b   : > { %v4004_v36 = vmul.f32 %v3888_v48, %v3888_v48  ;;  %v3891_v58 = vmul.f32 %v3806_v22, %v3639_v0  ;;  %v3637_v45 = vadd.f32 %v3556_v17, %v3323_v52  ;;  %v3944_v59 = vsel %vm3904_vm8, %v3888_v48, 0.0  ;;  %v4879_v5 = vpop.f32.mrf.mxu1  ;;  %v3836_v28 = vpop.permute.xlu1 %3835 }
 0x20c   : > { %v4913_v6 = vpop.f32.mrf.mxu0  ;;  %v4056_v29 = vadd.f32 %v4055_v13, %v4054_v25  ;;  %v3943_v47 = vadd.f32 %v3942_v15, %v3941_v2  ;;  %v3329_v55 = vadd.f32 %v4876_v56, %v6401_v53  ;;  %v3948_v23 = vsel %vm3904_vm8, %v3890_v61, 0.0 }
 0x20d   : > { %v3642_v41 = vadd.f32 %v4913_v6, %v3328_v18  ;;  %v3889_v11 = vmul.f32 %v6510_v4, %v3637_v45  ;;  %v4059_v26 = vsel %vm3904_vm8, %v4004_v36, 0.0  ;;  %v4007_v46 = vmul.f32 %v3891_v58, %v3891_v58  ;;  %v3271_v19 = vpop.f32.mrf.mxu1  ;;  %v6657_v36 = vld [vmem:[#allocation2_spill] sm:$0xff] }
 0x20e   : > { %v3569_v62 = vpop.f32.mrf.mxu0  ;;  %v3945_v7 = vadd.f32 %v3944_v59, %v3943_v47  ;;  %v4058_v22 = vadd.f32 %v4057_v21, %v4056_v29  ;;  %v3327_v1 = vadd.f32 %v3258_v60, %v6406_v54  ;;  %v4063_v40 = vsel %vm3904_vm8, %v4006_v30, 0.0  ;;  %v3841_v25 = vpop.permute.xlu0 %3840 }
 0x20f   : > { %v3946_v50 = vsel %vm3904_vm8, %v3889_v11, 0.0  ;;  %v4005_v14 = vmul.f32 %v3889_v11, %v3889_v11  ;;  %v3640_v42 = vadd.f32 %v3569_v62, %v3326_v32  ;;  %v3894_v39 = vmul.f32 %v3821_v57, %v3642_v41  ;;  %v4880_v53 = vpop.f32.mrf.mxu1  ;;  %v3846_v29 = vpop.permute.xlu1 %3845  ;;  %v6658_v41 = vld [vmem:[#allocation10_spill] sm:$0xff] }
 0x210   : > { %v4914_v8 = vpop.f32.mrf.mxu0  ;;  %v4060_v16 = vadd.f32 %v4059_v26, %v4058_v22  ;;  %v3947_v4 = vadd.f32 %v3946_v50, %v3945_v7  ;;  %v3950_v31 = vsel %vm3904_vm8, %v3891_v58, 0.0  ;;  %v4065_v51 = vsel %vm3904_vm8, %v4007_v46, 0.0 }
 0x211   : > { %v4061_v49 = vsel %vm3904_vm8, %v4005_v14, 0.0  ;;  %v3892_v34 = vmul.f32 %v6532_v27, %v3640_v42  ;;  %v3643_v9 = vadd.f32 %v4914_v8, %v3329_v55  ;;  %v3332_v24 = vadd.f32 %v4879_v5, %v6409_v44  ;;  %v3274_v54 = vpop.f32.mrf.mxu1  ;;  %v6659_v14 = vld [vmem:[#allocation12_spill] sm:$0xff] }
 0x212   : > { %v3572_v35 = vpop.f32.mrf.mxu0  ;;  %v3949_v12 = vadd.f32 %v3948_v23, %v3947_v4  ;;  %v4062_v3 = vadd.f32 %v4061_v49, %v4060_v16  ;;  %v3956_v27 = vsel %vm3904_vm8, %v3894_v39, 0.0  ;;  %v3330_v56 = vadd.f32 %v3271_v19, %v6414_v43  ;;  %v3851_v16 = vpop.permute.xlu0 %3850 }
 0x213   : > { %v4008_v33 = vmul.f32 %v3892_v34, %v3892_v34  ;;  %v3641_v52 = vadd.f32 %v3572_v35, %v3327_v1  ;;  %v3895_v48 = vmul.f32 %v3826_v37, %v3643_v9  ;;  %v3952_v0 = vsel %vm3904_vm8, %v3892_v34, 0.0  ;;  %v4883_v57 = vpop.f32.mrf.mxu1  ;;  %v6660_v1 = vld [vmem:[#allocation3_spill] sm:$0xff] }
 0x214   : > { %v4917_v63 = vpop.f32.mrf.mxu0  ;;  %v4064_v20 = vadd.f32 %v4063_v40, %v4062_v3  ;;  %v3951_v61 = vadd.f32 %v3950_v31, %v3949_v12  ;;  %v4010_v44 = vmul.f32 %v3894_v39, %v3894_v39  ;;  %v3333_v58 = vadd.f32 %v4880_v53, %v6657_v36  ;;  %v3856_v12 = vpop.permute.xlu1 %3855 }
 0x215   : > { %v3893_v17 = vmul.f32 %v6539_v38, %v3641_v52  ;;  %v3646_v13 = vadd.f32 %v4917_v63, %v3332_v24  ;;  %v4067_v60 = vsel %vm3904_vm8, %v4008_v33, 0.0  ;;  %v3287_v37 = vpop.f32.mrf.mxu1  ;;  %v4011_v38 = vmul.f32 %v3895_v48, %v3895_v48  ;;  %v6661_v24 = vld [vmem:[#allocation4_spill] sm:$0xff] }
 0x216   : > { %v3585_v2 = vpop.f32.mrf.mxu0  ;;  %v3953_v18 = vadd.f32 %v3952_v0, %v3951_v61  ;;  %v4066_v15 = vadd.f32 %v4065_v51, %v4064_v20  ;;  %v3331_v30 = vadd.f32 %v3274_v54, %v6658_v41  ;;  %v4071_v26 = vsel %vm3904_vm8, %v4010_v44, 0.0  ;;  %v6662_v0 = vld [vmem:[#allocation5_spill] sm:$0xff] }
 0x217   : > { %v3954_v45 = vsel %vm3904_vm8, %v3893_v17, 0.0  ;;  %v4009_v6 = vmul.f32 %v3893_v17, %v3893_v17  ;;  %v3644_v43 = vadd.f32 %v3585_v2, %v3330_v56  ;;  %v3898_v11 = vmul.f32 %v3841_v25, %v3646_v13  ;;  %v4884_v62 = vpop.f32.mrf.mxu1 }
 0x218   : > { %v4918_v21 = vpop.f32.mrf.mxu0  ;;  %v4068_v47 = vadd.f32 %v4067_v60, %v4066_v15  ;;  %v3955_v32 = vadd.f32 %v3954_v45, %v3953_v18  ;;  %v3958_v50 = vsel %vm3904_vm8, %v3895_v48, 0.0  ;;  %v3336_v19 = vadd.f32 %v4883_v57, %v6659_v14  ;;  %v3861_v18 = vpop.permute.xlu0 %3860 }
 0x219   : > { %v4069_v59 = vsel %vm3904_vm8, %v4009_v6, 0.0  ;;  %v3896_v5 = vmul.f32 %v3831_v10, %v3644_v43  ;;  %v3647_v7 = vadd.f32 %v4918_v21, %v3333_v58  ;;  %v4073_v4 = vsel %vm3904_vm8, %v4011_v38, 0.0  ;;  %v3290_v35 = vpop.f32.mrf.mxu1  ;;  %v3866_v43 = vpop.permute.xlu1 %3865 }
 0x21a   : > { %v3588_v22 = vpop.f32.mrf.mxu0  ;;  %v3957_v55 = vadd.f32 %v3956_v27, %v3955_v32  ;;  %v4070_v46 = vadd.f32 %v4069_v59, %v4068_v47  ;;  %v3334_v10 = vadd.f32 %v3287_v37, %v6660_v1  ;;  %v4014_v34 = vmul.f32 %v3898_v11, %v3898_v11 }
 0x21b   : > { %v4012_v42 = vmul.f32 %v3896_v5, %v3896_v5  ;;  %v3645_v8 = vadd.f32 %v3588_v22, %v3331_v30  ;;  %v3960_v53 = vsel %vm3904_vm8, %v3896_v5, 0.0  ;;  %v3899_v9 = vmul.f32 %v3846_v29, %v3647_v7 }
 0x21c   : > { %v4921_v23 = vpop.f32.mrf.mxu0  ;;  %v4072_v39 = vadd.f32 %v4071_v26, %v4070_v46  ;;  %v3959_v49 = vadd.f32 %v3958_v50, %v3957_v55  ;;  %v3337_v33 = vadd.f32 %v4884_v62, %v6661_v24  ;;  %v3964_v48 = vsel %vm3904_vm8, %v3898_v11, 0.0 }
 0x21d   : > { %v3897_v40 = vmul.f32 %v3836_v28, %v3645_v8  ;;  %v4075_v52 = vsel %vm3904_vm8, %v4012_v42, 0.0  ;;  %v3650_v27 = vadd.f32 %v4921_v23, %v3336_v19  ;;  %v3335_v17 = vadd.f32 %v3290_v35, %v6662_v0 }
 0x21e   : > { %v3601_v31 = vpop.f32.mrf.mxu0  ;;  %v3961_v3 = vadd.f32 %v3960_v53, %v3959_v49  ;;  %v4074_v51 = vadd.f32 %v4073_v4, %v4072_v39  ;;  %v4015_v57 = vmul.f32 %v3899_v9, %v3899_v9  ;;  %v4079_v60 = vsel %vm3904_vm8, %v4014_v34, 0.0 }
 0x21f   : > { %v3648_v54 = vadd.f32 %v3601_v31, %v3334_v10  ;;  %v3962_v63 = vsel %vm3904_vm8, %v3897_v40, 0.0  ;;  %v4013_v20 = vmul.f32 %v3897_v40, %v3897_v40  ;;  %v3966_v45 = vsel %vm3904_vm8, %v3899_v9, 0.0 }
 0x220   : > { %v4922_v61 = vpop.f32.mrf.mxu0  ;;  %v4076_v56 = vadd.f32 %v4075_v52, %v4074_v51  ;;  %v3963_v28 = vadd.f32 %v3962_v63, %v3961_v3  ;;  %v3902_v6 = vmul.f32 %v3861_v18, %v3650_v27  ;;  %v4081_v38 = vsel %vm3904_vm8, %v4015_v57, 0.0 }
 0x221   : > { %v4077_v13 = vsel %vm3904_vm8, %v4013_v20, 0.0  ;;  %v3900_v2 = vmul.f32 %v3851_v16, %v3648_v54  ;;  %v3651_v25 = vadd.f32 %v4922_v61, %v3337_v33 }
 0x222   : > { %v3604_v44 = vpop.f32.mrf.mxu0  ;;  %v3965_v15 = vadd.f32 %v3964_v48, %v3963_v28  ;;  %v4078_v36 = vadd.f32 %v4077_v13, %v4076_v56  ;;  %v4018_v62 = vmul.f32 %v3902_v6, %v3902_v6  ;;  %v3972_v46 = vsel %vm3904_vm8, %v3902_v6, 0.0 }
 0x223   : > { %v3649_v58 = vadd.f32 %v3604_v44, %v3335_v17  ;;  %v4016_v37 = vmul.f32 %v3900_v2, %v3900_v2  ;;  %v3968_v41 = vsel %vm3904_vm8, %v3900_v2, 0.0  ;;  %v3903_v30 = vmul.f32 %v3866_v43, %v3651_v25 }
 0x224   : > { %v4080_v21 = vadd.f32 %v4079_v60, %v4078_v36  ;;  %v3967_v29 = vadd.f32 %v3966_v45, %v3965_v15  ;;  %v4087_v42 = vsel %vm3904_vm8, %v4018_v62, 0.0 }
 0x225   : > { %v3901_v47 = vmul.f32 %v3856_v12, %v3649_v58  ;;  %v4083_v7 = vsel %vm3904_vm8, %v4016_v37, 0.0  ;;  %v4019_v50 = vmul.f32 %v3903_v30, %v3903_v30  ;;  %v3974_v8 = vsel %vm3904_vm8, %v3903_v30, 0.0 }
 0x226   : > { %v3969_v32 = vadd.f32 %v3968_v41, %v3967_v29  ;;  %v4082_v59 = vadd.f32 %v4081_v38, %v4080_v21 }
 0x227   : > { %v3970_v11 = vsel %vm3904_vm8, %v3901_v47, 0.0  ;;  %v4017_v5 = vmul.f32 %v3901_v47, %v3901_v47  ;;  %v4089_v4 = vsel %vm3904_vm8, %v4019_v50, 0.0 }
 0x228   : > { %v4084_v22 = vadd.f32 %v4083_v7, %v4082_v59  ;;  %v3971_v26 = vadd.f32 %v3970_v11, %v3969_v32 }
 0x229   : > { %v4085_v55 = vsel %vm3904_vm8, %v4017_v5, 0.0 }
 0x22a   : > { %v3973_v14 = vadd.f32 %v3972_v46, %v3971_v26  ;;  %v4086_v19 = vadd.f32 %v4085_v55, %v4084_v22 }
 0x22c   : > { %v3975_v23 = vadd.f32 %v3974_v8, %v3973_v14  ;;  %v4088_v16 = vadd.f32 %v4087_v42, %v4086_v19 }
 0x22e   : > { %v3976_v39 = vrot.slane %v3975_v23, 4  ;;  %v4090_v1 = vadd.f32 %v4089_v4, %v4088_v16 }
 0x230   : > { %v3977_v10 = vadd.f32 %v3976_v39, %v3975_v23  ;;  %v4091_v49 = vrot.slane %v4090_v1, 4 }
 0x232   : > { %v3978_v34 = vrot.slane %v3977_v10, 2  ;;  %v4092_v53 = vadd.f32 %v4091_v49, %v4090_v1 }
 0x234   : > { %v3979_v9 = vadd.f32 %v3978_v34, %v3977_v10  ;;  %v4093_v35 = vrot.slane %v4092_v53, 2 }
 0x236   : > { %v3980_v40 = vrot.slane %v3979_v9, 1  ;;  %v4094_v31 = vadd.f32 %v4093_v35, %v4092_v53 }
 0x238   : > { %v3981_v12 = vadd.f32 %v3980_v40, %v3979_v9  ;;  %v4095_v3 = vrot.slane %v4094_v31, 1 }
 0x23a   : > { %3983 = vst.msk [vmem:[%s199_s19] sm:$0x1] %vm3982_vm9, %v3981_v12  ;;  %v4096_v51 = vadd.f32 %v4095_v3, %v4094_v31 }
 0x23c   : > { %4097 = vst.msk [vmem:[%s202_s22] sm:$0x1] %vm3982_vm9, %v4096_v51 }
 0x23d PF: > { %s15_s15 = sadd.s32 1, %s5015_s15  }
 0x23e   : > { %p12_p4 = scmp.ge.s32.totalorder %s15_s15, 4  }
 0x240   :  { %14 = sbr.rel (!%p12_p4) target bundleno = 1 (0x1), region = 82 }

// kernel: cnn_block_forward.3
= control target key start
LH: loop header
LB: loop body
LE: loop exit
PB: predicated region body
PF: predicated region fallthrough
CT: control target
= control target key end

     0   :  { %s4734_s15 = smov 0   ;;  %s6199_s0 = inlined_call_operand.vmem [shape: bf16[2,328,4], index: 0, kind: input, shape index: {}]   ;;  %s6200_s1 = inlined_call_operand.vmem [shape: bf16[9,4,8], index: 1, kind: input, shape index: {}]   ;;  %s6201_s2 = inlined_call_operand.vmem [shape: f32[1,8], index: 2, kind: input, shape index: {}]   ;;  %s6202_s3 = inlined_call_operand.vmem [shape: f32[1,8], index: 3, kind: input, shape index: {}]   ;;  %s6203_s4 = inlined_call_operand.vmem [shape: f32[2,288,8], index: 4, kind: output, shape index: {}]  }
   0x1 LB: > { %s3861_s16 = sadd.s32 4294967295, %s4707_s15   ;;  %p3865_p0 = scmp.ge.s32.totalorder %s4707_s15, 1  ;;  %s4707_s15 = sphi %s4734_s15, %s14_s15  }
   0x2   : > { %p162_p1 = scmp.lt.s32.totalorder %s4707_s15, 3 }
   0x4   : > { %p163_p2 = pnand %p3865_p0, %p162_p1 }
   0x6   : > { %166 = sbr.rel (%p163_p2) target bundleno = 556 (0x22c), region = 36 }
   0xb   : > { %v3868_v0 = vld [vmem:[%s6200_s1 + $0x2] sm:$0x3]  ;;  %vm536_vm0 = vcmask 1041408   ;;  %p188_p3 = scmp.lt.s32.totalorder %s3861_s16, 1  ;;  %v3924_v2 = vld [vmem:[%s6200_s1 + $0x4] sm:$0x3] }
   0xc   : > { %4619 = vmatprep.subr.msk.bf16.mxu0 %vm536_vm0, %v3868_v0  ;;  %4620 = vmatprep.subr.msk.bf16.mxu1 %vm536_vm0, %v3868_v0  ;;  %v538_v1 = vsel %vm536_vm0, %v3868_v0, 0  ;;  %v235_v3 = vld [vmem:[%s6200_s1] sm:$0x3]  ;;  %vm332_vm1 = vsmask.f32 7424  ;;  %vm481_vm2 = vcmask 31744  }
   0xd   : > { %4276 = vmatpush3.bf16.msra.mxu0 %v538_v1  ;;  %4618 = vmatpush3.bf16.msra.mxu1 %v538_v1  ;;  %s6243_s16 = smov (!%p188_p3, %s3861_s16), 1  ;;  %v1032_v8 = vsel %vm536_vm0, %v3924_v2, 0  ;;  %v754_v16 = vsel %vm536_vm0, %v235_v3, 0  ;;  %v4807_v33 = vld [vmem:[%s6200_s1 + $0x8] sm:$0x3]  ;;  %vm939_vm3 = vcmask 1046528  }
   0xe   : > { %4622 = vmatprep.subr.msk.bf16.mxu0 %vm536_vm0, %v3924_v2  ;;  %4621 = vmatprep.subr.msk.bf16.mxu1 %vm536_vm0, %v235_v3  ;;  %s4629_s23 = smul.u32 164, %s6243_s16  ;;  %v4827_v45 = vld [vmem:[%s6200_s1 + $0x6] sm:$0x3]  ;;  %vm2139_vm4 = vcmask 1045504   ;;  %vm1692_vm5 = vsmask.f32 6400 }
   0xf   : > { %vm3339_vm6 = vcmask 1044480   ;;  %vm2892_vm7 = vsmask.f32 5376  ;;  %s4630_s17 = smul.u32 288, %s6243_s16  ;;  %vm3769_vm8 = vcmask 64512  }
  0x10   : > { %s4762_s26 = scalar_lea.vmem %s6199_s0, %s4629_s23 }
  0x11   : > { %v199_v4 = vld [vmem:[%s4762_s26] sm:$0xf]  ;;  %v4766_v5 = vld [vmem:[%s4762_s26 + $0x4] sm:$0xf]  ;;  %v4772_v7 = vld [vmem:[%s4762_s26 + $0x8] sm:$0xff]   ;;  %s6021_s21 = scalar_lea.vmem %s6203_s4, %s4630_s17 }
  0x12   : > { %v4769_v6 = vcombine.low %v199_v4, %v4766_v5  ;;  %v341_v11 = vshll.u32 %v4772_v7, 16  ;;  %v345_v12 = vshrl.u32 %v4772_v7, 16  ;;  %v4780_v13 = vld [vmem:[%s4762_s26 + $0x50] sm:$0xff]   ;;  %v4783_v14 = vld [vmem:[%s4762_s26 + $0x58] sm:$0xff]   ;;  %v4795_v24 = vld [vmem:[%s4762_s26 + $0x60] sm:$0xff]  }
  0x13   : > { %v4786_v15 = vld [vmem:[%s4762_s26 + $0x10] sm:$0xff]   ;;  %v413_v19 = vshll.u32 %v4780_v13, 16  ;;  %v417_v20 = vshrl.u32 %v4780_v13, 16  ;;  %v421_v21 = vshll.u32 %v4783_v14, 16  ;;  %v425_v22 = vshrl.u32 %v4783_v14, 16  ;;  %v4800_v28 = vld [vmem:[%s4762_s26 + $0x18] sm:$0xff]  }
  0x14   : > { %v334_v9 = vshrl.u32 %v4769_v6, 16  ;;  %v336_v10 = vshll.u32 %v4769_v6, 16  ;;  %v343_v18 = vrot.slane %v341_v11, 1  ;;  %v349_v23 = vshll.u32 %v4786_v15, 16  ;;  %v4813_v37 = vld [vmem:[%s4762_s26 + $0x68] sm:$0xff]   ;;  %v4817_v39 = vld [vmem:[%s4762_s26 + $0x20] sm:$0xff]  }
  0x15   : > { %v4797_v27 = vrot.slane %v413_v19, 1  ;;  %v423_v29 = vrot.slane %v421_v21, 1  ;;  %v429_v31 = vshll.u32 %v4795_v24, 16  ;;  %v353_v32 = vshrl.u32 %v4786_v15, 16  ;;  %v4822_v44 = vld [vmem:[%s4762_s26 + $0x70] sm:$0xff]   ;;  %v4834_v50 = vld [vmem:[%s4762_s26 + $0x28] sm:$0xff]  }
  0x16   : > { %v338_v17 = vrot.slane %v336_v10, 1  ;;  %v347_v26 = vor.u32 %v345_v12, %v343_v18  ;;  %v351_v30 = vrot.slane %v349_v23, 1  ;;  %v357_v36 = vshll.u32 %v4800_v28, 16  ;;  %v4849_v62 = vld [vmem:[%s4762_s26 + $0x78] sm:$0xff]   ;;  %v4859_v10 = vld [vmem:[%s4762_s26 + $0x30] sm:$0xff]   ;;  %v4862_v11 = vld [vmem:[%s4762_s26 + $0x80] sm:$0xff]  }
  0x17   : > { %v419_v35 = vor.u32 %v417_v20, %v4797_v27  ;;  %v433_v38 = vshrl.u32 %v4795_v24, 16  ;;  %v427_v40 = vor.u32 %v425_v22, %v423_v29  ;;  %v431_v42 = vrot.slane %v429_v31, 1  ;;  %v4871_v23 = vld [vmem:[%s4762_s26 + $0x38] sm:$0xff]  }
  0x18   : > { %v339_v25 = vor.u32 %v338_v17, %v334_v9  ;;  %v352_v41 = vsel %vm332_vm1, %v347_v26, %v351_v30  ;;  %v355_v43 = vor.u32 %v353_v32, %v351_v30  ;;  %v359_v47 = vrot.slane %v357_v36, 1  ;;  %v4876_v26 = vld [vmem:[%s4762_s26 + $0x88] sm:$0xff]  }
  0x19   : > { %v424_v46 = vsel %vm332_vm1, %v419_v35, %v423_v29  ;;  %v437_v48 = vshll.u32 %v4813_v37, 16  ;;  %v361_v49 = vshrl.u32 %v4800_v28, 16  ;;  %v432_v51 = vsel %vm332_vm1, %v427_v40, %v431_v42  ;;  %v4888_v40 = vld [vmem:[%s4762_s26 + $0x48] sm:$0xff]  }
  0x1a   : > { %v344_v34 = vsel %vm332_vm1, %v339_v25, %v343_v18  ;;  %4297 = vmatprep.mubr.msk.bf16.mxu1 %vm481_vm2, %v424_v46  ;;  %v435_v52 = vor.u32 %v433_v38, %v431_v42  ;;  %v365_v53 = vshll.u32 %v4817_v39, 16  ;;  %v441_v54 = vshrl.u32 %v4813_v37, 16  ;;  %v4885_v38 = vld [vmem:[%s4762_s26 + $0x40] sm:$0xff]  }
  0x1b   : > { %4277 = vmatprep.mubr.msk.bf16.mxu0 %vm481_vm2, %v344_v34  ;;  %4298 = vmatmul.mubr.msk.bf16.vlgmr.msra.gmra.mxu1 %vm481_vm2, %v432_v51  ;;  %v360_v55 = vsel %vm332_vm1, %v355_v43, %v359_v47  ;;  %v439_v56 = vrot.slane %v437_v48, 1  ;;  %v363_v57 = vor.u32 %v361_v49, %v359_v47  ;;  %v445_v58 = vshll.u32 %v4822_v44, 16  ;;  %v4656_v43 = vld [vmem:[%s4762_s26 + $0x90] ss:$0 sps:$4 sm:$0x11]  }
  0x1c   : > { %4278 = vmatmul.mubr.msk.bf16.vlgmr.msra.gmra.mxu0 %vm481_vm2, %v352_v41  ;;  %4314 = vmatpush3.bf16.msra.mxu1 %v754_v16  ;;  %v367_v59 = vrot.slane %v365_v53, 1  ;;  %v369_v60 = vshrl.u32 %v4817_v39, 16  ;;  %v373_v61 = vshll.u32 %v4834_v50, 16  ;;  %v449_v2 = vshrl.u32 %v4822_v44, 16 }
  0x1d   : > { %4352 = vmatpush3.bf16.msra.mxu0 %v1032_v8  ;;  %4281 = vmatprep.mubr.msk.bf16.mxu0 %vm481_vm2, %v360_v55  ;;  %v440_v63 = vsel %vm332_vm1, %v435_v52, %v439_v56  ;;  %v443_v0 = vor.u32 %v441_v54, %v439_v56  ;;  %v447_v1 = vrot.slane %v445_v58, 1  ;;  %v453_v9 = vshll.u32 %v4849_v62, 16 }
  0x1e   : > { %4624 = vmatprep.subr.msk.bf16.mxu0 %vm536_vm0, %v4807_v33  ;;  %4623 = vmatprep.subr.msk.bf16.mxu1 %vm536_vm0, %v4827_v45  ;;  %v368_v3 = vsel %vm332_vm1, %v363_v57, %v367_v59  ;;  %v371_v4 = vor.u32 %v369_v60, %v367_v59  ;;  %v375_v8 = vrot.slane %v373_v61, 1  ;;  %v377_v17 = vshrl.u32 %v4834_v50, 16 }
  0x1f   : > { %4301 = vmatprep.mubr.msk.bf16.mxu1 %vm481_vm2, %v440_v63  ;;  %v448_v12 = vsel %vm332_vm1, %v443_v0, %v447_v1  ;;  %v451_v16 = vor.u32 %v449_v2, %v447_v1  ;;  %v457_v18 = vshrl.u32 %v4849_v62, 16  ;;  %v455_v20 = vrot.slane %v453_v9, 1  ;;  %v933_v63 = vld [vmem:[%s4762_s26] sm:$0xe] }
  0x20   : > { %v376_v19 = vsel %vm332_vm1, %v371_v4, %v375_v8  ;;  %v381_v21 = vshll.u32 %v4859_v10, 16  ;;  %v461_v22 = vshll.u32 %v4862_v11, 16  ;;  %v385_v25 = vshrl.u32 %v4859_v10, 16 }
  0x21   : > { %v456_v29 = vsel %vm332_vm1, %v451_v16, %v455_v20  ;;  %v379_v30 = vor.u32 %v377_v17, %v375_v8  ;;  %v389_v34 = vshll.u32 %v4871_v23, 16  ;;  %v465_v35 = vshrl.u32 %v4862_v11, 16 }
  0x22   : > { %v383_v31 = vrot.slane %v381_v21, 1  ;;  %v463_v32 = vrot.slane %v461_v22, 1  ;;  %v469_v36 = vshll.u32 %v4876_v26, 16  ;;  %v459_v41 = vor.u32 %v457_v18, %v455_v20 }
  0x23   : > { %4302 = vmatmul.mubr.msk.bf16.gmra.mxu1 %vm481_vm2, %v448_v12  ;;  %v391_v46 = vrot.slane %v389_v34, 1  ;;  %v397_v49 = vshll.u32 %v4885_v38, 16  ;;  %v393_v52 = vshrl.u32 %v4871_v23, 16  ;;  %v401_v54 = vshrl.u32 %v4885_v38, 16 }
  0x24   : > { %4282 = vmatmul.mubr.msk.bf16.gmra.mxu0 %vm481_vm2, %v368_v3  ;;  %4305 = vmatprep.mubr.msk.bf16.mxu1 %vm481_vm2, %v456_v29  ;;  %v387_v42 = vor.u32 %v385_v25, %v383_v31  ;;  %v467_v47 = vor.u32 %v465_v35, %v463_v32  ;;  %v471_v48 = vrot.slane %v469_v36, 1  ;;  %v384_v51 = vsel %vm332_vm1, %v379_v30, %v383_v31 }
  0x25   : > { %4285 = vmatprep.mubr.msk.bf16.mxu0 %vm481_vm2, %v376_v19  ;;  %v405_v55 = vshll.u32 %v4888_v40, 16  ;;  %v464_v56 = vsel %vm332_vm1, %v459_v41, %v463_v32  ;;  %v473_v57 = vshrl.u32 %v4876_v26, 16  ;;  %v477_v58 = vshll.u32 %v4656_v43, 16 }
  0x26   : > { %v392_v53 = vsel %vm332_vm1, %v387_v42, %v391_v46  ;;  %v472_v59 = vsel %vm332_vm1, %v467_v47, %v471_v48  ;;  %v399_v60 = vrot.slane %v397_v49, 1  ;;  %v395_v61 = vor.u32 %v393_v52, %v391_v46  ;;  %v4987_v46 = vld [vmem:[%s4762_s26 + $0x10] sm:$0xff]   ;;  %v4992_v49 = vld [vmem:[%s4762_s26 + $0x18] sm:$0xff]  }
  0x27   : > { %v407_v1 = vrot.slane %v405_v55, 1  ;;  %v475_v2 = vor.u32 %v473_v57, %v471_v48  ;;  %v479_v3 = vrot.slane %v477_v58, 1  ;;  %v409_v8 = vshrl.u32 %v4888_v40, 16  ;;  %v5005_v55 = vld [vmem:[%s4762_s26 + $0x30] sm:$0xff]  }
  0x28   : > { %v403_v0 = vor.u32 %v401_v54, %v399_v60  ;;  %v400_v4 = vsel %vm332_vm1, %v395_v61, %v399_v60  ;;  %v3925_v12 = vcombine.low %v933_v63, %v4766_v5  ;;  %v973_v17 = vrot.slane %v4876_v26, 1  ;;  %v5020_v61 = vld [vmem:[%s4762_s26 + $0x38] sm:$0xff]  }
  0x29   : > { %v480_v16 = vsel %vm332_vm1, %v475_v2, %v479_v3  ;;  %v411_v18 = vor.u32 %v409_v8, %v407_v1  ;;  %v975_v19 = vrot.slane %v4656_v43, 1  ;;  %v941_v21 = vrot.slane %v4772_v7, 1  ;;  %v2133_v43 = vld [vmem:[%s4762_s26 + $0x8] sm:$0xc]  ;;  %v5030_v2 = vld [vmem:[%s4762_s26 + $0x40] sm:$0xff]  }
  0x2a   : > { %v408_v9 = vsel %vm332_vm1, %v403_v0, %v407_v1  ;;  %v940_v20 = vrot.slane %v3925_v12, 1  ;;  %v1471_v29 = vsel %vm536_vm0, %v4827_v45, 0  ;;  %v943_v30 = vrot.slane %v4786_v15, 1  ;;  %v5038_v8 = vld [vmem:[%s4762_s26 + $0x48] sm:$0xff]  }
  0x2b   : > { %4306 = vmatmul.mubr.msk.bf16.gmra.mxu1 %vm481_vm2, %v464_v56  ;;  %v4921_v5 = vsel %vm939_vm3, %v973_v17, %v975_v19  ;;  %v416_v22 = vsel %vm332_vm1, %v411_v18, %v4797_v27  ;;  %v945_v27 = vrot.slane %v4800_v28, 1  ;;  %v1918_v31 = vsel %vm536_vm0, %v4807_v33, 0 }
  0x2c   : > { %4286 = vmatmul.mubr.msk.bf16.gmra.mxu0 %vm481_vm2, %v384_v51  ;;  %4309 = vmatprep.mubr.msk.bf16.mxu1 %vm481_vm2, %v472_v59  ;;  %v942_v25 = vsel %vm939_vm3, %v940_v20, %v941_v21  ;;  %v944_v45 = vsel %vm939_vm3, %v941_v21, %v943_v30  ;;  %v949_v34 = vrot.slane %v4834_v50, 1  ;;  %v953_v36 = vrot.slane %v4871_v23, 1  ;;  %v4996_v51 = vld [vmem:[%s4762_s26 + $0x20] sm:$0xff]  }
  0x2d   : > { %4289 = vmatprep.mubr.msk.bf16.mxu0 %vm481_vm2, %v392_v53  ;;  %v946_v32 = vsel %vm939_vm3, %v943_v30, %v945_v27  ;;  %v955_v42 = vrot.slane %v4885_v38, 1  ;;  %v2141_v53 = vrot.slane %v4987_v46, 2  ;;  %v2143_v54 = vrot.slane %v4992_v49, 2  ;;  %v5068_v30 = vld [vmem:[%s4762_s26 + $0x58] sm:$0xff]  }
  0x2e   : > { %v2145_v57 = vrot.slane %v4996_v51, 2  ;;  %v959_v58 = vrot.slane %v4780_v13, 1  ;;  %v961_v59 = vrot.slane %v4783_v14, 1  ;;  %v2149_v1 = vrot.slane %v5005_v55, 2 }
  0x2f   : > { %v956_v48 = vsel %vm939_vm3, %v953_v36, %v955_v42  ;;  %v5015_v60 = vsel %vm2139_vm4, %v2141_v53, %v2143_v54  ;;  %v2155_v18 = vrot.slane %v5038_v8, 2  ;;  %v963_v20 = vrot.slane %v4795_v24, 1 }
  0x30   : > { %v5023_v63 = vsel %vm2139_vm4, %v2143_v54, %v2145_v57 }
  0x33   : > { %4310 = vmatmul.mubr.msk.bf16.gmra.mxu1 %vm481_vm2, %v480_v16  ;;  %v2153_v16 = vrot.slane %v5030_v2, 2 }
  0x34   : > { %4290 = vmatmul.mubr.msk.bf16.gmra.mxu0 %vm481_vm2, %v400_v4  ;;  %4315 = vmatprep.mubr.msk.bf16.mxu1 %vm481_vm2, %v4769_v6  ;;  %v4934_v6 = vld [vmem:[%s6200_s1 + $0xa] sm:$0x3]  ;;  %v2151_v4 = vrot.slane %v5020_v61, 2 }
  0x35   : > { %4293 = vmatprep.mubr.msk.bf16.mxu0 %vm481_vm2, %v408_v9  ;;  %v5056_v21 = vsel %vm2139_vm4, %v2153_v16, %v2155_v18 }
  0x36   : > { %v5045_v12 = vsel %vm2139_vm4, %v2149_v1, %v2151_v4  ;;  %v5051_v19 = vsel %vm2139_vm4, %v2151_v4, %v2153_v16 }
  0x3b   : > { %4316 = vmatmul.mubr.msk.bf16.vlgmr.msra.gmra.mxu1 %vm481_vm2, %v4772_v7  ;;  %v4950_v7 = vld [vmem:[%s6200_s1 + $0xc] sm:$0x3] }
  0x3c   : > { %4294 = vmatmul.mubr.msk.bf16.gmra.mxu0 %vm481_vm2, %v416_v22  ;;  %4390 = vmatpush3.bf16.msra.mxu1 %v1471_v29  ;;  %v965_v22 = vrot.slane %v4813_v37, 1  ;;  %v964_v29 = vsel %vm939_vm3, %v961_v59, %v963_v20 }
  0x3d   : > { %4353 = vmatprep.mubr.msk.bf16.mxu0 %vm481_vm2, %v942_v25  ;;  %4319 = vmatprep.mubr.msk.bf16.mxu1 %vm481_vm2, %v4786_v15  ;;  %v947_v15 = vrot.slane %v4817_v39, 1  ;;  %v5064_v25 = vld [vmem:[%s4762_s26 + $0x50] sm:$0xff]  }
  0x3e   : > { %4625 = vmatprep.subr.msk.bf16.mxu1 %vm536_vm0, %v4934_v6 }
  0x3f   : > { %v948_v33 = vsel %vm939_vm3, %v945_v27, %v947_v15  ;;  %v950_v35 = vsel %vm939_vm3, %v947_v15, %v949_v34  ;;  %v966_v27 = vsel %vm939_vm3, %v963_v20, %v965_v22  ;;  %v969_v15 = vrot.slane %v4849_v62, 1 }
  0x43   : > { %4320 = vmatmul.mubr.msk.bf16.gmra.mxu1 %vm481_vm2, %v4800_v28  ;;  %v951_v28 = vrot.slane %v4859_v10, 1 }
  0x44   : > { %4354 = vmatmul.mubr.msk.bf16.vlgmr.msra.gmra.mxu0 %vm481_vm2, %v944_v45  ;;  %4323 = vmatprep.mubr.msk.bf16.mxu1 %vm481_vm2, %v4817_v39  ;;  %v2157_v45 = vrot.slane %v5064_v25, 2 }
  0x45   : > { %4428 = vmatpush3.bf16.msra.mxu0 %v1918_v31  ;;  %4357 = vmatprep.mubr.msk.bf16.mxu0 %vm481_vm2, %v946_v32  ;;  %v952_v39 = vsel %vm939_vm3, %v949_v34, %v951_v28  ;;  %v954_v41 = vsel %vm939_vm3, %v951_v28, %v953_v36  ;;  %v1247_v34 = vld [vmem:[%s4762_s26 + $0x8] sm:$0xe] }
  0x46   : > { %4626 = vmatprep.subr.msk.bf16.mxu0 %vm536_vm0, %v4950_v7  ;;  %v5075_v31 = vsel %vm2139_vm4, %v2155_v18, %v2157_v45  ;;  %v5093_v28 = vld [vmem:[%s4762_s26 + $0x68] sm:$0xff]  }
  0x4b   : > { %4324 = vmatmul.mubr.msk.bf16.gmra.mxu1 %vm481_vm2, %v4834_v50  ;;  %v957_v50 = vrot.slane %v4888_v40, 1 }
  0x4c   : > { %4358 = vmatmul.mubr.msk.bf16.gmra.mxu0 %vm481_vm2, %v948_v33  ;;  %4327 = vmatprep.mubr.msk.bf16.mxu1 %vm481_vm2, %v4859_v10  ;;  %v4984_v10 = vld [vmem:[%s4762_s26 + $0xc] sm:$0xf]  ;;  %v5089_v33 = vld [vmem:[%s4762_s26 + $0x60] sm:$0xff]  }
  0x4d   : > { %4361 = vmatprep.mubr.msk.bf16.mxu0 %vm481_vm2, %v950_v35  ;;  %v4003_v47 = vcombine.low %v2133_v43, %v4984_v10 }
  0x4f   : > { %v2140_v52 = vrot.slane %v4003_v47, 2  ;;  %v1702_v47 = vshrl.u32 %v4987_v46, 16 }
  0x51   : > { %v5008_v56 = vsel %vm2139_vm4, %v2140_v52, %v2141_v53  ;;  %v1380_v52 = vrot.slane %v4987_v46, 1  ;;  %v5116_v53 = vld [vmem:[%s4762_s26 + $0x70] sm:$0xff]  }
  0x52   : > { %v2165_v4 = vrot.slane %v5116_v53, 2 }
  0x53   : > { %4328 = vmatmul.mubr.msk.bf16.gmra.mxu1 %vm481_vm2, %v4871_v23  ;;  %v958_v23 = vsel %vm939_vm3, %v955_v42, %v957_v50  ;;  %v971_v42 = vrot.slane %v4862_v11, 1 }
  0x54   : > { %4362 = vmatmul.mubr.msk.bf16.gmra.mxu0 %vm481_vm2, %v952_v39  ;;  %4331 = vmatprep.mubr.msk.bf16.mxu1 %vm481_vm2, %v4885_v38  ;;  %v5000_v38 = vld [vmem:[%s4762_s26 + $0x28] sm:$0xff]   ;;  %v2161_v39 = vrot.slane %v5089_v33, 2 }
  0x55   : > { %4365 = vmatprep.mubr.msk.bf16.mxu0 %vm481_vm2, %v954_v41  ;;  %v2147_v0 = vrot.slane %v5000_v38, 2  ;;  %v3945_v41 = vcombine.low %v1247_v34, %v4984_v10  ;;  %v972_v54 = vsel %vm939_vm3, %v969_v15, %v971_v42  ;;  %v5149_v34 = vld [vmem:[%s4762_s26 + $0x88] sm:$0xff]  }
  0x57   : > { %v5033_v3 = vsel %vm2139_vm4, %v2145_v57, %v2147_v0  ;;  %v5041_v9 = vsel %vm2139_vm4, %v2147_v0, %v2149_v1  ;;  %v1694_v43 = vshrl.u32 %v3945_v41, 16  ;;  %v1697_v10 = vshll.u32 %v3945_v41, 16 }
  0x58   : > { %v974_v57 = vsel %vm939_vm3, %v971_v42, %v973_v17  ;;  %v1704_v0 = vrot.slane %v1702_v47, 1  ;;  %v1711_v17 = vshrl.u32 %v4992_v49, 16  ;;  %v1732_v47 = vshll.u32 %v5000_v38, 16 }
  0x5b   : > { %4332 = vmatmul.mubr.msk.bf16.gmra.mxu1 %vm481_vm2, %v4888_v40  ;;  %v960_v40 = vsel %vm939_vm3, %v957_v50, %v959_v58 }
  0x5c   : > { %4366 = vmatmul.mubr.msk.bf16.gmra.mxu0 %vm481_vm2, %v956_v48  ;;  %4335 = vmatprep.mubr.msk.bf16.mxu1 %vm481_vm2, %v4780_v13  ;;  %v962_v13 = vsel %vm939_vm3, %v959_v58, %v961_v59  ;;  %v1705_v48 = vshll.u32 %v4987_v46, 16  ;;  %v5123_v58 = vld [vmem:[%s4762_s26 + $0x78] sm:$0xff]   ;;  %v1699_v59 = vrot.slane %v1697_v10, 2  ;;  %v1729_v10 = vshrl.u32 %v5000_v38, 16 }
  0x5d   : > { %4369 = vmatprep.mubr.msk.bf16.mxu0 %vm481_vm2, %v958_v23  ;;  %v1379_v23 = vrot.slane %v3945_v41, 1 }
  0x5e   : > { %v1707_v1 = vrot.slane %v1705_v48, 2 }
  0x5f   : > { %v1381_v46 = vsel %vm939_vm3, %v1379_v23, %v1380_v52  ;;  %v1738_v23 = vshrl.u32 %v5005_v55, 16 }
  0x60   : > { %v1708_v20 = vor.u32 %v1707_v1, %v1704_v0  ;;  %v2671_v0 = vsel %vm536_vm0, %v4950_v7, 0  ;;  %v1731_v1 = vrot.slane %v1729_v10, 1 }
  0x63   : > { %4336 = vmatmul.mubr.msk.bf16.gmra.mxu1 %vm481_vm2, %v4783_v14  ;;  %v2159_v14 = vrot.slane %v5068_v30, 2 }
  0x64   : > { %4370 = vmatmul.mubr.msk.bf16.gmra.mxu0 %vm481_vm2, %v960_v40  ;;  %4339 = vmatprep.mubr.msk.bf16.mxu1 %vm481_vm2, %v4795_v24  ;;  %v967_v24 = vrot.slane %v4822_v44, 1 }
  0x65   : > { %4373 = vmatprep.mubr.msk.bf16.mxu0 %vm481_vm2, %v962_v13  ;;  %v5080_v32 = vsel %vm2139_vm4, %v2157_v45, %v2159_v14  ;;  %v1714_v13 = vshll.u32 %v4992_v49, 16  ;;  %v1384_v45 = vrot.slane %v4996_v51, 1 }
  0x66   : > { %v968_v35 = vsel %vm939_vm3, %v965_v22, %v967_v24  ;;  %v970_v36 = vsel %vm939_vm3, %v967_v24, %v969_v15  ;;  %v1720_v22 = vshrl.u32 %v4996_v51, 16  ;;  %v1713_v24 = vrot.slane %v1711_v17, 1 }
  0x67   : > { %v1716_v15 = vrot.slane %v1714_v13, 2  ;;  %v1740_v17 = vrot.slane %v1738_v23, 1 }
  0x6b   : > { %4340 = vmatmul.mubr.msk.bf16.gmra.mxu1 %vm481_vm2, %v4813_v37  ;;  %v2163_v37 = vrot.slane %v5093_v28, 2 }
  0x6c   : > { %4374 = vmatmul.mubr.msk.bf16.gmra.mxu0 %vm481_vm2, %v964_v29  ;;  %4343 = vmatprep.mubr.msk.bf16.mxu1 %vm481_vm2, %v4822_v44  ;;  %v5101_v44 = vsel %vm2139_vm4, %v2159_v14, %v2161_v39  ;;  %v1723_v29 = vshll.u32 %v4996_v51, 16  ;;  %v5146_v14 = vld [vmem:[%s4762_s26 + $0x80] sm:$0xff]  }
  0x6d   : > { %4377 = vmatprep.mubr.msk.bf16.mxu0 %vm481_vm2, %v966_v27  ;;  %v5106_v50 = vsel %vm2139_vm4, %v2161_v39, %v2163_v37  ;;  %v5130_v40 = vsel %vm2139_vm4, %v2163_v37, %v2165_v4  ;;  %v1382_v27 = vrot.slane %v4992_v49, 1  ;;  %v2169_v39 = vrot.slane %v5146_v14, 2 }
  0x6e   : > { %v2171_v37 = vrot.slane %v5149_v34, 2  ;;  %v2232_v49 = vsel %vm536_vm0, %v4934_v6, 0 }
  0x6f   : > { %v1383_v41 = vsel %vm939_vm3, %v1380_v52, %v1382_v27  ;;  %v1385_v51 = vsel %vm939_vm3, %v1382_v27, %v1384_v45  ;;  %v1741_v52 = vshll.u32 %v5005_v55, 16  ;;  %v1747_v27 = vshrl.u32 %v5020_v61, 16 }
  0x70   : > { %v5172_v6 = vsel %vm2139_vm4, %v2169_v39, %v2171_v37 }
  0x73   : > { %4344 = vmatmul.mubr.msk.bf16.gmra.mxu1 %vm481_vm2, %v4849_v62  ;;  %v1696_v62 = vrot.slane %v1694_v43, 1  ;;  %v1717_v43 = vor.u32 %v1716_v15, %v1713_v24 }
  0x74   : > { %4378 = vmatmul.mubr.msk.bf16.gmra.mxu0 %vm481_vm2, %v968_v35  ;;  %4347 = vmatprep.mubr.msk.bf16.mxu1 %vm481_vm2, %v4862_v11  ;;  %v2167_v11 = vrot.slane %v5123_v58, 2  ;;  %v1722_v35 = vrot.slane %v1720_v22, 1 }
  0x75   : > { %4381 = vmatprep.mubr.msk.bf16.mxu0 %vm481_vm2, %v970_v36  ;;  %v1700_v18 = vor.u32 %v1699_v59, %v1696_v62  ;;  %v1725_v36 = vrot.slane %v1723_v29, 2  ;;  %v5181_v62 = vld [vmem:[%s4762_s26 + $0x90] sm:$0xff]   ;;  %v1718_v59 = vsel %vm1692_vm5, %v1708_v20, %v1717_v43 }
  0x76   : > { %v5136_v16 = vsel %vm2139_vm4, %v2165_v4, %v2167_v11  ;;  %v5161_v42 = vsel %vm2139_vm4, %v2167_v11, %v2169_v39  ;;  %v1734_v4 = vrot.slane %v1732_v47, 2  ;;  %v5189_v11 = vld [vmem:[%s4762_s26 + $0x98] ss:$0 sps:$4 sm:$0x33]   ;;  %v1392_v39 = vrot.slane %v5030_v2, 1 }
  0x77   : > { %v1726_v48 = vor.u32 %v1725_v36, %v1722_v35  ;;  %v1759_v35 = vshll.u32 %v5030_v2, 16  ;;  %v1390_v36 = vrot.slane %v5020_v61, 1 }
  0x78   : > { %v1735_v29 = vor.u32 %v1734_v4, %v1731_v1  ;;  %v5234_v1 = vld [vmem:[%s4762_s26 + $0x14] sm:$0xf]  ;;  %v3333_v4 = vld [vmem:[%s4762_s26 + $0x10] sm:$0x8] }
  0x79   : > { %v1761_v10 = vrot.slane %v1759_v35, 2  ;;  %v1393_v23 = vsel %vm939_vm3, %v1390_v36, %v1392_v39 }
  0x7b   : > { %4348 = vmatmul.mubr.msk.bf16.gmra.mxu1 %vm481_vm2, %v4876_v26  ;;  %v1709_v26 = vsel %vm1692_vm5, %v1700_v18, %v1708_v20  ;;  %v5197_v18 = vld [vmem:[%s6200_s1 + $0x10] sm:$0x3]  ;;  %v2175_v20 = vrot.slane %v5189_v11, 2 }
  0x7c   : > { %4382 = vmatmul.mubr.msk.bf16.gmra.mxu0 %vm481_vm2, %v972_v54  ;;  %4391 = vmatprep.mubr.msk.bf16.mxu1 %vm481_vm2, %v1381_v46  ;;  %v1386_v54 = vrot.slane %v5000_v38, 1  ;;  %v1727_v46 = vsel %vm1692_vm5, %v1717_v43, %v1726_v48  ;;  %v1743_v38 = vrot.slane %v1741_v52, 2 }
  0x7d   : > { %4385 = vmatprep.mubr.msk.bf16.mxu0 %vm481_vm2, %v974_v57  ;;  %v1388_v57 = vrot.slane %v5005_v55, 1  ;;  %v2173_v55 = vrot.slane %v5181_v62, 2 }
  0x7e   : > { %v1387_v13 = vsel %vm939_vm3, %v1384_v45, %v1386_v54  ;;  %v1750_v45 = vshll.u32 %v5020_v61, 16  ;;  %v1744_v15 = vor.u32 %v1743_v38, %v1740_v17 }
  0x7f   : > { %v1389_v7 = vsel %vm939_vm3, %v1386_v54, %v1388_v57  ;;  %v5203_v22 = vsel %vm2139_vm4, %v2171_v37, %v2173_v55  ;;  %v5209_v24 = vsel %vm2139_vm4, %v2173_v55, %v2175_v20  ;;  %v1749_v37 = vrot.slane %v1747_v27, 1  ;;  %v5239_v55 = vld [vmem:[%s4762_s26 + $0x18] sm:$0xff]   ;;  %v5244_v27 = vld [vmem:[%s4762_s26 + $0x20] sm:$0xff]  }
  0x80   : > { %v1391_v47 = vsel %vm939_vm3, %v1388_v57, %v1390_v36  ;;  %v1774_v54 = vshrl.u32 %v5064_v25, 16  ;;  %v1777_v57 = vshll.u32 %v5064_v25, 16  ;;  %v1783_v36 = vshrl.u32 %v5068_v30, 16 }
  0x83   : > { %4392 = vmatmul.mubr.msk.bf16.vlgmr.msra.gmra.mxu1 %vm481_vm2, %v1383_v41  ;;  %v1736_v41 = vsel %vm1692_vm5, %v1726_v48, %v1735_v29  ;;  %v1768_v48 = vshll.u32 %v5038_v8, 16 }
  0x84   : > { %4386 = vmatmul.mubr.msk.bf16.gmra.mxu0 %vm481_vm2, %v4921_v5  ;;  %v5169_v5 = vld [vmem:[%s6200_s1 + $0xe] sm:$0x3]  ;;  %4466 = vmatpush3.bf16.msra.mxu1 %v2232_v49  ;;  %v1752_v49 = vrot.slane %v1750_v45, 2  ;;  %v3341_v45 = vrot.slane %v5239_v55, 3 }
  0x85   : > { %4429 = vmatprep.mubr.msk.bf16.mxu0 %vm481_vm2, %v1709_v26  ;;  %4395 = vmatprep.mubr.msk.bf16.mxu1 %vm481_vm2, %v1385_v51  ;;  %v1756_v26 = vshrl.u32 %v5030_v2, 16  ;;  %v1745_v51 = vsel %vm1692_vm5, %v1735_v29, %v1744_v15  ;;  %v1765_v2 = vshrl.u32 %v5038_v8, 16  ;;  %v1770_v38 = vrot.slane %v1768_v48, 2 }
  0x86   : > { %4627 = vmatprep.subr.msk.bf16.mxu1 %vm536_vm0, %v5169_v5  ;;  %v1753_v61 = vor.u32 %v1752_v49, %v1749_v37  ;;  %v1779_v29 = vrot.slane %v1777_v57, 2  ;;  %v1792_v49 = vshrl.u32 %v5089_v33, 16 }
  0x87   : > { %v1758_v43 = vrot.slane %v1756_v26, 1  ;;  %v1767_v17 = vrot.slane %v1765_v2, 1  ;;  %v6204_v26 = vrot.slane %v5244_v27, 3 }
  0x89   : > { %v1762_v52 = vor.u32 %v1761_v10, %v1758_v43  ;;  %v1771_v35 = vor.u32 %v1770_v38, %v1767_v17  ;;  %v5263_v43 = vsel %vm3339_vm6, %v3341_v45, %v6204_v26  ;;  %v1398_v10 = vrot.slane %v5068_v30, 1 }
  0x8a   : > { %v1810_v17 = vshrl.u32 %v5116_v53, 16  ;;  %v1813_v38 = vshll.u32 %v5116_v53, 16 }
  0x8b   : > { %4396 = vmatmul.mubr.msk.bf16.gmra.mxu1 %vm481_vm2, %v1387_v13  ;;  %v4081_v13 = vcombine.low %v3333_v4, %v5234_v1  ;;  %v1763_v20 = vsel %vm1692_vm5, %v1753_v61, %v1762_v52 }
  0x8c   : > { %4430 = vmatmul.mubr.msk.bf16.vlgmr.msra.gmra.mxu0 %vm481_vm2, %v1718_v59  ;;  %4399 = vmatprep.mubr.msk.bf16.mxu1 %vm481_vm2, %v1389_v7  ;;  %v1394_v59 = vrot.slane %v5038_v8, 1  ;;  %v1776_v7 = vrot.slane %v1774_v54, 1  ;;  %v1794_v54 = vrot.slane %v1792_v49, 1  ;;  %v1831_v49 = vshll.u32 %v5146_v14, 16 }
  0x8d   : > { %4504 = vmatpush3.bf16.msra.mxu0 %v2671_v0  ;;  %4433 = vmatprep.mubr.msk.bf16.mxu0 %vm481_vm2, %v1727_v46  ;;  %v1396_v0 = vrot.slane %v5064_v25, 1  ;;  %v1754_v46 = vsel %vm1692_vm5, %v1744_v15, %v1753_v61  ;;  %v3340_v25 = vrot.slane %v4081_v13, 3  ;;  %v1785_v61 = vrot.slane %v1783_v36, 1 }
  0x8e   : > { %4628 = vmatprep.subr.msk.bf16.mxu0 %vm536_vm0, %v5197_v18  ;;  %v1395_v8 = vsel %vm939_vm3, %v1392_v39, %v1394_v59  ;;  %v1780_v39 = vor.u32 %v1779_v29, %v1776_v7  ;;  %v1404_v13 = vrot.slane %v5116_v53, 1  ;;  %v1822_v53 = vshll.u32 %v5123_v58, 16 }
  0x8f   : > { %v1397_v15 = vsel %vm939_vm3, %v1394_v59, %v1396_v0  ;;  %v5255_v37 = vsel %vm3339_vm6, %v3340_v25, %v3341_v45  ;;  %v1399_v59 = vsel %vm939_vm3, %v1396_v0, %v1398_v10  ;;  %v1402_v0 = vrot.slane %v5093_v28, 1 }
  0x90   : > { %v1781_v48 = vsel %vm1692_vm5, %v1771_v35, %v1780_v39  ;;  %v1812_v25 = vrot.slane %v1810_v17, 1  ;;  %v1815_v45 = vrot.slane %v1813_v38, 2  ;;  %v1412_v17 = vrot.slane %v5181_v62, 1 }
  0x93   : > { %4400 = vmatmul.mubr.msk.bf16.gmra.mxu1 %vm481_vm2, %v1391_v47  ;;  %v1400_v47 = vrot.slane %v5089_v33, 1 }
  0x94   : > { %4434 = vmatmul.mubr.msk.bf16.gmra.mxu0 %vm481_vm2, %v1736_v41  ;;  %4403 = vmatprep.mubr.msk.bf16.mxu1 %vm481_vm2, %v1393_v23  ;;  %v1786_v41 = vshll.u32 %v5068_v30, 16  ;;  %v1772_v23 = vsel %vm1692_vm5, %v1762_v52, %v1771_v35  ;;  %v1801_v30 = vshrl.u32 %v5093_v28, 16  ;;  %v1405_v35 = vsel %vm939_vm3, %v1402_v0, %v1404_v13 }
  0x95   : > { %4437 = vmatprep.mubr.msk.bf16.mxu0 %vm481_vm2, %v1745_v51  ;;  %v1795_v51 = vshll.u32 %v5089_v33, 16  ;;  %v1401_v4 = vsel %vm939_vm3, %v1398_v10, %v1400_v47  ;;  %v1804_v33 = vshll.u32 %v5093_v28, 16  ;;  %v1819_v28 = vshrl.u32 %v5123_v58, 16 }
  0x96   : > { %v1788_v2 = vrot.slane %v1786_v41, 2  ;;  %v1803_v7 = vrot.slane %v1801_v30, 1  ;;  %v1816_v41 = vor.u32 %v1815_v45, %v1812_v25  ;;  %v1408_v10 = vrot.slane %v5146_v14, 1  ;;  %v4677_v25 = vld [vmem:[%s4762_s26 + $0x98] ss:$0 sps:$4 sm:$0x11]  }
  0x97   : > { %v1797_v57 = vrot.slane %v1795_v51, 2  ;;  %v1806_v29 = vrot.slane %v1804_v33, 2  ;;  %v1406_v51 = vrot.slane %v5123_v58, 1  ;;  %v1837_v58 = vshrl.u32 %v5149_v34, 16 }
  0x98   : > { %v1846_v30 = vshrl.u32 %v5181_v62, 16  ;;  %v1849_v33 = vshll.u32 %v5181_v62, 16  ;;  %v1855_v62 = vshrl.u32 %v5189_v11, 16 }
  0x99   : > { %v1798_v52 = vor.u32 %v1797_v57, %v1794_v54  ;;  %v1807_v36 = vor.u32 %v1806_v29, %v1803_v7  ;;  %v1833_v54 = vrot.slane %v1831_v49, 2  ;;  %v1407_v57 = vsel %vm939_vm3, %v1404_v13, %v1406_v51 }
  0x9a   : > { %v1848_v7 = vrot.slane %v1846_v30, 1  ;;  %v1851_v29 = vrot.slane %v1849_v33, 2  ;;  %v5374_v30 = vld [vmem:[%s4762_s26 + $0x48] sm:$0xff]  }
  0x9b   : > { %4404 = vmatmul.mubr.msk.bf16.gmra.mxu1 %vm481_vm2, %v1395_v8 }
  0x9c   : > { %4438 = vmatmul.mubr.msk.bf16.gmra.mxu0 %vm481_vm2, %v1754_v46  ;;  %4407 = vmatprep.mubr.msk.bf16.mxu1 %vm481_vm2, %v1397_v15  ;;  %v1789_v46 = vor.u32 %v1788_v2, %v1785_v61  ;;  %v1403_v15 = vsel %vm939_vm3, %v1400_v47, %v1402_v0  ;;  %v1808_v47 = vsel %vm1692_vm5, %v1798_v52, %v1807_v36  ;;  %v1824_v61 = vrot.slane %v1822_v53, 2 }
  0x9d   : > { %4441 = vmatprep.mubr.msk.bf16.mxu0 %vm481_vm2, %v1763_v20  ;;  %v1817_v2 = vsel %vm1692_vm5, %v1807_v36, %v1816_v41  ;;  %v1839_v0 = vrot.slane %v1837_v58, 1  ;;  %v1414_v36 = vrot.slane %v4677_v25, 1  ;;  %v5358_v58 = vld [vmem:[%s4762_s26 + $0x38] sm:$0xff]  }
  0x9e   : > { %v1790_v20 = vsel %vm1692_vm5, %v1780_v39, %v1789_v46  ;;  %v1799_v8 = vsel %vm1692_vm5, %v1789_v46, %v1798_v52  ;;  %v1828_v39 = vshrl.u32 %v5146_v14, 16  ;;  %v1840_v14 = vshll.u32 %v5149_v34, 16 }
  0x9f   : > { %v1410_v52 = vrot.slane %v5149_v34, 1 }
  0xa0   : > { %v1842_v13 = vrot.slane %v1840_v14, 2  ;;  %v5370_v14 = vld [vmem:[%s4762_s26 + $0x40] sm:$0xff]  }
  0xa1   : > { %v1413_v45 = vsel %vm939_vm3, %v1410_v52, %v1412_v17 }
  0xa2   : > { %v1843_v34 = vor.u32 %v1842_v13, %v1839_v0 }
  0xa3   : > { %4408 = vmatmul.mubr.msk.bf16.gmra.mxu1 %vm481_vm2, %v1399_v59  ;;  %v1409_v59 = vsel %vm939_vm3, %v1406_v51, %v1408_v10 }
  0xa4   : > { %4442 = vmatmul.mubr.msk.bf16.gmra.mxu0 %vm481_vm2, %v1772_v23  ;;  %4411 = vmatprep.mubr.msk.bf16.mxu1 %vm481_vm2, %v1401_v4  ;;  %v1821_v23 = vrot.slane %v1819_v28, 1  ;;  %v2447_v28 = vld [vmem:[%s4762_s26 + $0x10] sm:$0xc] }
  0xa5   : > { %4445 = vmatprep.mubr.msk.bf16.mxu0 %vm481_vm2, %v1781_v48  ;;  %v1830_v48 = vrot.slane %v1828_v39, 1  ;;  %v5325_v51 = vcombine.low %v2447_v28, %v5234_v1 }
  0xa6   : > { %v1825_v4 = vor.u32 %v1824_v61, %v1821_v23  ;;  %v2580_v23 = vrot.slane %v5239_v55, 2 }
  0xa7   : > { %v1834_v46 = vor.u32 %v1833_v54, %v1830_v48  ;;  %v3118_v48 = vsel %vm536_vm0, %v5169_v5, 0  ;;  %v2582_v54 = vrot.slane %v5244_v27, 2  ;;  %v3432_v5 = vsel %vm536_vm0, %v5197_v18, 0 }
  0xa8   : > { %v1826_v38 = vsel %vm1692_vm5, %v1816_v41, %v1825_v4  ;;  %v1857_v41 = vrot.slane %v1855_v62, 1 }
  0xa9   : > { %v1844_v53 = vsel %vm1692_vm5, %v1834_v46, %v1843_v34 }
  0xab   : > { %4412 = vmatmul.mubr.msk.bf16.gmra.mxu1 %vm481_vm2, %v1403_v15  ;;  %v1858_v15 = vshll.u32 %v5189_v11, 16 }
  0xac   : > { %4446 = vmatmul.mubr.msk.bf16.gmra.mxu0 %vm481_vm2, %v1790_v20  ;;  %4415 = vmatprep.mubr.msk.bf16.mxu1 %vm481_vm2, %v1405_v35  ;;  %v1835_v20 = vsel %vm1692_vm5, %v1825_v4, %v1834_v46  ;;  %v1852_v35 = vor.u32 %v1851_v29, %v1848_v7 }
  0xad   : > { %4449 = vmatprep.mubr.msk.bf16.mxu0 %vm481_vm2, %v1799_v8  ;;  %v1411_v8 = vsel %vm939_vm3, %v1408_v10, %v1410_v52  ;;  %v1860_v39 = vrot.slane %v1858_v15, 2  ;;  %v1415_v10 = vsel %vm939_vm3, %v1412_v17, %v1414_v36  ;;  %v2592_v17 = vrot.slane %v5374_v30, 2 }
  0xae   : > { %v1853_v49 = vsel %vm1692_vm5, %v1843_v34, %v1852_v35 }
  0xaf   : > { %v1861_v11 = vor.u32 %v1860_v39, %v1857_v41 }
  0xb1   : > { %v1862_v1 = vsel %vm1692_vm5, %v1852_v35, %v1861_v11 }
  0xb3   : > { %4416 = vmatmul.mubr.msk.bf16.gmra.mxu1 %vm481_vm2, %v1407_v57  ;;  %v2583_v57 = vsel %vm2139_vm4, %v2580_v23, %v2582_v54 }
  0xb4   : > { %4450 = vmatmul.mubr.msk.bf16.gmra.mxu0 %vm481_vm2, %v1808_v47  ;;  %4419 = vmatprep.mubr.msk.bf16.mxu1 %vm481_vm2, %v1409_v59  ;;  %v2579_v47 = vrot.slane %v5325_v51, 2  ;;  %v5352_v59 = vld [vmem:[%s4762_s26 + $0x30] sm:$0xff]  }
  0xb5   : > { %4453 = vmatprep.mubr.msk.bf16.mxu0 %vm481_vm2, %v1817_v2  ;;  %v5338_v2 = vld [vmem:[%s4762_s26 + $0x28] sm:$0xff]  }
  0xb6   : > { %v2581_v61 = vsel %vm2139_vm4, %v2579_v47, %v2580_v23 }
  0xbb   : > { %4420 = vmatmul.mubr.msk.bf16.gmra.mxu1 %vm481_vm2, %v1411_v8  ;;  %v5404_v8 = vld [vmem:[%s4762_s26 + $0x58] sm:$0xff]  }
  0xbc   : > { %4454 = vmatmul.mubr.msk.bf16.gmra.mxu0 %vm481_vm2, %v1826_v38  ;;  %4423 = vmatprep.mubr.msk.bf16.mxu1 %vm481_vm2, %v1413_v45  ;;  %v2596_v15 = vrot.slane %v5404_v8, 2 }
  0xbd   : > { %4457 = vmatprep.mubr.msk.bf16.mxu0 %vm481_vm2, %v1835_v20  ;;  %v5396_v20 = vld [vmem:[%s4762_s26 + $0x50] sm:$0xff]  }
  0xbe   : > { %v2594_v45 = vrot.slane %v5396_v20, 2 }
  0xc0   : > { %v2595_v28 = vsel %vm2139_vm4, %v2592_v17, %v2594_v45 }
  0xc3   : > { %4424 = vmatmul.mubr.msk.bf16.gmra.mxu1 %vm481_vm2, %v1415_v10 }
  0xc4   : > { %4458 = vmatmul.mubr.msk.bf16.gmra.mxu0 %vm481_vm2, %v1844_v53  ;;  %4467 = vmatprep.mubr.msk.bf16.mxu1 %vm481_vm2, %v5008_v56  ;;  %v2584_v56 = vrot.slane %v5338_v2, 2  ;;  %v5428_v53 = vld [vmem:[%s4762_s26 + $0x60] sm:$0xff]  }
  0xc5   : > { %4461 = vmatprep.mubr.msk.bf16.mxu0 %vm481_vm2, %v1853_v49  ;;  %v5436_v49 = vld [vmem:[%s4762_s26 + $0x68] sm:$0xff]   ;;  %v2598_v11 = vrot.slane %v5428_v53, 2 }
  0xc6   : > { %v2585_v4 = vsel %vm2139_vm4, %v2582_v54, %v2584_v56 }
  0xc7   : > { %v2599_v54 = vsel %vm2139_vm4, %v2596_v15, %v2598_v11 }
  0xcb   : > { %4468 = vmatmul.mubr.msk.bf16.vlgmr.msra.gmra.mxu1 %vm481_vm2, %v5015_v60  ;;  %v2586_v60 = vrot.slane %v5352_v59, 2 }
  0xcc   : > { %4462 = vmatmul.mubr.msk.bf16.gmra.mxu0 %vm481_vm2, %v1862_v1  ;;  %4542 = vmatpush3.bf16.msra.mxu1 %v3118_v48  ;;  %v2600_v1 = vrot.slane %v5436_v49, 2 }
  0xcd   : > { %4505 = vmatprep.mubr.msk.bf16.mxu0 %vm481_vm2, %v2581_v61  ;;  %4471 = vmatprep.mubr.msk.bf16.mxu1 %vm481_vm2, %v5023_v63  ;;  %v2588_v63 = vrot.slane %v5358_v58, 2  ;;  %v2587_v18 = vsel %vm2139_vm4, %v2584_v56, %v2586_v60  ;;  %v5460_v56 = vld [vmem:[%s4762_s26 + $0x70] sm:$0xff]  }
  0xcf   : > { %v2589_v46 = vsel %vm2139_vm4, %v2586_v60, %v2588_v63 }
  0xd3   : > { %4472 = vmatmul.mubr.msk.bf16.gmra.mxu1 %vm481_vm2, %v5033_v3  ;;  %v2590_v3 = vrot.slane %v5370_v14, 2 }
  0xd4   : > { %4506 = vmatmul.mubr.msk.bf16.vlgmr.msra.gmra.mxu0 %vm481_vm2, %v2583_v57  ;;  %4475 = vmatprep.mubr.msk.bf16.mxu1 %vm481_vm2, %v5041_v9 }
  0xd5   : > { %4580 = vmatpush3.bf16.msra.mxu0 %v3432_v5  ;;  %4509 = vmatprep.mubr.msk.bf16.mxu0 %vm481_vm2, %v2585_v4  ;;  %v2591_v13 = vsel %vm2139_vm4, %v2588_v63, %v2590_v3  ;;  %v5468_v4 = vld [vmem:[%s4762_s26 + $0x78] sm:$0xff]   ;;  %v2602_v63 = vrot.slane %v5460_v56, 2 }
  0xdb   : > { %v5381_v52 = vpop.f32.mrf.mxu1  ;;  %4476 = vmatmul.mubr.msk.bf16.gmra.mxu1 %vm481_vm2, %v5045_v12  ;;  %v2593_v12 = vsel %vm2139_vm4, %v2590_v3, %v2592_v17  ;;  %v2604_v3 = vrot.slane %v5468_v4, 2 }
  0xdc   : > { %v5376_v33 = vpop.f32.mrf.mxu0  ;;  %4510 = vmatmul.mubr.msk.bf16.gmra.mxu0 %vm481_vm2, %v2587_v18  ;;  %4479 = vmatprep.mubr.msk.bf16.mxu1 %vm481_vm2, %v5051_v19 }
  0xdd   : > { %4513 = vmatprep.mubr.msk.bf16.mxu0 %vm481_vm2, %v2589_v46  ;;  %v5390_v38 = vpop.f32.mrf.mxu1 }
  0xde   : > { %v5385_v9 = vpop.f32.mrf.mxu0 }
  0xdf   : > { %v5398_v7 = vpop.f32.mrf.mxu1 }
  0xe0   : > { %v5392_v0 = vpop.f32.mrf.mxu0 }
  0xe1   : > { %v5406_v25 = vpop.f32.mrf.mxu1 }
  0xe2   : > { %v5400_v29 = vpop.f32.mrf.mxu0 }
  0xe3   : > { %v5413_v34 = vpop.f32.mrf.mxu1  ;;  %4480 = vmatmul.mubr.msk.bf16.gmra.mxu1 %vm481_vm2, %v5056_v21  ;;  %v2597_v21 = vsel %vm2139_vm4, %v2594_v45, %v2596_v15  ;;  %v5492_v45 = vld [vmem:[%s4762_s26 + $0x80] sm:$0xff]  }
  0xe4   : > { %v5408_v19 = vpop.f32.mrf.mxu0  ;;  %4514 = vmatmul.mubr.msk.bf16.gmra.mxu0 %vm481_vm2, %v2591_v13  ;;  %4483 = vmatprep.mubr.msk.bf16.mxu1 %vm481_vm2, %v5075_v31  ;;  %6219 = vst [vmem:[#allocation10_spill] sm:$0xff] %v5492_v45 }
  0xe5   : > { %4517 = vmatprep.mubr.msk.bf16.mxu0 %vm481_vm2, %v2593_v12  ;;  %v5422_v35 = vpop.f32.mrf.mxu1  ;;  %v2603_v12 = vsel %vm2139_vm4, %v2600_v1, %v2602_v63 }
  0xe6   : > { %v5417_v62 = vpop.f32.mrf.mxu0 }
  0xe7   : > { %v5430_v41 = vpop.f32.mrf.mxu1 }
  0xe8   : > { %v5424_v36 = vpop.f32.mrf.mxu0  ;;  %6211 = vst [vmem:[#allocation2_spill] sm:$0xff] %v5430_v41 }
  0xe9   : > { %v5438_v10 = vpop.f32.mrf.mxu1 }
  0xea   : > { %v5432_v39 = vpop.f32.mrf.mxu0  ;;  %6212 = vst [vmem:[#allocation3_spill] sm:$0xff] %v5438_v10 }
  0xeb   : > { %v5445_v47 = vpop.f32.mrf.mxu1  ;;  %4484 = vmatmul.mubr.msk.bf16.gmra.mxu1 %vm481_vm2, %v5080_v32  ;;  %v2601_v32 = vsel %vm2139_vm4, %v2598_v11, %v2600_v1 }
  0xec   : > { %v5440_v31 = vpop.f32.mrf.mxu0  ;;  %4518 = vmatmul.mubr.msk.bf16.gmra.mxu0 %vm481_vm2, %v2595_v28  ;;  %6213 = vst [vmem:[#allocation4_spill] sm:$0xff] %v5445_v47  ;;  %4487 = vmatprep.mubr.msk.bf16.mxu1 %vm481_vm2, %v5101_v44 }
  0xed   : > { %4521 = vmatprep.mubr.msk.bf16.mxu0 %vm481_vm2, %v2597_v21  ;;  %v5454_v61 = vpop.f32.mrf.mxu1  ;;  %v5500_v21 = vld [vmem:[%s4762_s26 + $0x88] sm:$0xff]  }
  0xee   : > { %v5449_v23 = vpop.f32.mrf.mxu0  ;;  %6214 = vst [vmem:[#allocation5_spill] sm:$0xff] %v5454_v61  ;;  %6221 = vst [vmem:[#allocation12_spill] sm:$0xff] %v5500_v21  ;;  %v5532_v61 = vld [vmem:[%s4762_s26 + $0x98] sm:$0xff]  }
  0xef   : > { %v5462_v57 = vpop.f32.mrf.mxu1  ;;  %6223 = vst [vmem:[#allocation14_spill] sm:$0xff] %v5532_v61 }
  0xf0   : > { %v5456_v48 = vpop.f32.mrf.mxu0  ;;  %6215 = vst [vmem:[#allocation6_spill] sm:$0xff] %v5462_v57  ;;  %v5526_v57 = vld [vmem:[%s4762_s26 + $0x90] sm:$0xff]  }
  0xf1   : > { %v5470_v60 = vpop.f32.mrf.mxu1 }
  0xf2   : > { %v5464_v5 = vpop.f32.mrf.mxu0  ;;  %6216 = vst [vmem:[#allocation7_spill] sm:$0xff] %v5470_v60 }
  0xf3   : > { %v5477_v18 = vpop.f32.mrf.mxu1  ;;  %4488 = vmatmul.mubr.msk.bf16.gmra.mxu1 %vm481_vm2, %v5106_v50  ;;  %v2605_v50 = vsel %vm2139_vm4, %v2602_v63, %v2604_v3  ;;  %v2608_v63 = vrot.slane %v5500_v21, 2 }
  0xf4   : > { %v5472_v44 = vpop.f32.mrf.mxu0  ;;  %4522 = vmatmul.mubr.msk.bf16.gmra.mxu0 %vm481_vm2, %v2599_v54  ;;  %6217 = vst [vmem:[#allocation8_spill] sm:$0xff] %v5477_v18  ;;  %4491 = vmatprep.mubr.msk.bf16.mxu1 %vm481_vm2, %v5130_v40  ;;  %v2606_v40 = vrot.slane %v5492_v45, 2 }
  0xf5   : > { %4525 = vmatprep.mubr.msk.bf16.mxu0 %vm481_vm2, %v2601_v32  ;;  %v5486_v17 = vpop.f32.mrf.mxu1 }
  0xf6   : > { %v5481_v46 = vpop.f32.mrf.mxu0  ;;  %6218 = vst [vmem:[#allocation9_spill] sm:$0xff] %v5486_v17  ;;  %v2902_v17 = vshrl.u32 %v5239_v55, 16  ;;  %v2607_v60 = vsel %vm2139_vm4, %v2604_v3, %v2606_v40 }
  0xf7   : > { %v5494_v15 = vpop.f32.mrf.mxu1 }
  0xf8   : > { %v5488_v13 = vpop.f32.mrf.mxu0  ;;  %6220 = vst [vmem:[#allocation11_spill] sm:$0xff] %v5494_v15  ;;  %v2897_v15 = vshll.u32 %v5325_v51, 16 }
  0xf9   : > { %v5502_v11 = vpop.f32.mrf.mxu1 }
  0xfa   : > { %v5496_v28 = vpop.f32.mrf.mxu0  ;;  %6222 = vst [vmem:[#allocation13_spill] sm:$0xff] %v5502_v11  ;;  %v2899_v21 = vrot.slane %v2897_v15, 3 }
  0xfb   : > { %v4317_v1 = vpop.f32.mrf.mxu1  ;;  %4492 = vmatmul.mubr.msk.bf16.gmra.mxu1 %vm481_vm2, %v5136_v16  ;;  %v2905_v16 = vshll.u32 %v5239_v55, 16 }
  0xfc   : > { %v5504_v54 = vpop.f32.mrf.mxu0  ;;  %4526 = vmatmul.mubr.msk.bf16.gmra.mxu0 %vm481_vm2, %v2603_v12  ;;  %v799_v26 = vadd.f32 %v4317_v1, %v5376_v33  ;;  %4495 = vmatprep.mubr.msk.bf16.mxu1 %vm481_vm2, %v5161_v42  ;;  %v2609_v42 = vsel %vm2139_vm4, %v2606_v40, %v2608_v63  ;;  %v2610_v40 = vrot.slane %v5526_v57, 2 }
  0xfd   : > { %4529 = vmatprep.mubr.msk.bf16.mxu0 %vm481_vm2, %v2605_v50  ;;  %v790_v12 = vpop.f32.mrf.mxu1  ;;  %v2894_v50 = vshrl.u32 %v5325_v51, 16 }
  0xfe   : > { %v5511_v32 = vpop.f32.mrf.mxu0  ;;  %v791_v18 = vadd.f32 %v790_v12, %v5385_v9  ;;  %v2904_v9 = vrot.slane %v2902_v17, 2  ;;  %v2907_v12 = vrot.slane %v2905_v16, 3 }
  0xff   : > { %v4318_v33 = vpop.f32.mrf.mxu1  ;;  %v2896_v55 = vrot.slane %v2894_v50, 2 }
 0x100   : > { %v5517_v11 = vpop.f32.mrf.mxu0  ;;  %v802_v47 = vadd.f32 %v4318_v33, %v5392_v0  ;;  %v2612_v33 = vrot.slane %v5532_v61, 2  ;;  %v2908_v16 = vor.u32 %v2907_v12, %v2904_v9 }
 0x101   : > { %v793_v51 = vpop.f32.mrf.mxu1  ;;  %v2900_v50 = vor.u32 %v2899_v21, %v2896_v55 }
 0x102   : > { %v5528_v1 = vpop.f32.mrf.mxu0  ;;  %v794_v3 = vadd.f32 %v793_v51, %v5400_v29  ;;  %v2914_v29 = vshll.u32 %v5244_v27, 16 }
 0x103   : > { %v4321_v41 = vpop.f32.mrf.mxu1  ;;  %4496 = vmatmul.mubr.msk.bf16.gmra.mxu1 %vm481_vm2, %v5172_v6  ;;  %v2920_v6 = vshrl.u32 %v5338_v2, 16 }
 0x104   : > { %v4355_v10 = vpop.f32.mrf.mxu0  ;;  %4530 = vmatmul.mubr.msk.bf16.gmra.mxu0 %vm481_vm2, %v2607_v60  ;;  %v815_v60 = vadd.f32 %v4321_v41, %v5408_v19  ;;  %4499 = vmatprep.mubr.msk.bf16.mxu1 %vm481_vm2, %v5203_v22  ;;  %v2611_v41 = vsel %vm2139_vm4, %v2608_v63, %v2610_v40  ;;  %v4698_v22 = vld [vmem:[%s4762_s26 + $0xa0] ss:$0 sps:$4 sm:$0x33]   ;;  %v2916_v9 = vrot.slane %v2914_v29, 3  ;;  %v2932_v29 = vshll.u32 %v5352_v59, 16 }
 0x105   : > { %v5537_v45 = vadd.f32 %v4355_v10, %v799_v26  ;;  %4533 = vmatprep.mubr.msk.bf16.mxu0 %vm481_vm2, %v2609_v42  ;;  %v2911_v26 = vshrl.u32 %v5244_v27, 16  ;;  %v806_v10 = vpop.f32.mrf.mxu1  ;;  %v2923_v42 = vshll.u32 %v5338_v2, 16 }
 0x106   : > { %v1068_v0 = vpop.f32.mrf.mxu0  ;;  %v807_v51 = vadd.f32 %v806_v10, %v5417_v62  ;;  %v2909_v62 = vsel %vm2892_vm7, %v2900_v50, %v2908_v16 }
 0x107   : > { %6224 = vst [vmem:[#allocation15_spill] sm:$0xff] %v5537_v45  ;;  %v5545_v17 = vadd.f32 %v1068_v0, %v791_v18  ;;  %v4322_v18 = vpop.f32.mrf.mxu1  ;;  %v2913_v55 = vrot.slane %v2911_v26, 2  ;;  %v2925_v63 = vrot.slane %v2923_v42, 3  ;;  %v2929_v26 = vshrl.u32 %v5352_v59, 16 }
 0x108   : > { %v4356_v15 = vpop.f32.mrf.mxu0  ;;  %v818_v45 = vadd.f32 %v4322_v18, %v5424_v36  ;;  %v2938_v42 = vshrl.u32 %v5358_v58, 16 }
 0x109   : > { %6225 = vst [vmem:[#allocation16_spill] sm:$0xff] %v5545_v17  ;;  %v5554_v19 = vadd.f32 %v4356_v15, %v802_v47  ;;  %v2613_v17 = vsel %vm2139_vm4, %v2610_v40, %v2612_v33  ;;  %v809_v12 = vpop.f32.mrf.mxu1  ;;  %v2922_v47 = vrot.slane %v2920_v6, 2  ;;  %v2614_v40 = vrot.slane %v4698_v22, 2 }
 0x10a   : > { %v1071_v0 = vpop.f32.mrf.mxu0  ;;  %v810_v10 = vadd.f32 %v809_v12, %v5432_v39  ;;  %v2917_v39 = vor.u32 %v2916_v9, %v2913_v55  ;;  %v2934_v12 = vrot.slane %v2932_v29, 3 }
 0x10b   : > { %v5560_v21 = vadd.f32 %v1071_v0, %v794_v3  ;;  %v4325_v36 = vpop.f32.mrf.mxu1  ;;  %4500 = vmatmul.mubr.msk.bf16.gmra.mxu1 %vm481_vm2, %v5209_v24  ;;  %v2615_v18 = vsel %vm2139_vm4, %v2612_v33, %v2614_v40 }
 0x10c   : > { %v4359_v61 = vpop.f32.mrf.mxu0  ;;  %4534 = vmatmul.mubr.msk.bf16.gmra.mxu0 %vm481_vm2, %v2611_v41  ;;  %v831_v50 = vadd.f32 %v4325_v36, %v5440_v31  ;;  %4543 = vmatprep.mubr.msk.bf16.mxu1 %vm481_vm2, %v2909_v62  ;;  %v2941_v41 = vshll.u32 %v5358_v58, 16  ;;  %v2918_v9 = vsel %vm2892_vm7, %v2908_v16, %v2917_v39 }
 0x10d   : > { %v5565_v15 = vadd.f32 %v4359_v61, %v815_v60  ;;  %4537 = vmatprep.mubr.msk.bf16.mxu0 %vm481_vm2, %v2613_v17  ;;  %v822_v61 = vpop.f32.mrf.mxu1  ;;  %v2926_v17 = vor.u32 %v2925_v63, %v2922_v47 }
 0x10e   : > { %v1084_v3 = vpop.f32.mrf.mxu0  ;;  %v823_v24 = vadd.f32 %v822_v61, %v5449_v23  ;;  %v2943_v36 = vrot.slane %v2941_v41, 3 }
 0x10f   : > { %v5573_v6 = vadd.f32 %v1084_v3, %v807_v51  ;;  %v4326_v0 = vpop.f32.mrf.mxu1  ;;  %v2931_v51 = vrot.slane %v2929_v26, 2  ;;  %v2927_v23 = vsel %vm2892_vm7, %v2917_v39, %v2926_v17  ;;  %v3345_v3 = vrot.slane %v5338_v2, 3 }
 0x110   : > { %v4360_v60 = vpop.f32.mrf.mxu0  ;;  %v834_v62 = vadd.f32 %v4326_v0, %v5456_v48  ;;  %v6226_v0 = vrot.slane %v5244_v27, 3 }
 0x111   : > { %v5579_v22 = vadd.f32 %v4360_v60, %v818_v45  ;;  %v825_v47 = vpop.f32.mrf.mxu1  ;;  %v2940_v45 = vrot.slane %v2938_v42, 2  ;;  %v2935_v16 = vor.u32 %v2934_v12, %v2931_v51  ;;  %v2956_v60 = vshrl.u32 %v5374_v30, 16 }
 0x112   : > { %v1087_v31 = vpop.f32.mrf.mxu0  ;;  %v826_v33 = vadd.f32 %v825_v47, %v5464_v5  ;;  %v2947_v5 = vshrl.u32 %v5370_v14, 16  ;;  %v2959_v42 = vshll.u32 %v5374_v30, 16 }
 0x113   : > { %v5583_v55 = vadd.f32 %v1087_v31, %v810_v10  ;;  %v4329_v48 = vpop.f32.mrf.mxu1  ;;  %4544 = vmatmul.mubr.msk.bf16.vlgmr.msra.gmra.mxu1 %vm481_vm2, %v2918_v9  ;;  %v3346_v31 = vsel %vm3339_vm6, %v6226_v0, %v3345_v3 }
 0x114   : > { %v4363_v63 = vpop.f32.mrf.mxu0  ;;  %4538 = vmatmul.mubr.msk.bf16.gmra.mxu0 %vm481_vm2, %v2615_v18  ;;  %v847_v26 = vadd.f32 %v4329_v48, %v5472_v44  ;;  %4547 = vmatprep.mubr.msk.bf16.mxu1 %vm481_vm2, %v2927_v23  ;;  %v2936_v18 = vsel %vm2892_vm7, %v2926_v17, %v2935_v16  ;;  %v2949_v9 = vrot.slane %v2947_v5, 2  ;;  %v3349_v48 = vrot.slane %v5358_v58, 3 }
 0x115   : > { %v5589_v40 = vadd.f32 %v4363_v63, %v831_v50  ;;  %4581 = vmatprep.mubr.msk.bf16.mxu0 %vm481_vm2, %v5255_v37  ;;  %v2950_v50 = vshll.u32 %v5370_v14, 16  ;;  %v838_v39 = vpop.f32.mrf.mxu1  ;;  %v2944_v37 = vor.u32 %v2943_v36, %v2940_v45  ;;  %v2961_v45 = vrot.slane %v2959_v42, 3 }
 0x116   : > { %v1100_v10 = vpop.f32.mrf.mxu0  ;;  %v839_v41 = vadd.f32 %v838_v39, %v5481_v46  ;;  %v2974_v39 = vshrl.u32 %v5404_v8, 16 }
 0x117   : > { %v5596_v29 = vadd.f32 %v1100_v10, %v823_v24  ;;  %v4330_v44 = vpop.f32.mrf.mxu1  ;;  %v2952_v47 = vrot.slane %v2950_v50, 3  ;;  %v2945_v46 = vsel %vm2892_vm7, %v2935_v16, %v2944_v37  ;;  %v2968_v10 = vshll.u32 %v5396_v20, 16 }
 0x118   : > { %v4364_v61 = vpop.f32.mrf.mxu0  ;;  %v850_v51 = vadd.f32 %v4330_v44, %v5488_v13  ;;  %v3347_v13 = vrot.slane %v5352_v59, 3 }
 0x119   : > { %v5604_v2 = vadd.f32 %v4364_v61, %v834_v62  ;;  %v841_v63 = vpop.f32.mrf.mxu1  ;;  %v2958_v62 = vrot.slane %v2956_v60, 2  ;;  %v2977_v61 = vshll.u32 %v5404_v8, 16 }
 0x11a   : > { %v1103_v24 = vpop.f32.mrf.mxu0  ;;  %v842_v17 = vadd.f32 %v841_v63, %v5496_v28  ;;  %v2953_v28 = vor.u32 %v2952_v47, %v2949_v9  ;;  %v3348_v42 = vsel %vm3339_vm6, %v3345_v3, %v3347_v13 }
 0x11b   : > { %v5611_v12 = vadd.f32 %v1103_v24, %v826_v33  ;;  %v4333_v36 = vpop.f32.mrf.mxu1  ;;  %4548 = vmatmul.mubr.msk.bf16.gmra.mxu1 %vm481_vm2, %v2936_v18  ;;  %v2962_v59 = vor.u32 %v2961_v45, %v2958_v62  ;;  %v2970_v18 = vrot.slane %v2968_v10, 3  ;;  %v2979_v3 = vrot.slane %v2977_v61, 3 }
 0x11c   : > { %v4367_v23 = vpop.f32.mrf.mxu0  ;;  %4582 = vmatmul.mubr.msk.bf16.vlgmr.msra.gmra.mxu0 %vm481_vm2, %v5263_v43  ;;  %v2965_v43 = vshrl.u32 %v5396_v20, 16  ;;  %v863_v16 = vadd.f32 %v4333_v36, %v5504_v54  ;;  %4551 = vmatprep.mubr.msk.bf16.mxu1 %vm481_vm2, %v2945_v46  ;;  %v2954_v9 = vsel %vm2892_vm7, %v2944_v37, %v2953_v28  ;;  %v2983_v36 = vshrl.u32 %v5428_v53, 16 }
 0x11d   : > { %v5617_v27 = vadd.f32 %v4367_v23, %v847_v26  ;;  %4585 = vmatprep.mubr.msk.bf16.mxu0 %vm481_vm2, %v3346_v31  ;;  %v854_v26 = vpop.f32.mrf.mxu1 }
 0x11e   : > { %v1116_v33 = vpop.f32.mrf.mxu0  ;;  %v855_v58 = vadd.f32 %v854_v26, %v5511_v32  ;;  %v2967_v24 = vrot.slane %v2965_v43, 2  ;;  %v2963_v32 = vsel %vm2892_vm7, %v2953_v28, %v2962_v59 }
 0x11f   : > { %v5626_v5 = vadd.f32 %v1116_v33, %v839_v41  ;;  %v4334_v44 = vpop.f32.mrf.mxu1  ;;  %v3350_v41 = vsel %vm3339_vm6, %v3347_v13, %v3349_v48 }
 0x120   : > { %v4368_v50 = vpop.f32.mrf.mxu0  ;;  %v866_v0 = vadd.f32 %v4334_v44, %v5517_v11  ;;  %v3351_v11 = vrot.slane %v5370_v14, 3  ;;  %v2971_v45 = vor.u32 %v2970_v18, %v2967_v24  ;;  %v2992_v14 = vshrl.u32 %v5436_v49, 16 }
 0x121   : > { %v5632_v60 = vadd.f32 %v4368_v50, %v850_v51  ;;  %v857_v47 = vpop.f32.mrf.mxu1  ;;  %v2976_v51 = vrot.slane %v2974_v39, 2  ;;  %v2985_v44 = vrot.slane %v2983_v36, 2  ;;  %v3013_v36 = vshll.u32 %v5468_v4, 16 }
 0x122   : > { %v1119_v54 = vpop.f32.mrf.mxu0  ;;  %v858_v23 = vadd.f32 %v857_v47, %v5528_v1  ;;  %v2986_v1 = vshll.u32 %v5428_v53, 16  ;;  %v3352_v26 = vsel %vm3339_vm6, %v3349_v48, %v3351_v11  ;;  %v2972_v39 = vsel %vm2892_vm7, %v2962_v59, %v2971_v45 }
 0x123   : > { %v5637_v31 = vadd.f32 %v1119_v54, %v842_v17  ;;  %v4337_v62 = vpop.f32.mrf.mxu1  ;;  %4552 = vmatmul.mubr.msk.bf16.gmra.mxu1 %vm481_vm2, %v2954_v9  ;;  %v3353_v17 = vrot.slane %v5374_v30, 3  ;;  %v2980_v10 = vor.u32 %v2979_v3, %v2976_v51  ;;  %v3001_v51 = vshrl.u32 %v5460_v56, 16 }
 0x124   : > { %v4371_v63 = vpop.f32.mrf.mxu0  ;;  %4586 = vmatmul.mubr.msk.bf16.gmra.mxu0 %vm481_vm2, %v3348_v42  ;;  %4555 = vmatprep.mubr.msk.bf16.mxu1 %vm481_vm2, %v2963_v32  ;;  %v2988_v54 = vrot.slane %v2986_v1, 3  ;;  %v3357_v32 = vrot.slane %v5404_v8, 3  ;;  %v3004_v3 = vshll.u32 %v5460_v56, 16 }
 0x125   : > { %v5643_v46 = vadd.f32 %v4371_v63, %v863_v16  ;;  %4589 = vmatprep.mubr.msk.bf16.mxu0 %vm481_vm2, %v3350_v41  ;;  %v870_v33 = vpop.f32.mrf.mxu1  ;;  %v2995_v16 = vshll.u32 %v5436_v49, 16  ;;  %v3354_v61 = vsel %vm3339_vm6, %v3351_v11, %v3353_v17  ;;  %v2981_v18 = vsel %vm2892_vm7, %v2971_v45, %v2980_v10 }
 0x126   : > { %v1132_v37 = vpop.f32.mrf.mxu0  ;;  %v871_v9 = vadd.f32 %v870_v33, %v5390_v38  ;;  %v2989_v38 = vor.u32 %v2988_v54, %v2985_v44  ;;  %v3010_v45 = vshrl.u32 %v5468_v4, 16 }
 0x127   : > { %v5649_v13 = vadd.f32 %v1132_v37, %v855_v58  ;;  %v4338_v30 = vpop.f32.mrf.mxu1  ;;  %v879_v58 = vadd.f32 %v4337_v62, %v5381_v52  ;;  %v2997_v48 = vrot.slane %v2995_v16, 3  ;;  %v3355_v52 = vrot.slane %v5396_v20, 3 }
 0x128   : > { %v4372_v43 = vpop.f32.mrf.mxu0  ;;  %v3003_v16 = vrot.slane %v3001_v51, 2  ;;  %v3012_v44 = vrot.slane %v3010_v45, 2 }
 0x129   : > { %v5656_v28 = vadd.f32 %v4372_v43, %v866_v0  ;;  %v873_v41 = vpop.f32.mrf.mxu1  ;;  %v2994_v0 = vrot.slane %v2992_v14, 2  ;;  %v3356_v33 = vsel %vm3339_vm6, %v3353_v17, %v3355_v52  ;;  %v3358_v14 = vsel %vm3339_vm6, %v3355_v52, %v3357_v32 }
 0x12a   : > { %v1135_v50 = vpop.f32.mrf.mxu0  ;;  %v874_v8 = vadd.f32 %v873_v41, %v5406_v25  ;;  %v3015_v17 = vrot.slane %v3013_v36, 3 }
 0x12b   : > { %v5662_v42 = vadd.f32 %v1135_v50, %v858_v23  ;;  %v4341_v59 = vpop.f32.mrf.mxu1  ;;  %4556 = vmatmul.mubr.msk.bf16.gmra.mxu1 %vm481_vm2, %v2972_v39  ;;  %v882_v23 = vadd.f32 %v4338_v30, %v5398_v7  ;;  %v2998_v20 = vor.u32 %v2997_v48, %v2994_v0  ;;  %v2990_v39 = vsel %vm2892_vm7, %v2980_v10, %v2989_v38  ;;  %v6227_v48 = vld [vmem:[#allocation2_spill] sm:$0xff] }
 0x12c   : > { %v4375_v24 = vpop.f32.mrf.mxu0  ;;  %4590 = vmatmul.mubr.msk.bf16.gmra.mxu0 %vm481_vm2, %v3352_v26  ;;  %4559 = vmatprep.mubr.msk.bf16.mxu1 %vm481_vm2, %v2981_v18  ;;  %v3006_v26 = vrot.slane %v3004_v3, 3  ;;  %v895_v30 = vadd.f32 %v4341_v59, %v5413_v34  ;;  %v3359_v34 = vrot.slane %v5428_v53, 3  ;;  %v3361_v0 = vrot.slane %v5436_v49, 3 }
 0x12d   : > { %v5667_v47 = vadd.f32 %v4375_v24, %v879_v58  ;;  %4593 = vmatprep.mubr.msk.bf16.mxu0 %vm481_vm2, %v3354_v61  ;;  %v886_v62 = vpop.f32.mrf.mxu1  ;;  %v2999_v25 = vsel %vm2892_vm7, %v2989_v38, %v2998_v20  ;;  %v3016_v53 = vor.u32 %v3015_v17, %v3012_v44  ;;  %v6232_v17 = vld [vmem:[#allocation5_spill] sm:$0xff] }
 0x12e   : > { %v1148_v63 = vpop.f32.mrf.mxu0  ;;  %v887_v54 = vadd.f32 %v886_v62, %v5422_v35  ;;  %v3007_v18 = vor.u32 %v3006_v26, %v3003_v16  ;;  %v6228_v35 = vld [vmem:[#allocation10_spill] sm:$0xff]  ;;  %v3360_v36 = vsel %vm3339_vm6, %v3357_v32, %v3359_v34 }
 0x12f   : > { %v5676_v11 = vadd.f32 %v1148_v63, %v871_v9  ;;  %v4342_v43 = vpop.f32.mrf.mxu1  ;;  %v3019_v59 = vshrl.u32 %v6228_v35, 16  ;;  %v3022_v63 = vshll.u32 %v6228_v35, 16 }
 0x130   : > { %v4376_v37 = vpop.f32.mrf.mxu0  ;;  %v898_v9 = vadd.f32 %v4342_v43, %v6227_v48  ;;  %v3008_v43 = vsel %vm2892_vm7, %v2998_v20, %v3007_v18  ;;  %v3363_v20 = vrot.slane %v5460_v56, 3  ;;  %v3365_v48 = vrot.slane %v5468_v4, 3  ;;  %v6235_v4 = vld [vmem:[#allocation7_spill] sm:$0xff] }
 0x131   : > { %v5682_v1 = vadd.f32 %v4376_v37, %v882_v23  ;;  %v889_v61 = vpop.f32.mrf.mxu1  ;;  %v6229_v23 = vld [vmem:[#allocation12_spill] sm:$0xff]  ;;  %v6230_v37 = vld [vmem:[#allocation3_spill] sm:$0xff] }
 0x132   : > { %v1151_v7 = vpop.f32.mrf.mxu0  ;;  %v3028_v38 = vshrl.u32 %v6229_v23, 16  ;;  %v3031_v62 = vshll.u32 %v6229_v23, 16  ;;  %v890_v45 = vadd.f32 %v889_v61, %v6230_v37  ;;  %v3017_v61 = vsel %vm2892_vm7, %v3007_v18, %v3016_v53  ;;  %v6234_v37 = vld [vmem:[#allocation14_spill] sm:$0xff] }
 0x133   : > { %v5687_v50 = vadd.f32 %v1151_v7, %v874_v8  ;;  %v4345_v24 = vpop.f32.mrf.mxu1  ;;  %4560 = vmatmul.mubr.msk.bf16.gmra.mxu1 %vm481_vm2, %v2990_v39  ;;  %v3362_v7 = vsel %vm3339_vm6, %v3359_v34, %v3361_v0  ;;  %v3024_v39 = vrot.slane %v3022_v63, 3  ;;  %v3040_v18 = vshll.u32 %v5526_v57, 16 }
 0x134   : > { %v4379_v58 = vpop.f32.mrf.mxu0  ;;  %4594 = vmatmul.mubr.msk.bf16.gmra.mxu0 %vm481_vm2, %v3356_v33  ;;  %4563 = vmatprep.mubr.msk.bf16.mxu1 %vm481_vm2, %v2999_v25  ;;  %v3030_v44 = vrot.slane %v3028_v38, 2  ;;  %v3033_v32 = vrot.slane %v3031_v62, 3 }
 0x135   : > { %v5693_v41 = vadd.f32 %v4379_v58, %v895_v30  ;;  %4597 = vmatprep.mubr.msk.bf16.mxu0 %vm481_vm2, %v3358_v14  ;;  %v902_v51 = vpop.f32.mrf.mxu1  ;;  %v6231_v14 = vld [vmem:[#allocation4_spill] sm:$0xff]  ;;  %v3021_v30 = vrot.slane %v3019_v59, 2  ;;  %v6233_v59 = vld [vmem:[#allocation6_spill] sm:$0xff] }
 0x136   : > { %v1164_v10 = vpop.f32.mrf.mxu0  ;;  %v911_v16 = vadd.f32 %v4345_v24, %v6231_v14  ;;  %v3034_v62 = vor.u32 %v3033_v32, %v3030_v44 }
 0x137   : > { %v5700_v52 = vadd.f32 %v1164_v10, %v887_v54  ;;  %v4346_v8 = vpop.f32.mrf.mxu1  ;;  %v903_v54 = vadd.f32 %v902_v51, %v6232_v17  ;;  %v3025_v51 = vor.u32 %v3024_v39, %v3021_v30  ;;  %v5739_v30 = vld [vmem:[%s4762_s26 + $0xa0] ss:$0 sps:$4 sm:$0x77]   ;;  %v6236_v39 = vld [vmem:[#allocation8_spill] sm:$0xff] }
 0x138   : > { %v4380_v3 = vpop.f32.mrf.mxu0  ;;  %v914_v63 = vadd.f32 %v4346_v8, %v6233_v59 }
 0x139   : > { %v5708_v49 = vadd.f32 %v4380_v3, %v898_v9  ;;  %v905_v58 = vpop.f32.mrf.mxu1  ;;  %v3037_v9 = vshrl.u32 %v5526_v57, 16  ;;  %v3026_v17 = vsel %vm2892_vm7, %v3016_v53, %v3025_v51 }
 0x13a   : > { %v1167_v33 = vpop.f32.mrf.mxu0 }
 0x13b   : > { %v5714_v26 = vadd.f32 %v1167_v33, %v890_v45  ;;  %v4349_v34 = vpop.f32.mrf.mxu1  ;;  %4564 = vmatmul.mubr.msk.bf16.gmra.mxu1 %vm481_vm2, %v3008_v43  ;;  %v3046_v45 = vshrl.u32 %v6234_v37, 16  ;;  %v906_v33 = vadd.f32 %v905_v58, %v6235_v4  ;;  %v3369_v4 = vrot.slane %v6229_v23, 3 }
 0x13c   : > { %v4383_v25 = vpop.f32.mrf.mxu0  ;;  %4598 = vmatmul.mubr.msk.bf16.gmra.mxu0 %vm481_vm2, %v3360_v36  ;;  %4567 = vmatprep.mubr.msk.bf16.mxu1 %vm481_vm2, %v3017_v61  ;;  %v3049_v36 = vshll.u32 %v6234_v37, 16  ;;  %v3042_v61 = vrot.slane %v3040_v18, 3  ;;  %v927_v44 = vadd.f32 %v4349_v34, %v6236_v39  ;;  %v3367_v34 = vrot.slane %v6228_v35, 3 }
 0x13d   : > { %v5719_v10 = vadd.f32 %v4383_v25, %v911_v16  ;;  %4601 = vmatprep.mubr.msk.bf16.mxu0 %vm481_vm2, %v3362_v7  ;;  %v918_v38 = vpop.f32.mrf.mxu1  ;;  %v3364_v7 = vsel %vm3339_vm6, %v3361_v0, %v3363_v20  ;;  %v3366_v16 = vsel %vm3339_vm6, %v3363_v20, %v3365_v48  ;;  %v3039_v25 = vrot.slane %v3037_v9, 2 }
 0x13e   : > { %v1180_v24 = vpop.f32.mrf.mxu0  ;;  %v3035_v0 = vsel %vm2892_vm7, %v3025_v51, %v3034_v62  ;;  %v3051_v59 = vrot.slane %v3049_v36, 3  ;;  %v6238_v51 = vld [vmem:[#allocation11_spill] sm:$0xff] }
 0x13f   : > { %v5728_v3 = vadd.f32 %v1180_v24, %v903_v54  ;;  %v4350_v8 = vpop.f32.mrf.mxu1  ;;  %v3048_v24 = vrot.slane %v3046_v45, 2  ;;  %v6239_v36 = vld [vmem:[#allocation15_spill] sm:$0xff] }
 0x140   : > { %v4384_v56 = vpop.f32.mrf.mxu0  ;;  %v930_v45 = vadd.f32 %v4350_v8, %v6238_v51 }
 0x141   : > { %v5734_v43 = vadd.f32 %v4384_v56, %v914_v63  ;;  %v921_v54 = vpop.f32.mrf.mxu1  ;;  %v6237_v63 = vld [vmem:[#allocation9_spill] sm:$0xff]  ;;  %v3043_v56 = vor.u32 %v3042_v61, %v3039_v25  ;;  %v3052_v39 = vor.u32 %v3051_v59, %v3048_v24  ;;  %v6241_v25 = vld [vmem:[#allocation16_spill] sm:$0xff] }
 0x142   : > { %v1183_v14 = vpop.f32.mrf.mxu0  ;;  %v919_v20 = vadd.f32 %v918_v38, %v6237_v63 }
 0x143   : > { %v5742_v32 = vadd.f32 %v1183_v14, %v906_v33  ;;  %v4393_v18 = vpop.f32.mrf.mxu1  ;;  %4568 = vmatmul.mubr.msk.bf16.gmra.mxu1 %vm481_vm2, %v3026_v17  ;;  %v3055_v33 = vshrl.u32 %v5739_v30, 16  ;;  %v3058_v14 = vshll.u32 %v5739_v30, 16 }
 0x144   : > { %v4387_v58 = vpop.f32.mrf.mxu0  ;;  %4602 = vmatmul.mubr.msk.bf16.gmra.mxu0 %vm481_vm2, %v3364_v7  ;;  %v1652_v7 = vadd.f32 %v4393_v18, %v6239_v36  ;;  %4571 = vmatprep.mubr.msk.bf16.mxu1 %vm481_vm2, %v3035_v0  ;;  %v3370_v18 = vsel %vm3339_vm6, %v3367_v34, %v3369_v4 }
 0x145   : > { %v5748_v9 = vadd.f32 %v4387_v58, %v927_v44  ;;  %4605 = vmatprep.mubr.msk.bf16.mxu0 %vm481_vm2, %v3366_v16  ;;  %v1507_v35 = vpop.f32.mrf.mxu1  ;;  %v6240_v44 = vld [vmem:[#allocation13_spill] sm:$0xff]  ;;  %v3368_v58 = vsel %vm3339_vm6, %v3365_v48, %v3367_v34  ;;  %v3057_v51 = vrot.slane %v3055_v33, 2  ;;  %v3060_v24 = vrot.slane %v3058_v14, 3 }
 0x146   : > { %v1196_v53 = vpop.f32.mrf.mxu0  ;;  %v922_v17 = vadd.f32 %v921_v54, %v6240_v44  ;;  %v1650_v61 = vadd.f32 %v1507_v35, %v6241_v25  ;;  %v3373_v33 = vrot.slane %v6234_v37, 3 }
 0x147   : > { %v5757_v38 = vadd.f32 %v1196_v53, %v919_v20  ;;  %v4394_v8 = vpop.f32.mrf.mxu1  ;;  %v3044_v20 = vsel %vm2892_vm7, %v3034_v62, %v3043_v56  ;;  %v3371_v62 = vrot.slane %v5526_v57, 3 }
 0x148   : > { %v4388_v16 = vpop.f32.mrf.mxu0  ;;  %v1653_v0 = vadd.f32 %v4394_v8, %v5554_v19 }
 0x149   : > { %v5763_v23 = vadd.f32 %v4388_v16, %v930_v45  ;;  %v1510_v59 = vpop.f32.mrf.mxu1  ;;  %v3053_v45 = vsel %vm2892_vm7, %v3043_v56, %v3052_v39  ;;  %v3061_v56 = vor.u32 %v3060_v24, %v3057_v51  ;;  %v3372_v57 = vsel %vm3339_vm6, %v3369_v4, %v3371_v62 }
 0x14a   : > { %v1199_v63 = vpop.f32.mrf.mxu0  ;;  %v1651_v48 = vadd.f32 %v1510_v59, %v5560_v21  ;;  %v3375_v4 = vrot.slane %v5739_v30, 3 }
 0x14b   : > { %v5769_v53 = vadd.f32 %v1199_v63, %v922_v17  ;;  %v4397_v34 = vpop.f32.mrf.mxu1  ;;  %4572 = vmatmul.mubr.msk.bf16.gmra.mxu1 %vm481_vm2, %v3044_v20 }
 0x14c   : > { %v4431_v54 = vpop.f32.mrf.mxu0  ;;  %4606 = vmatmul.mubr.msk.bf16.gmra.mxu0 %vm481_vm2, %v3368_v58  ;;  %v1656_v14 = vadd.f32 %v4397_v34, %v5565_v15  ;;  %4575 = vmatprep.mubr.msk.bf16.mxu1 %vm481_vm2, %v3053_v45  ;;  %v3374_v58 = vsel %vm3339_vm6, %v3371_v62, %v3373_v33 }
 0x14d   : > { %v5774_v36 = vadd.f32 %v4431_v54, %v1652_v7  ;;  %4609 = vmatprep.mubr.msk.bf16.mxu0 %vm481_vm2, %v3370_v18  ;;  %v1523_v21 = vpop.f32.mrf.mxu1 }
 0x14e   : > { %v1954_v19 = vpop.f32.mrf.mxu0  ;;  %v1654_v16 = vadd.f32 %v1523_v21, %v5573_v6 }
 0x14f   : > { %v5781_v35 = vadd.f32 %v1954_v19, %v1650_v61  ;;  %v4398_v17 = vpop.f32.mrf.mxu1  ;;  %v3062_v61 = vsel %vm2892_vm7, %v3052_v39, %v3061_v56 }
 0x150   : > { %v4432_v7 = vpop.f32.mrf.mxu0  ;;  %v1657_v37 = vadd.f32 %v4398_v17, %v5579_v22 }
 0x151   : > { %v5785_v44 = vadd.f32 %v4432_v7, %v1653_v0  ;;  %v1526_v8 = vpop.f32.mrf.mxu1 }
 0x152   : > { %v1957_v25 = vpop.f32.mrf.mxu0  ;;  %v1655_v6 = vadd.f32 %v1526_v8, %v5583_v55  ;;  %v3376_v55 = vsel %vm3339_vm6, %v3373_v33, %v3375_v4 }
 0x153   : > { %v5790_v15 = vadd.f32 %v1957_v25, %v1651_v48  ;;  %v4401_v18 = vpop.f32.mrf.mxu1  ;;  %4576 = vmatmul.mubr.msk.bf16.gmra.mxu1 %vm481_vm2, %v3062_v61 }
 0x154   : > { %v4435_v63 = vpop.f32.mrf.mxu0  ;;  %4610 = vmatmul.mubr.msk.bf16.gmra.mxu0 %vm481_vm2, %v3372_v57  ;;  %v1660_v0 = vadd.f32 %v4401_v18, %v5589_v40 }
 0x155   : > { %v5795_v20 = vadd.f32 %v4435_v63, %v1656_v14  ;;  %4613 = vmatprep.mubr.msk.bf16.mxu0 %vm481_vm2, %v3374_v58  ;;  %v1539_v39 = vpop.f32.mrf.mxu1 }
 0x156   : > { %v1970_v22 = vpop.f32.mrf.mxu0  ;;  %v1658_v59 = vadd.f32 %v1539_v39, %v5596_v29 }
 0x157   : > { %v5801_v51 = vadd.f32 %v1970_v22, %v1654_v16  ;;  %v4402_v45 = vpop.f32.mrf.mxu1 }
 0x158   : > { %v4436_v24 = vpop.f32.mrf.mxu0  ;;  %v1661_v30 = vadd.f32 %v4402_v45, %v5604_v2 }
 0x159   : > { %v5804_v54 = vadd.f32 %v4436_v24, %v1657_v37  ;;  %v1542_v34 = vpop.f32.mrf.mxu1 }
 0x15a   : > { %v1973_v48 = vpop.f32.mrf.mxu0  ;;  %v1659_v40 = vadd.f32 %v1542_v34, %v5611_v12 }
 0x15b   : > { %v5808_v62 = vadd.f32 %v1973_v48, %v1655_v6  ;;  %v4405_v56 = vpop.f32.mrf.mxu1 }
 0x15c   : > { %v4439_v19 = vpop.f32.mrf.mxu0  ;;  %4614 = vmatmul.mubr.msk.bf16.gmra.mxu0 %vm481_vm2, %v3376_v55  ;;  %v1664_v21 = vadd.f32 %v4405_v56, %v5617_v27 }
 0x15d   : > { %v5812_v14 = vadd.f32 %v4439_v19, %v1660_v0  ;;  %v1555_v33 = vpop.f32.mrf.mxu1 }
 0x15e   : > { %v1986_v29 = vpop.f32.mrf.mxu0  ;;  %v1662_v2 = vadd.f32 %v1555_v33, %v5626_v5 }
 0x15f   : > { %v5815_v7 = vadd.f32 %v1986_v29, %v1658_v59  ;;  %v4406_v17 = vpop.f32.mrf.mxu1 }
 0x160   : > { %v4440_v16 = vpop.f32.mrf.mxu0  ;;  %v1665_v58 = vadd.f32 %v4406_v17, %v5632_v60 }
 0x161   : > { %v5818_v57 = vadd.f32 %v4440_v16, %v1661_v30  ;;  %v1558_v12 = vpop.f32.mrf.mxu1 }
 0x162   : > { %v1989_v25 = vpop.f32.mrf.mxu0  ;;  %v1663_v8 = vadd.f32 %v1558_v12, %v5637_v31 }
 0x163   : > { %v5821_v37 = vadd.f32 %v1989_v25, %v1659_v40  ;;  %v4409_v27 = vpop.f32.mrf.mxu1 }
 0x164   : > { %v4443_v61 = vpop.f32.mrf.mxu0  ;;  %v1668_v4 = vadd.f32 %v4409_v27, %v5643_v46 }
 0x165   : > { %v5824_v63 = vadd.f32 %v4443_v61, %v1664_v21  ;;  %v1571_v5 = vpop.f32.mrf.mxu1 }
 0x166   : > { %v2002_v6 = vpop.f32.mrf.mxu0  ;;  %v1666_v0 = vadd.f32 %v1571_v5, %v5649_v13 }
 0x167   : > { %v5827_v18 = vadd.f32 %v2002_v6, %v1662_v2  ;;  %v4410_v60 = vpop.f32.mrf.mxu1 }
 0x168   : > { %v4444_v22 = vpop.f32.mrf.mxu0  ;;  %v1669_v59 = vadd.f32 %v4410_v60, %v5656_v28 }
 0x169   : > { %v5830_v39 = vadd.f32 %v4444_v22, %v1665_v58  ;;  %v1574_v31 = vpop.f32.mrf.mxu1 }
 0x16a   : > { %v2005_v24 = vpop.f32.mrf.mxu0  ;;  %v1667_v48 = vadd.f32 %v1574_v31, %v5662_v42 }
 0x16b   : > { %v5833_v55 = vadd.f32 %v2005_v24, %v1663_v8  ;;  %v4413_v46 = vpop.f32.mrf.mxu1 }
 0x16c   : > { %v4447_v45 = vpop.f32.mrf.mxu0  ;;  %v1672_v19 = vadd.f32 %v4413_v46, %v5667_v47 }
 0x16d   : > { %v5836_v30 = vadd.f32 %v4447_v45, %v1668_v4  ;;  %v1587_v13 = vpop.f32.mrf.mxu1 }
 0x16e   : > { %v2018_v34 = vpop.f32.mrf.mxu0  ;;  %v1670_v29 = vadd.f32 %v1587_v13, %v5676_v11 }
 0x16f   : > { %v5839_v40 = vadd.f32 %v2018_v34, %v1666_v0  ;;  %v4414_v28 = vpop.f32.mrf.mxu1 }
 0x170   : > { %v4448_v56 = vpop.f32.mrf.mxu0  ;;  %v1673_v16 = vadd.f32 %v4414_v28, %v5682_v1 }
 0x171   : > { %v5842_v21 = vadd.f32 %v4448_v56, %v1669_v59  ;;  %v1590_v42 = vpop.f32.mrf.mxu1 }
 0x172   : > { %v2021_v33 = vpop.f32.mrf.mxu0  ;;  %v1671_v25 = vadd.f32 %v1590_v42, %v5687_v50 }
 0x173   : > { %v5845_v2 = vadd.f32 %v2021_v33, %v1667_v48  ;;  %v4417_v47 = vpop.f32.mrf.mxu1 }
 0x174   : > { %v4451_v17 = vpop.f32.mrf.mxu0  ;;  %v1676_v61 = vadd.f32 %v4417_v47, %v5693_v41 }
 0x175   : > { %v5848_v58 = vadd.f32 %v4451_v17, %v1672_v19  ;;  %v1603_v11 = vpop.f32.mrf.mxu1 }
 0x176   : > { %v2034_v12 = vpop.f32.mrf.mxu0  ;;  %v1674_v6 = vadd.f32 %v1603_v11, %v5700_v52 }
 0x177   : > { %v5851_v8 = vadd.f32 %v2034_v12, %v1670_v29  ;;  %v4418_v1 = vpop.f32.mrf.mxu1 }
 0x178   : > { %v4452_v27 = vpop.f32.mrf.mxu0  ;;  %v1677_v22 = vadd.f32 %v4418_v1, %v5708_v49 }
 0x179   : > { %v5854_v4 = vadd.f32 %v4452_v27, %v1673_v16  ;;  %v1606_v50 = vpop.f32.mrf.mxu1 }
 0x17a   : > { %v2037_v5 = vpop.f32.mrf.mxu0  ;;  %v1675_v24 = vadd.f32 %v1606_v50, %v5714_v26 }
 0x17b   : > { %v5857_v0 = vadd.f32 %v2037_v5, %v1671_v25  ;;  %v4421_v41 = vpop.f32.mrf.mxu1 }
 0x17c   : > { %v4455_v60 = vpop.f32.mrf.mxu0  ;;  %v1680_v45 = vadd.f32 %v4421_v41, %v5719_v10 }
 0x17d   : > { %v5860_v59 = vadd.f32 %v4455_v60, %v1676_v61  ;;  %v1619_v52 = vpop.f32.mrf.mxu1 }
 0x17e   : > { %v2050_v31 = vpop.f32.mrf.mxu0  ;;  %v1678_v34 = vadd.f32 %v1619_v52, %v5728_v3 }
 0x17f   : > { %v5863_v48 = vadd.f32 %v2050_v31, %v1674_v6  ;;  %v4422_v49 = vpop.f32.mrf.mxu1 }
 0x180   : > { %v4456_v46 = vpop.f32.mrf.mxu0  ;;  %v1681_v56 = vadd.f32 %v4422_v49, %v5734_v43 }
 0x181   : > { %v5866_v19 = vadd.f32 %v4456_v46, %v1677_v22  ;;  %v1622_v26 = vpop.f32.mrf.mxu1 }
 0x182   : > { %v2053_v13 = vpop.f32.mrf.mxu0  ;;  %v1679_v33 = vadd.f32 %v1622_v26, %v5742_v32 }
 0x183   : > { %v5869_v29 = vadd.f32 %v2053_v13, %v1675_v24  ;;  %v4425_v10 = vpop.f32.mrf.mxu1 }
 0x184   : > { %v4459_v28 = vpop.f32.mrf.mxu0  ;;  %v1684_v17 = vadd.f32 %v4425_v10, %v5748_v9 }
 0x185   : > { %v5872_v16 = vadd.f32 %v4459_v28, %v1680_v45  ;;  %v1635_v3 = vpop.f32.mrf.mxu1 }
 0x186   : > { %v2066_v42 = vpop.f32.mrf.mxu0  ;;  %v1682_v12 = vadd.f32 %v1635_v3, %v5757_v38 }
 0x187   : > { %v5875_v25 = vadd.f32 %v2066_v42, %v1678_v34  ;;  %v4426_v43 = vpop.f32.mrf.mxu1 }
 0x188   : > { %v4460_v47 = vpop.f32.mrf.mxu0  ;;  %v1685_v27 = vadd.f32 %v4426_v43, %v5763_v23 }
 0x189   : > { %v5878_v61 = vadd.f32 %v4460_v47, %v1681_v56  ;;  %v1638_v32 = vpop.f32.mrf.mxu1 }
 0x18a   : > { %v2069_v11 = vpop.f32.mrf.mxu0  ;;  %v1683_v5 = vadd.f32 %v1638_v32, %v5769_v53 }
 0x18b   : > { %v5881_v6 = vadd.f32 %v2069_v11, %v1679_v33  ;;  %v4469_v9 = vpop.f32.mrf.mxu1 }
 0x18c   : > { %v4463_v1 = vpop.f32.mrf.mxu0  ;;  %v2413_v60 = vadd.f32 %v4469_v9, %v5774_v36 }
 0x18d   : > { %v5884_v22 = vadd.f32 %v4463_v1, %v1684_v17  ;;  %v2268_v38 = vpop.f32.mrf.mxu1 }
 0x18e   : > { %v2082_v50 = vpop.f32.mrf.mxu0  ;;  %v2411_v31 = vadd.f32 %v2268_v38, %v5781_v35 }
 0x18f   : > { %v5887_v24 = vadd.f32 %v2082_v50, %v1682_v12  ;;  %v4470_v23 = vpop.f32.mrf.mxu1 }
 0x190   : > { %v4464_v41 = vpop.f32.mrf.mxu0  ;;  %v2414_v46 = vadd.f32 %v4470_v23, %v5785_v44 }
 0x191   : > { %v5890_v45 = vadd.f32 %v4464_v41, %v1685_v27  ;;  %v2271_v53 = vpop.f32.mrf.mxu1 }
 0x192   : > { %v2085_v52 = vpop.f32.mrf.mxu0  ;;  %v2412_v13 = vadd.f32 %v2271_v53, %v5790_v15 }
 0x193   : > { %v5893_v34 = vadd.f32 %v2085_v52, %v1683_v5  ;;  %v4473_v36 = vpop.f32.mrf.mxu1 }
 0x194   : > { %v4507_v49 = vpop.f32.mrf.mxu0  ;;  %v2417_v28 = vadd.f32 %v4473_v36, %v5795_v20 }
 0x195   : > { %v5896_v56 = vadd.f32 %v4507_v49, %v2413_v60  ;;  %v2284_v35 = vpop.f32.mrf.mxu1 }
 0x196   : > { %v2707_v26 = vpop.f32.mrf.mxu0  ;;  %v2415_v42 = vadd.f32 %v2284_v35, %v5801_v51 }
 0x197   : > { %v5899_v33 = vadd.f32 %v2707_v26, %v2411_v31  ;;  %v4474_v44 = vpop.f32.mrf.mxu1 }
 0x198   : > { %v4508_v10 = vpop.f32.mrf.mxu0  ;;  %v2418_v47 = vadd.f32 %v4474_v44, %v5804_v54 }
 0x199   : > { %v5902_v17 = vadd.f32 %v4508_v10, %v2414_v46  ;;  %v2287_v15 = vpop.f32.mrf.mxu1 }
 0x19a   : > { %v2710_v3 = vpop.f32.mrf.mxu0  ;;  %v2416_v11 = vadd.f32 %v2287_v15, %v5808_v62 }
 0x19b   : > { %v5905_v12 = vadd.f32 %v2710_v3, %v2412_v13  ;;  %v4477_v20 = vpop.f32.mrf.mxu1 }
 0x19c   : > { %v4511_v43 = vpop.f32.mrf.mxu0  ;;  %v2421_v1 = vadd.f32 %v4477_v20, %v5812_v14 }
 0x19d   : > { %v5908_v27 = vadd.f32 %v4511_v43, %v2417_v28  ;;  %v2300_v51 = vpop.f32.mrf.mxu1 }
 0x19e   : > { %v2723_v32 = vpop.f32.mrf.mxu0  ;;  %v2419_v50 = vadd.f32 %v2300_v51, %v5815_v7 }
 0x19f   : > { %v5911_v5 = vadd.f32 %v2723_v32, %v2415_v42  ;;  %v4478_v54 = vpop.f32.mrf.mxu1 }
 0x1a0   : > { %v4512_v9 = vpop.f32.mrf.mxu0  ;;  %v2422_v41 = vadd.f32 %v4478_v54, %v5818_v57 }
 0x1a1   : > { %v5914_v60 = vadd.f32 %v4512_v9, %v2418_v47  ;;  %v2303_v62 = vpop.f32.mrf.mxu1 }
 0x1a2   : > { %v2726_v38 = vpop.f32.mrf.mxu0  ;;  %v2420_v52 = vadd.f32 %v2303_v62, %v5821_v37 }
 0x1a3   : > { %v5917_v31 = vadd.f32 %v2726_v38, %v2416_v11  ;;  %v4481_v14 = vpop.f32.mrf.mxu1 }
 0x1a4   : > { %v4515_v23 = vpop.f32.mrf.mxu0  ;;  %v2425_v49 = vadd.f32 %v4481_v14, %v5824_v63 }
 0x1a5   : > { %v5920_v46 = vadd.f32 %v4515_v23, %v2421_v1  ;;  %v2316_v7 = vpop.f32.mrf.mxu1 }
 0x1a6   : > { %v2739_v53 = vpop.f32.mrf.mxu0  ;;  %v2423_v26 = vadd.f32 %v2316_v7, %v5827_v18 }
 0x1a7   : > { %v5923_v13 = vadd.f32 %v2739_v53, %v2419_v50  ;;  %v4482_v57 = vpop.f32.mrf.mxu1 }
 0x1a8   : > { %v4516_v36 = vpop.f32.mrf.mxu0  ;;  %v2426_v10 = vadd.f32 %v4482_v57, %v5830_v39 }
 0x1a9   : > { %v5926_v28 = vadd.f32 %v4516_v36, %v2422_v41  ;;  %v2319_v37 = vpop.f32.mrf.mxu1 }
 0x1aa   : > { %v2742_v35 = vpop.f32.mrf.mxu0  ;;  %v2424_v3 = vadd.f32 %v2319_v37, %v5833_v55 }
 0x1ab   : > { %v5929_v42 = vadd.f32 %v2742_v35, %v2420_v52  ;;  %v4485_v63 = vpop.f32.mrf.mxu1 }
 0x1ac   : > { %v4519_v44 = vpop.f32.mrf.mxu0  ;;  %v2429_v43 = vadd.f32 %v4485_v63, %v5836_v30 }
 0x1ad   : > { %v5932_v47 = vadd.f32 %v4519_v44, %v2425_v49  ;;  %v2332_v18 = vpop.f32.mrf.mxu1 }
 0x1ae   : > { %v2755_v15 = vpop.f32.mrf.mxu0  ;;  %v2427_v32 = vadd.f32 %v2332_v18, %v5839_v40 }
 0x1af   : > { %v5935_v11 = vadd.f32 %v2755_v15, %v2423_v26  ;;  %v4486_v39 = vpop.f32.mrf.mxu1 }
 0x1b0   : > { %v4520_v20 = vpop.f32.mrf.mxu0  ;;  %v2430_v9 = vadd.f32 %v4486_v39, %v5842_v21 }
 0x1b1   : > { %v5938_v1 = vadd.f32 %v4520_v20, %v2426_v10  ;;  %v2335_v55 = vpop.f32.mrf.mxu1 }
 0x1b2   : > { %v2758_v51 = vpop.f32.mrf.mxu0  ;;  %v2428_v38 = vadd.f32 %v2335_v55, %v5845_v2 }
 0x1b3   : > { %v5941_v50 = vadd.f32 %v2758_v51, %v2424_v3  ;;  %v4489_v30 = vpop.f32.mrf.mxu1 }
 0x1b4   : > { %v4523_v54 = vpop.f32.mrf.mxu0  ;;  %v2433_v23 = vadd.f32 %v4489_v30, %v5848_v58 }
 0x1b5   : > { %v5944_v41 = vadd.f32 %v4523_v54, %v2429_v43  ;;  %v2348_v40 = vpop.f32.mrf.mxu1 }
 0x1b6   : > { %v2771_v62 = vpop.f32.mrf.mxu0  ;;  %v2431_v53 = vadd.f32 %v2348_v40, %v5851_v8 }
 0x1b7   : > { %v5947_v52 = vadd.f32 %v2771_v62, %v2427_v32  ;;  %v4490_v21 = vpop.f32.mrf.mxu1 }
 0x1b8   : > { %v4524_v14 = vpop.f32.mrf.mxu0  ;;  %v2434_v36 = vadd.f32 %v4490_v21, %v5854_v4 }
 0x1b9   : > { %v5950_v49 = vadd.f32 %v4524_v14, %v2430_v9  ;;  %v2351_v2 = vpop.f32.mrf.mxu1 }
 0x1ba   : > { %v2774_v7 = vpop.f32.mrf.mxu0  ;;  %v2432_v35 = vadd.f32 %v2351_v2, %v5857_v0 }
 0x1bb   : > { %v5953_v26 = vadd.f32 %v2774_v7, %v2428_v38  ;;  %v4493_v58 = vpop.f32.mrf.mxu1 }
 0x1bc   : > { %v4527_v57 = vpop.f32.mrf.mxu0  ;;  %v2437_v44 = vadd.f32 %v4493_v58, %v5860_v59 }
 0x1bd   : > { %v5956_v10 = vadd.f32 %v4527_v57, %v2433_v23  ;;  %v2364_v8 = vpop.f32.mrf.mxu1 }
 0x1be   : > { %v2787_v37 = vpop.f32.mrf.mxu0  ;;  %v2435_v15 = vadd.f32 %v2364_v8, %v5863_v48 }
 0x1bf   : > { %v5959_v3 = vadd.f32 %v2787_v37, %v2431_v53  ;;  %v4494_v4 = vpop.f32.mrf.mxu1 }
 0x1c0   : > { %v4528_v63 = vpop.f32.mrf.mxu0  ;;  %v2438_v20 = vadd.f32 %v4494_v4, %v5866_v19 }
 0x1c1   : > { %v5962_v43 = vadd.f32 %v4528_v63, %v2434_v36  ;;  %v2367_v0 = vpop.f32.mrf.mxu1 }
 0x1c2   : > { %v2790_v18 = vpop.f32.mrf.mxu0  ;;  %v2436_v51 = vadd.f32 %v2367_v0, %v5869_v29 }
 0x1c3   : > { %v5965_v32 = vadd.f32 %v2790_v18, %v2432_v35  ;;  %v4497_v59 = vpop.f32.mrf.mxu1 }
 0x1c4   : > { %v4531_v39 = vpop.f32.mrf.mxu0  ;;  %v2441_v54 = vadd.f32 %v4497_v59, %v5872_v16 }
 0x1c5   : > { %v5968_v9 = vadd.f32 %v4531_v39, %v2437_v44  ;;  %v2380_v48 = vpop.f32.mrf.mxu1 }
 0x1c6   : > { %v2803_v55 = vpop.f32.mrf.mxu0  ;;  %v2439_v62 = vadd.f32 %v2380_v48, %v5875_v25 }
 0x1c7   : > { %v5971_v38 = vadd.f32 %v2803_v55, %v2435_v15  ;;  %v4498_v19 = vpop.f32.mrf.mxu1 }
 0x1c8   : > { %v4532_v30 = vpop.f32.mrf.mxu0  ;;  %v2442_v14 = vadd.f32 %v4498_v19, %v5878_v61 }
 0x1c9   : > { %v5974_v23 = vadd.f32 %v4532_v30, %v2438_v20  ;;  %v2383_v29 = vpop.f32.mrf.mxu1 }
 0x1ca   : > { %v2806_v40 = vpop.f32.mrf.mxu0  ;;  %v2440_v7 = vadd.f32 %v2383_v29, %v5881_v6  ;;  %v6011_v29 = vld [vmem:[%s6202_s3] ss:$0 sm:$0xff] }
 0x1cb   : > { %v5977_v53 = vadd.f32 %v2806_v40, %v2436_v51  ;;  %v4501_v16 = vpop.f32.mrf.mxu1 }
 0x1cc   : > { %v4535_v21 = vpop.f32.mrf.mxu0  ;;  %v2445_v57 = vadd.f32 %v4501_v16, %v5884_v22 }
 0x1cd   : > { %v5980_v36 = vadd.f32 %v4535_v21, %v2441_v54  ;;  %v2396_v25 = vpop.f32.mrf.mxu1 }
 0x1ce   : > { %v2819_v2 = vpop.f32.mrf.mxu0  ;;  %v2443_v37 = vadd.f32 %v2396_v25, %v5887_v24 }
 0x1cf   : > { %v5983_v35 = vadd.f32 %v2819_v2, %v2439_v62  ;;  %v4502_v61 = vpop.f32.mrf.mxu1 }
 0x1d0   : > { %v4536_v58 = vpop.f32.mrf.mxu0  ;;  %v2446_v63 = vadd.f32 %v4502_v61, %v5890_v45 }
 0x1d1   : > { %v5986_v44 = vadd.f32 %v4536_v58, %v2442_v14  ;;  %v2399_v6 = vpop.f32.mrf.mxu1 }
 0x1d2   : > { %v2822_v8 = vpop.f32.mrf.mxu0  ;;  %v2444_v18 = vadd.f32 %v2399_v6, %v5893_v34  ;;  %v6004_v34 = vld [vmem:[%s6201_s2] ss:$0 sm:$0xff] }
 0x1d3   : > { %v5989_v15 = vadd.f32 %v2822_v8, %v2440_v7  ;;  %v4545_v22 = vpop.f32.mrf.mxu1 }
 0x1d4   : > { %v4539_v4 = vpop.f32.mrf.mxu0  ;;  %v3299_v45 = vadd.f32 %v4545_v22, %v5896_v56 }
 0x1d5   : > { %v5992_v20 = vadd.f32 %v4539_v4, %v2445_v57  ;;  %v3154_v24 = vpop.f32.mrf.mxu1 }
 0x1d6   : > { %v2835_v0 = vpop.f32.mrf.mxu0  ;;  %v3297_v19 = vadd.f32 %v3154_v24, %v5899_v33 }
 0x1d7   : > { %v5994_v39 = vadd.f32 %v2835_v0, %v2443_v37  ;;  %v4546_v55 = vpop.f32.mrf.mxu1 }
 0x1d8   : > { %v4540_v51 = vpop.f32.mrf.mxu0  ;;  %v3300_v21 = vadd.f32 %v4546_v55, %v5902_v17 }
 0x1d9   : > { %v5996_v59 = vadd.f32 %v4540_v51, %v2446_v63  ;;  %v3157_v30 = vpop.f32.mrf.mxu1 }
 0x1da   : > { %v2838_v54 = vpop.f32.mrf.mxu0  ;;  %v3298_v37 = vadd.f32 %v3157_v30, %v5905_v12 }
 0x1db   : > { %v5999_v48 = vadd.f32 %v2838_v54, %v2444_v18  ;;  %v4549_v14 = vpop.f32.mrf.mxu1 }
 0x1dc   : > { %v4583_v62 = vpop.f32.mrf.mxu0  ;;  %v3303_v8 = vadd.f32 %v4549_v14, %v5908_v27 }
 0x1dd   : > { %v3613_v40 = vadd.f32 %v4583_v62, %v3299_v45  ;;  %v3170_v2 = vpop.f32.mrf.mxu1 }
 0x1de   : > { %v3468_v56 = vpop.f32.mrf.mxu0  ;;  %v3301_v0 = vadd.f32 %v3170_v2, %v5911_v5 }
 0x1df   : > { %v3656_v7 = vmul.f32 %v6004_v34, %v3613_v40  ;;  %v3611_v16 = vadd.f32 %v3468_v56, %v3297_v19  ;;  %v4550_v17 = vpop.f32.mrf.mxu1 }
 0x1e0   : > { %v4584_v57 = vpop.f32.mrf.mxu0  ;;  %v3304_v30 = vadd.f32 %v4550_v17, %v5914_v60 }
 0x1e1   : > { %v3699_v25 = vadd.f32 %v6011_v29, %v3656_v7  ;;  %v3654_v33 = vmul.f32 %v6004_v34, %v3611_v16  ;;  %v3614_v58 = vadd.f32 %v4584_v57, %v3300_v21  ;;  %v3173_v18 = vpop.f32.mrf.mxu1 }
 0x1e2   : > { %v3471_v61 = vpop.f32.mrf.mxu0  ;;  %v3302_v2 = vadd.f32 %v3173_v18, %v5917_v31 }
 0x1e3   : > { %v3735_v63 = vmax.f32 %v3699_v25, 0.0  ;;  %v3697_v6 = vadd.f32 %v6011_v29, %v3654_v33  ;;  %v3657_v4 = vmul.f32 %v6004_v34, %v3614_v58  ;;  %v3612_v22 = vadd.f32 %v3471_v61, %v3298_v37  ;;  %v4553_v27 = vpop.f32.mrf.mxu1 }
 0x1e4   : > { %v4587_v12 = vpop.f32.mrf.mxu0  ;;  %v3307_v33 = vadd.f32 %v4553_v27, %v5920_v46 }
 0x1e5   : > { %3772 = vst.msk [vmem:[%s6021_s21 + $0x10] sm:$0xff] %vm3769_vm8, %v3735_v63  ;;  %v3733_v24 = vmax.f32 %v3697_v6, 0.0  ;;  %v3700_v51 = vadd.f32 %v6011_v29, %v3657_v4  ;;  %v3617_v55 = vadd.f32 %v4587_v12, %v3303_v8  ;;  %v3655_v54 = vmul.f32 %v6004_v34, %v3612_v22  ;;  %v3186_v5 = vpop.f32.mrf.mxu1 }
 0x1e6   : > { %v3484_v45 = vpop.f32.mrf.mxu0  ;;  %v3305_v31 = vadd.f32 %v3186_v5, %v5923_v13 }
 0x1e7   : > { %3770 = vst.msk [vmem:[%s6021_s21] sm:$0xff] %vm3769_vm8, %v3733_v24  ;;  %v3736_v62 = vmax.f32 %v3700_v51, 0.0  ;;  %v3660_v19 = vmul.f32 %v6004_v34, %v3617_v55  ;;  %v3615_v40 = vadd.f32 %v3484_v45, %v3301_v0  ;;  %v3698_v14 = vadd.f32 %v6011_v29, %v3655_v54  ;;  %v4554_v57 = vpop.f32.mrf.mxu1 }
 0x1e8   : > { %v4588_v56 = vpop.f32.mrf.mxu0  ;;  %v3308_v0 = vadd.f32 %v4554_v57, %v5926_v28 }
 0x1e9   : > { %3773 = vst.msk [vmem:[%s6021_s21 + $0x18] sm:$0xff] %vm3769_vm8, %v3736_v62  ;;  %v3703_v21 = vadd.f32 %v6011_v29, %v3660_v19  ;;  %v3658_v7 = vmul.f32 %v6004_v34, %v3615_v40  ;;  %v3618_v16 = vadd.f32 %v4588_v56, %v3304_v30  ;;  %v3734_v60 = vmax.f32 %v3698_v14, 0.0  ;;  %v3189_v61 = vpop.f32.mrf.mxu1 }
 0x1ea   : > { %v3487_v25 = vpop.f32.mrf.mxu0  ;;  %v3306_v19 = vadd.f32 %v3189_v61, %v5929_v42 }
 0x1eb   : > { %v3739_v58 = vmax.f32 %v3703_v21, 0.0  ;;  %v3701_v37 = vadd.f32 %v6011_v29, %v3658_v7  ;;  %v3661_v17 = vmul.f32 %v6004_v34, %v3618_v16  ;;  %3771 = vst.msk [vmem:[%s6021_s21 + $0x8] sm:$0xff] %vm3769_vm8, %v3734_v60  ;;  %v3616_v8 = vadd.f32 %v3487_v25, %v3302_v2  ;;  %v4557_v22 = vpop.f32.mrf.mxu1 }
 0x1ec   : > { %v4591_v63 = vpop.f32.mrf.mxu0  ;;  %v3311_v5 = vadd.f32 %v4557_v22, %v5932_v47 }
 0x1ed   : > { %3776 = vst.msk [vmem:[%s6021_s21 + $0x30] sm:$0xff] %vm3769_vm8, %v3739_v58  ;;  %v3737_v6 = vmax.f32 %v3701_v37, 0.0  ;;  %v3704_v4 = vadd.f32 %v6011_v29, %v3661_v17  ;;  %v3621_v46 = vadd.f32 %v4591_v63, %v3307_v33  ;;  %v3659_v18 = vmul.f32 %v6004_v34, %v3616_v8  ;;  %v3202_v13 = vpop.f32.mrf.mxu1 }
 0x1ee   : > { %v3500_v12 = vpop.f32.mrf.mxu0  ;;  %v3309_v42 = vadd.f32 %v3202_v13, %v5935_v11 }
 0x1ef   : > { %3774 = vst.msk [vmem:[%s6021_s21 + $0x20] sm:$0xff] %vm3769_vm8, %v3737_v6  ;;  %v3740_v24 = vmax.f32 %v3704_v4, 0.0  ;;  %v3664_v51 = vmul.f32 %v6004_v34, %v3621_v46  ;;  %v3619_v55 = vadd.f32 %v3500_v12, %v3305_v31  ;;  %v3702_v54 = vadd.f32 %v6011_v29, %v3659_v18  ;;  %v4558_v40 = vpop.f32.mrf.mxu1 }
 0x1f0   : > { %v4592_v27 = vpop.f32.mrf.mxu0  ;;  %v3312_v17 = vadd.f32 %v4558_v40, %v5938_v1 }
 0x1f1   : > { %3777 = vst.msk [vmem:[%s6021_s21 + $0x38] sm:$0xff] %vm3769_vm8, %v3740_v24  ;;  %v3707_v45 = vadd.f32 %v6011_v29, %v3664_v51  ;;  %v3662_v30 = vmul.f32 %v6004_v34, %v3619_v55  ;;  %v3622_v62 = vadd.f32 %v4592_v27, %v3308_v0  ;;  %v3738_v28 = vmax.f32 %v3702_v54, 0.0  ;;  %v3205_v16 = vpop.f32.mrf.mxu1 }
 0x1f2   : > { %v3503_v14 = vpop.f32.mrf.mxu0  ;;  %v3310_v22 = vadd.f32 %v3205_v16, %v5941_v50 }
 0x1f3   : > { %v3743_v56 = vmax.f32 %v3707_v45, 0.0  ;;  %v3705_v21 = vadd.f32 %v6011_v29, %v3662_v30  ;;  %v3665_v7 = vmul.f32 %v6004_v34, %v3622_v62  ;;  %3775 = vst.msk [vmem:[%s6021_s21 + $0x28] sm:$0xff] %vm3769_vm8, %v3738_v28  ;;  %v3620_v2 = vadd.f32 %v3503_v14, %v3306_v19  ;;  %v4561_v58 = vpop.f32.mrf.mxu1 }
 0x1f4   : > { %v4595_v60 = vpop.f32.mrf.mxu0  ;;  %v3315_v24 = vadd.f32 %v4561_v58, %v5944_v41 }
 0x1f5   : > { %3780 = vst.msk [vmem:[%s6021_s21 + $0x50] sm:$0xff] %vm3769_vm8, %v3743_v56  ;;  %v3741_v57 = vmax.f32 %v3705_v21, 0.0  ;;  %v3708_v25 = vadd.f32 %v6011_v29, %v3665_v7  ;;  %v3625_v47 = vadd.f32 %v4595_v60, %v3311_v5  ;;  %v3663_v33 = vmul.f32 %v6004_v34, %v3620_v2  ;;  %v3218_v11 = vpop.f32.mrf.mxu1 }
 0x1f6   : > { %v3516_v37 = vpop.f32.mrf.mxu0  ;;  %v3313_v50 = vadd.f32 %v3218_v11, %v5947_v52 }
 0x1f7   : > { %3778 = vst.msk [vmem:[%s6021_s21 + $0x40] sm:$0xff] %vm3769_vm8, %v3741_v57  ;;  %v3744_v61 = vmax.f32 %v3708_v25, 0.0  ;;  %v3668_v8 = vmul.f32 %v6004_v34, %v3625_v47  ;;  %v3623_v63 = vadd.f32 %v3516_v37, %v3309_v42  ;;  %v3706_v31 = vadd.f32 %v6011_v29, %v3663_v33  ;;  %v4562_v12 = vpop.f32.mrf.mxu1 }
 0x1f8   : > { %v4596_v6 = vpop.f32.mrf.mxu0  ;;  %v3316_v14 = vadd.f32 %v4562_v12, %v5950_v49 }
 0x1f9   : > { %3781 = vst.msk [vmem:[%s6021_s21 + $0x58] sm:$0xff] %vm3769_vm8, %v3744_v61  ;;  %v3711_v4 = vadd.f32 %v6011_v29, %v3668_v8  ;;  %v3666_v46 = vmul.f32 %v6004_v34, %v3623_v63  ;;  %v3626_v18 = vadd.f32 %v4596_v6, %v3312_v17  ;;  %v3742_v1 = vmax.f32 %v3706_v31, 0.0  ;;  %v3221_v13 = vpop.f32.mrf.mxu1 }
 0x1fa   : > { %v3519_v0 = vpop.f32.mrf.mxu0  ;;  %v3314_v57 = vadd.f32 %v3221_v13, %v5953_v26 }
 0x1fb   : > { %v3747_v51 = vmax.f32 %v3711_v4, 0.0  ;;  %v3709_v55 = vadd.f32 %v6011_v29, %v3666_v46  ;;  %v3669_v54 = vmul.f32 %v6004_v34, %v3626_v18  ;;  %3779 = vst.msk [vmem:[%s6021_s21 + $0x48] sm:$0xff] %vm3769_vm8, %v3742_v1  ;;  %v3624_v27 = vadd.f32 %v3519_v0, %v3310_v22  ;;  %v4565_v28 = vpop.f32.mrf.mxu1 }
 0x1fc   : > { %v4599_v45 = vpop.f32.mrf.mxu0  ;;  %v3319_v33 = vadd.f32 %v4565_v28, %v5956_v10 }
 0x1fd   : > { %3784 = vst.msk [vmem:[%s6021_s21 + $0x70] sm:$0xff] %vm3769_vm8, %v3747_v51  ;;  %v3745_v30 = vmax.f32 %v3709_v55, 0.0  ;;  %v3712_v62 = vadd.f32 %v6011_v29, %v3669_v54  ;;  %v3629_v41 = vadd.f32 %v4599_v45, %v3315_v24  ;;  %v3667_v19 = vmul.f32 %v6004_v34, %v3624_v27  ;;  %v3234_v52 = vpop.f32.mrf.mxu1 }
 0x1fe   : > { %v3532_v40 = vpop.f32.mrf.mxu0  ;;  %v3317_v26 = vadd.f32 %v3234_v52, %v5959_v3 }
 0x1ff   : > { %3782 = vst.msk [vmem:[%s6021_s21 + $0x60] sm:$0xff] %vm3769_vm8, %v3745_v30  ;;  %v3748_v5 = vmax.f32 %v3712_v62, 0.0  ;;  %v3672_v56 = vmul.f32 %v6004_v34, %v3629_v41  ;;  %v3627_v21 = vadd.f32 %v3532_v40, %v3313_v50  ;;  %v3710_v7 = vadd.f32 %v6011_v29, %v3667_v19  ;;  %v4566_v25 = vpop.f32.mrf.mxu1 }
 0x200   : > { %v4600_v16 = vpop.f32.mrf.mxu0  ;;  %v3320_v18 = vadd.f32 %v4566_v25, %v5962_v43 }
 0x201   : > { %3785 = vst.msk [vmem:[%s6021_s21 + $0x78] sm:$0xff] %vm3769_vm8, %v3748_v5  ;;  %v3715_v2 = vadd.f32 %v6011_v29, %v3672_v56  ;;  %v3670_v60 = vmul.f32 %v6004_v34, %v3627_v21  ;;  %v3630_v42 = vadd.f32 %v4600_v16, %v3316_v14  ;;  %v3746_v49 = vmax.f32 %v3710_v7, 0.0  ;;  %v3237_v61 = vpop.f32.mrf.mxu1 }
 0x202   : > { %v3535_v47 = vpop.f32.mrf.mxu0  ;;  %v3318_v13 = vadd.f32 %v3237_v61, %v5965_v32 }
 0x203   : > { %v3751_v58 = vmax.f32 %v3715_v2, 0.0  ;;  %v3713_v37 = vadd.f32 %v6011_v29, %v3670_v60  ;;  %v3673_v17 = vmul.f32 %v6004_v34, %v3630_v42  ;;  %3783 = vst.msk [vmem:[%s6021_s21 + $0x68] sm:$0xff] %vm3769_vm8, %v3746_v49  ;;  %v3628_v8 = vadd.f32 %v3535_v47, %v3314_v57  ;;  %v4569_v4 = vpop.f32.mrf.mxu1 }
 0x204   : > { %v4603_v63 = vpop.f32.mrf.mxu0  ;;  %v3323_v50 = vadd.f32 %v4569_v4, %v5968_v9 }
 0x205   : > { %3788 = vst.msk [vmem:[%s6021_s21 + $0x90] sm:$0xff] %vm3769_vm8, %v3751_v58  ;;  %v3749_v31 = vmax.f32 %v3713_v37, 0.0  ;;  %v3716_v11 = vadd.f32 %v6011_v29, %v3673_v17  ;;  %v3633_v10 = vadd.f32 %v4603_v63, %v3319_v33  ;;  %v3671_v6 = vmul.f32 %v6004_v34, %v3628_v8  ;;  %v3250_v3 = vpop.f32.mrf.mxu1 }
 0x206   : > { %v3548_v46 = vpop.f32.mrf.mxu0  ;;  %v3321_v32 = vadd.f32 %v3250_v3, %v5971_v38 }
 0x207   : > { %3786 = vst.msk [vmem:[%s6021_s21 + $0x80] sm:$0xff] %vm3769_vm8, %v3749_v31  ;;  %v3752_v22 = vmax.f32 %v3716_v11, 0.0  ;;  %v3676_v1 = vmul.f32 %v6004_v34, %v3633_v10  ;;  %v3631_v12 = vadd.f32 %v3548_v46, %v3317_v26  ;;  %v3714_v0 = vadd.f32 %v6011_v29, %v3671_v6  ;;  %v4570_v27 = vpop.f32.mrf.mxu1 }
 0x208   : > { %v4604_v24 = vpop.f32.mrf.mxu0  ;;  %v3324_v52 = vadd.f32 %v4570_v27, %v5974_v23 }
 0x209   : > { %3789 = vst.msk [vmem:[%s6021_s21 + $0x98] sm:$0xff] %vm3769_vm8, %v3752_v22  ;;  %v3719_v51 = vadd.f32 %v6011_v29, %v3676_v1  ;;  %v3674_v55 = vmul.f32 %v6004_v34, %v3631_v12  ;;  %v3634_v54 = vadd.f32 %v4604_v24, %v3320_v18  ;;  %v3750_v43 = vmax.f32 %v3714_v0, 0.0  ;;  %v3253_v19 = vpop.f32.mrf.mxu1 }
 0x20a   : > { %v3551_v45 = vpop.f32.mrf.mxu0  ;;  %v3322_v33 = vadd.f32 %v3253_v19, %v5977_v53 }
 0x20b   : > { %v3755_v30 = vmax.f32 %v3719_v51, 0.0  ;;  %v3717_v62 = vadd.f32 %v6011_v29, %v3674_v55  ;;  %v3677_v41 = vmul.f32 %v6004_v34, %v3634_v54  ;;  %3787 = vst.msk [vmem:[%s6021_s21 + $0x88] sm:$0xff] %vm3769_vm8, %v3750_v43  ;;  %v3632_v28 = vadd.f32 %v3551_v45, %v3318_v13  ;;  %v4573_v21 = vpop.f32.mrf.mxu1 }
 0x20c   : > { %v4607_v40 = vpop.f32.mrf.mxu0  ;;  %v3327_v17 = vadd.f32 %v4573_v21, %v5980_v36 }
 0x20d   : > { %3792 = vst.msk [vmem:[%s6021_s21 + $0xb0] sm:$0xff] %vm3769_vm8, %v3755_v30  ;;  %v3753_v14 = vmax.f32 %v3717_v62, 0.0  ;;  %v3720_v5 = vadd.f32 %v6011_v29, %v3677_v41  ;;  %v3637_v9 = vadd.f32 %v4607_v40, %v3323_v50  ;;  %v3675_v56 = vmul.f32 %v6004_v34, %v3632_v28  ;;  %v3266_v38 = vpop.f32.mrf.mxu1 }
 0x20e   : > { %v3564_v7 = vpop.f32.mrf.mxu0  ;;  %v3325_v53 = vadd.f32 %v3266_v38, %v5983_v35 }
 0x20f   : > { %3790 = vst.msk [vmem:[%s6021_s21 + $0xa0] sm:$0xff] %vm3769_vm8, %v3753_v14  ;;  %v3756_v16 = vmax.f32 %v3720_v5, 0.0  ;;  %v3680_v2 = vmul.f32 %v6004_v34, %v3637_v9  ;;  %v3635_v60 = vadd.f32 %v3564_v7, %v3321_v32  ;;  %v3718_v42 = vadd.f32 %v6011_v29, %v3675_v56  ;;  %v4574_v58 = vpop.f32.mrf.mxu1 }
 0x210   : > { %v4608_v57 = vpop.f32.mrf.mxu0  ;;  %v3328_v22 = vadd.f32 %v4574_v58, %v5986_v44 }
 0x211   : > { %3793 = vst.msk [vmem:[%s6021_s21 + $0xb8] sm:$0xff] %vm3769_vm8, %v3756_v16  ;;  %v3723_v49 = vadd.f32 %v6011_v29, %v3680_v2  ;;  %v3678_v25 = vmul.f32 %v6004_v34, %v3635_v60  ;;  %v3638_v47 = vadd.f32 %v4608_v57, %v3324_v52  ;;  %v3754_v23 = vmax.f32 %v3718_v42, 0.0  ;;  %v3269_v26 = vpop.f32.mrf.mxu1 }
 0x212   : > { %v3567_v37 = vpop.f32.mrf.mxu0  ;;  %v3326_v13 = vadd.f32 %v3269_v26, %v5989_v15 }
 0x213   : > { %v3759_v61 = vmax.f32 %v3723_v49, 0.0  ;;  %v3721_v8 = vadd.f32 %v6011_v29, %v3678_v25  ;;  %v3681_v63 = vmul.f32 %v6004_v34, %v3638_v47  ;;  %3791 = vst.msk [vmem:[%s6021_s21 + $0xa8] sm:$0xff] %vm3769_vm8, %v3754_v23  ;;  %v3636_v31 = vadd.f32 %v3567_v37, %v3322_v33  ;;  %v4577_v46 = vpop.f32.mrf.mxu1 }
 0x214   : > { %v4611_v11 = vpop.f32.mrf.mxu0  ;;  %v3331_v45 = vadd.f32 %v4577_v46, %v5992_v20 }
 0x215   : > { %3796 = vst.msk [vmem:[%s6021_s21 + $0xd0] sm:$0xff] %vm3769_vm8, %v3759_v61  ;;  %v3757_v10 = vmax.f32 %v3721_v8, 0.0  ;;  %v3724_v6 = vadd.f32 %v6011_v29, %v3681_v63  ;;  %v3641_v36 = vadd.f32 %v4611_v11, %v3327_v17  ;;  %v3679_v4 = vmul.f32 %v6004_v34, %v3636_v31  ;;  %v3282_v35 = vpop.f32.mrf.mxu1 }
 0x216   : > { %v3580_v18 = vpop.f32.mrf.mxu0  ;;  %v3329_v15 = vadd.f32 %v3282_v35, %v5994_v39 }
 0x217   : > { %3794 = vst.msk [vmem:[%s6021_s21 + $0xc0] sm:$0xff] %vm3769_vm8, %v3757_v10  ;;  %v3760_v1 = vmax.f32 %v3724_v6, 0.0  ;;  %v3684_v12 = vmul.f32 %v6004_v34, %v3641_v36  ;;  %v3639_v0 = vadd.f32 %v3580_v18, %v3325_v53  ;;  %v3722_v3 = vadd.f32 %v6011_v29, %v3679_v4  ;;  %v4578_v43 = vpop.f32.mrf.mxu1 }
 0x218   : > { %v4612_v24 = vpop.f32.mrf.mxu0  ;;  %v3332_v9 = vadd.f32 %v4578_v43, %v5996_v59 }
 0x219   : > { %3797 = vst.msk [vmem:[%s6021_s21 + $0xd8] sm:$0xff] %vm3769_vm8, %v3760_v1  ;;  %v3727_v51 = vadd.f32 %v6011_v29, %v3684_v12  ;;  %v3682_v55 = vmul.f32 %v6004_v34, %v3639_v0  ;;  %v3642_v54 = vadd.f32 %v4612_v24, %v3328_v22  ;;  %v3758_v44 = vmax.f32 %v3722_v3, 0.0  ;;  %v3285_v14 = vpop.f32.mrf.mxu1 }
 0x21a   : > { %v3583_v27 = vpop.f32.mrf.mxu0  ;;  %v3330_v16 = vadd.f32 %v3285_v14, %v5999_v48 }
 0x21b   : > { %v3763_v50 = vmax.f32 %v3727_v51, 0.0  ;;  %v3725_v30 = vadd.f32 %v6011_v29, %v3682_v55  ;;  %v3685_v62 = vmul.f32 %v6004_v34, %v3642_v54  ;;  %3795 = vst.msk [vmem:[%s6021_s21 + $0xc8] sm:$0xff] %vm3769_vm8, %v3758_v44  ;;  %v3640_v41 = vadd.f32 %v3583_v27, %v3326_v13 }
 0x21c   : > { %v4615_v19 = vpop.f32.mrf.mxu0 }
 0x21d   : > { %3800 = vst.msk [vmem:[%s6021_s21 + $0xf0] sm:$0xff] %vm3769_vm8, %v3763_v50  ;;  %v3761_v28 = vmax.f32 %v3725_v30, 0.0  ;;  %v3728_v40 = vadd.f32 %v6011_v29, %v3685_v62  ;;  %v3645_v32 = vadd.f32 %v4615_v19, %v3331_v45  ;;  %v3683_v20 = vmul.f32 %v6004_v34, %v3640_v41 }
 0x21e   : > { %v3596_v5 = vpop.f32.mrf.mxu0 }
 0x21f   : > { %3798 = vst.msk [vmem:[%s6021_s21 + $0xe0] sm:$0xff] %vm3769_vm8, %v3761_v28  ;;  %v3764_v56 = vmax.f32 %v3728_v40, 0.0  ;;  %v3688_v21 = vmul.f32 %v6004_v34, %v3645_v32  ;;  %v3643_v7 = vadd.f32 %v3596_v5, %v3329_v15  ;;  %v3726_v39 = vadd.f32 %v6011_v29, %v3683_v20 }
 0x220   : > { %v4616_v52 = vpop.f32.mrf.mxu0 }
 0x221   : > { %3801 = vst.msk [vmem:[%s6021_s21 + $0xf8] sm:$0xff] %vm3769_vm8, %v3764_v56  ;;  %v3731_v2 = vadd.f32 %v6011_v29, %v3688_v21  ;;  %v3686_v60 = vmul.f32 %v6004_v34, %v3643_v7  ;;  %v3646_v59 = vadd.f32 %v4616_v52, %v3332_v9  ;;  %v3762_v42 = vmax.f32 %v3726_v39, 0.0 }
 0x222   : > { %v3599_v38 = vpop.f32.mrf.mxu0 }
 0x223   : > { %v3767_v57 = vmax.f32 %v3731_v2, 0.0  ;;  %v3729_v49 = vadd.f32 %v6011_v29, %v3686_v60  ;;  %v3689_v25 = vmul.f32 %v6004_v34, %v3646_v59  ;;  %v3644_v47 = vadd.f32 %v3599_v38, %v3330_v16  ;;  %3799 = vst.msk [vmem:[%s6021_s21 + $0xe8] sm:$0xff] %vm3769_vm8, %v3762_v42 }
 0x225   : > { %3804 = vst.msk [vmem:[%s6021_s21 + $0x110] sm:$0xff] %vm3769_vm8, %v3767_v57  ;;  %v3765_v48 = vmax.f32 %v3729_v49, 0.0  ;;  %v3732_v33 = vadd.f32 %v6011_v29, %v3689_v25  ;;  %v3687_v23 = vmul.f32 %v6004_v34, %v3644_v47 }
 0x227   : > { %3802 = vst.msk [vmem:[%s6021_s21 + $0x100] sm:$0xff] %vm3769_vm8, %v3765_v48  ;;  %v3768_v58 = vmax.f32 %v3732_v33, 0.0  ;;  %v3730_v37 = vadd.f32 %v6011_v29, %v3687_v23 }
 0x229   : > { %3805 = vst.msk [vmem:[%s6021_s21 + $0x118] sm:$0xff] %vm3769_vm8, %v3768_v58  ;;  %v3766_v17 = vmax.f32 %v3730_v37, 0.0 }
 0x22b   : > { %3803 = vst.msk [vmem:[%s6021_s21 + $0x108] sm:$0xff] %vm3769_vm8, %v3766_v17 }
 0x22c PF: > { %s14_s15 = sadd.s32 1, %s4707_s15  }
 0x22d   : > { %p11_p4 = scmp.ge.s32.totalorder %s14_s15, 4  }
 0x22f   :  { %13 = sbr.rel (!%p11_p4) target bundleno = 1 (0x1), region = 74 }

</bundles_post_ra>
